<compile_context>
chip_gen: v7x
topology: tpu7x:2x2x1
jax: 0.10.0
libtpu: 0.0.40
codegen_flags: <defaults>
</compile_context>

<pallas_src>
import functools

import numpy as np

import jax
import jax.numpy as jnp
from jax import lax
from jax.experimental import pallas as pl
from jax.experimental.pallas import tpu as pltpu

# Resident VMEM use is ~6 MiB (weights x2 buffers + values); 32 MiB is safely
# inside every generation's physical budget (v5e/v6e 128 MiB, v7x 64 MiB).
_VMEM_LIMIT = 32 * 1024 * 1024


# ---------------------------------------------------------------------------
# One fused kernel: 3 x (conv+BN+ReLU+pool)  ->  biLSTM(last)  ->  FC  ->  log_softmax
# ---------------------------------------------------------------------------
def _fused_kernel(x_ref,
                  sel1_ref, wb1_ref, ss1_ref,
                  sel2_ref, wb2_ref, ss2_ref,
                  sel3_ref, wb3_ref, ss3_ref,
                  wih_f_ref, whh_f_ref, b_f_ref,
                  wih_b_ref, b_b_ref, wfc_ref, bfc_ref,
                  out_ref, xg_ref, *,
                  block_dims, seq_len, hidden):
    """One grid cell == one batch element.  All activations live in VMEM."""

    def conv_block(x_bf16, sel_ref, wbig_ref, ss_ref, hp, npool):
        # 1) window-selection matmul: Q row (o*hp + t) = input row 5t+o-1
        #    (zero rows where that falls in the conv zero-padding).
        q = jnp.dot(sel_ref[...], x_bf16, preferred_element_type=jnp.float32)
        # 2) lane-concat the 9 taps -> one big-K banded conv matmul.
        qcat = jnp.concatenate([q[o * hp:(o + 1) * hp, :] for o in range(9)],
                               axis=1)
        conv = jnp.dot(qcat.astype(jnp.bfloat16), wbig_ref[...],
                       preferred_element_type=jnp.float32)
        # BN(eval) + conv-bias folded into one affine, then ReLU.
        y = jnp.maximum(conv * ss_ref[0:1, :] + ss_ref[1:2, :], 0.0)
        # MaxPool((5,2)): columns are ordered (ph, pw, w, c) -> max over the
        # 10 (ph, pw) column slabs; result is the next block's (w, c) layout.
        nsl = y.shape[1] // npool
        pooled = y[:, :npool]
        for j in range(1, nsl):
            pooled = jnp.maximum(pooled, y[:, j * npool:(j + 1) * npool])
        return pooled                                    # (hp, Wp*Cout) f32

    act = x_ref[...].astype(jnp.bfloat16)                # (Hin, Win), Cin == 1
    act = conv_block(act, sel1_ref, wb1_ref, ss1_ref,
                     *block_dims[0]).astype(jnp.bfloat16)
    act = conv_block(act, sel2_ref, wb2_ref, ss2_ref,
                     *block_dims[1]).astype(jnp.bfloat16)
    seq = conv_block(act, sel3_ref, wb3_ref, ss3_ref, *block_dims[2])
    seq_bf = seq.astype(jnp.bfloat16)                    # (T, D) == permute+squeeze

    # ---- bidirectional LSTM, last output timestep only ----------------------
    def sigmoid(v):                                      # EUP-only, robust form
        return 0.5 * (jnp.tanh(0.5 * v) + 1.0)

    def cell(gates, c_prev):
        i = sigmoid(gates[:, 0 * hidden:1 * hidden])
        f = sigmoid(gates[:, 1 * hidden:2 * hidden])
        g = jnp.tanh(gates[:, 2 * hidden:3 * hidden])
        o = sigmoid(gates[:, 3 * hidden:4 * hidden])
        c_new = f * c_prev + i * g
        return o * jnp.tanh(c_new), c_new

    # Hoisted input projection for the forward direction (one dot for all T).
    xg_ref[...] = (jnp.dot(seq_bf, wih_f_ref[...],
                           preferred_element_type=jnp.float32) + b_f_ref[...])

    def step(t, carry):
        h, c = carry
        gates = xg_ref[pl.ds(t, 1), :] + jnp.dot(
            h.astype(jnp.bfloat16), whh_f_ref[...],
            preferred_element_type=jnp.float32)
        return cell(gates, c)

    zeros = jnp.zeros((1, hidden), jnp.float32)
    h_fwd, _ = lax.fori_loop(0, seq_len, step, (zeros, zeros), unroll=True)

    # Backward direction at the last output position == one cell step on x[T-1]
    # from the zero state; the h0 @ Whh_b term vanishes, so Whh_b is not loaded.
    gates_b = (jnp.dot(seq_bf[seq_len - 1:seq_len, :], wih_b_ref[...],
                       preferred_element_type=jnp.float32) + b_b_ref[...])
    h_bwd, _ = cell(gates_b, zeros)

    # ---- Dropout(eval) == identity, Linear, log_softmax ---------------------
    hcat = jnp.concatenate([h_fwd, h_bwd], axis=1).astype(jnp.bfloat16)
    logits = jnp.dot(hcat, wfc_ref[...],
                     preferred_element_type=jnp.float32) + bfc_ref[...]
    m = jnp.max(logits, axis=1, keepdims=True)
    lse = m + jnp.log(jnp.sum(jnp.exp(logits - m), axis=1, keepdims=True))
    out_ref[...] = logits - lse                          # lane-dense (1, 128k)


# ---------------------------------------------------------------------------
# One-time parameter preparation (runs eagerly, outside jit)
# ---------------------------------------------------------------------------
def _build_sel(hp, hin):
    """0/1 selection: row (o*hp + t) picks input row 5t+o-1 (zero if padded)."""
    o = np.arange(9)[:, None]
    t = np.arange(hp)[None, :]
    tgt = (5 * t + o - 1).reshape(-1, 1)                 # o-major row order
    r = np.arange(hin)[None, :]
    sel = (tgt == r) & (tgt >= 0) & (tgt < hin)
    return jnp.asarray(sel, jnp.bfloat16)


def _build_conv_weight(w, win, wp):
    """Banded conv weight: rows (o, wi, ci), cols (ph, pw, wp, co).

    W zero-padding is folded in (taps reading padded columns are zero), and the
    column order makes MaxPool((5,2)) a max over 10 contiguous column slabs.
    """
    kh, kw, cin, cout = w.shape                          # (5, 3, cin, cout)
    o = np.arange(9)[:, None]
    ph = np.arange(5)[None, :]
    khi = o - ph                                         # (9, 5)
    w_kh = w[np.clip(khi, 0, kh - 1)]                    # (9, 5, kw, cin, cout)
    w_kh = w_kh * jnp.asarray((khi >= 0) & (khi < kh),
                              w.dtype)[..., None, None, None]
    wi = np.arange(win)[:, None, None]
    pw = np.arange(2)[None, :, None]
    wpv = np.arange(wp)[None, None, :]
    kwi = wi - (2 * wpv + pw) + 1                        # (win, 2, wp)
    w_full = w_kh[:, :, np.clip(kwi, 0, kw - 1), :, :]   # (9,5,win,2,wp,cin,cout)
    w_full = w_full * jnp.asarray((kwi >= 0) & (kwi < kw),
                                  w.dtype)[None, None, :, :, :, None, None]
    w_full = jnp.transpose(w_full, (0, 2, 5, 1, 3, 4, 6))  # (o,wi,ci,ph,pw,wp,co)
    return w_full.reshape(9 * win * cin, 10 * wp * cout).astype(jnp.bfloat16)


def _build_scale_shift(b, gamma, beta, mean, var, wp, eps):
    scale_c = gamma / jnp.sqrt(var + eps)
    shift_c = (b - mean) * scale_c + beta
    scale = jnp.tile(scale_c, 10 * wp)
    shift = jnp.tile(shift_c, 10 * wp)
    return jnp.stack([scale, shift], axis=0).astype(jnp.float32)


def prepare_params(params, input_hw, n_output, hidden=256, eps=1e-5):
    hin0, win0 = input_hw
    arrays, blocks = {}, []
    hin, win, cin = hin0, win0, 1
    for idx, name in enumerate(("block1", "block2", "block3"), start=1):
        w, b, gamma, beta, mean, var = params[name]
        assert w.shape[:3] == (5, 3, cin), w.shape
        cout = w.shape[3]
        hp = (hin - 2) // 5            # conv(pad=1) then MaxPool((5,2)), floor mode
        wp = win // 2
        assert hp >= 1 and wp >= 1, (hp, wp)
        arrays[f"sel{idx}"] = _build_sel(hp, hin)
        arrays[f"wb{idx}"] = _build_conv_weight(w, win, wp)
        arrays[f"ss{idx}"] = _build_scale_shift(b, gamma, beta, mean, var, wp, eps)
        blocks.append((hp, wp * cout))
        hin, win, cin = hp, wp, cout
    assert win == 1, "input width must collapse to 1 before the LSTM"
    seq_len, d_in = hin, cin

    wih_f, whh_f, b_f, wih_b, _whh_b, b_b, wfc, bfc = params["head"]
    # _whh_b is never used: the backward direction only runs its first step
    # (zero initial state) to produce output[:, -1], so h0 @ Whh_b == 0.
    assert wih_f.shape == (d_in, 4 * hidden)
    n_pad = -(-n_output // 128) * 128
    arrays.update(
        wih_f=wih_f.astype(jnp.bfloat16),
        whh_f=whh_f.astype(jnp.bfloat16),
        b_f=b_f.astype(jnp.float32),
        wih_b=wih_b.astype(jnp.bfloat16),
        b_b=b_b.astype(jnp.float32),
        wfc=jnp.pad(wfc, ((0, 0), (0, n_pad - n_output))).astype(jnp.bfloat16),
        bfc=jnp.pad(bfc, ((0, 0), (0, n_pad - n_output)),
                    constant_values=-1e9).astype(jnp.float32),
    )
    static = dict(hin=hin0, win=win0, block_dims=tuple(blocks),
                  seq_len=seq_len, d_in=d_in, hidden=hidden,
                  n_out=n_output, n_pad=n_pad)
    return {"arrays": arrays, "static": static}


# ---------------------------------------------------------------------------
# Forward pass: a single pallas_call, gridded over batch ("parallel" for v7x)
# ---------------------------------------------------------------------------
def cnn_lstm_linear_forward(x, prepped):
    arrs, st = prepped["arrays"], prepped["static"]
    B = x.shape[0]
    assert x.shape[1:] == (st["hin"], st["win"]), x.shape
    n_pad = st["n_pad"]

    operands = [x,
                arrs["sel1"], arrs["wb1"], arrs["ss1"],
                arrs["sel2"], arrs["wb2"], arrs["ss2"],
                arrs["sel3"], arrs["wb3"], arrs["ss3"],
                arrs["wih_f"], arrs["whh_f"], arrs["b_f"],
                arrs["wih_b"], arrs["b_b"], arrs["wfc"], arrs["bfc"]]

    in_specs = [pl.BlockSpec((None,) + x.shape[1:], lambda b: (b, 0, 0))]
    for a in operands[1:]:
        # constants: full-array block, fixed index -> DMA'd once, kept resident
        in_specs.append(pl.BlockSpec(a.shape, lambda b: (0, 0)))

    kernel = functools.partial(_fused_kernel,
                               block_dims=st["block_dims"],
                               seq_len=st["seq_len"],
                               hidden=st["hidden"])

    out = pl.pallas_call(
        kernel,
        out_shape=jax.ShapeDtypeStruct((B, 1, n_pad), jnp.float32),
        grid=(B,),
        in_specs=in_specs,
        out_specs=pl.BlockSpec((None, 1, n_pad), lambda b: (b, 0, 0)),
        scratch_shapes=[pltpu.VMEM((st["seq_len"], 4 * st["hidden"]),
                                   jnp.float32)],
        compiler_params=pltpu.CompilerParams(
            dimension_semantics=("parallel",),
            vmem_limit_bytes=_VMEM_LIMIT),
    )(*operands)
    return out[:, 0, :st["n_out"]]


# ---------------------------------------------------------------------------
# Deterministic parameter init (shapes match the PyTorch __init__)
# ---------------------------------------------------------------------------
def init_params(key, n_channel, n_output, hidden=256):
    keys = iter(jax.random.split(key, 32))

    def conv_block(cin, cout):
        w = 0.1 * jax.random.normal(next(keys), (5, 3, cin, cout), jnp.float32)
        b = 0.1 * jax.random.normal(next(keys), (cout,), jnp.float32)
        gamma = 1.0 + 0.1 * jax.random.normal(next(keys), (cout,), jnp.float32)
        beta = 0.1 * jax.random.normal(next(keys), (cout,), jnp.float32)
        mean = 0.1 * jax.random.normal(next(keys), (cout,), jnp.float32)
        var = jax.random.uniform(next(keys), (cout,), jnp.float32, 0.5, 1.5)
        return (w, b, gamma, beta, mean, var)

    d_in = 4 * n_channel

    def lstm_dir():
        wih = 0.05 * jax.random.normal(next(keys), (d_in, 4 * hidden), jnp.float32)
        whh = 0.05 * jax.random.normal(next(keys), (hidden, 4 * hidden), jnp.float32)
        bias = 0.05 * jax.random.normal(next(keys), (1, 4 * hidden), jnp.float32)
        return wih, whh, bias

    wih_f, whh_f, b_f = lstm_dir()
    wih_b, whh_b, b_b = lstm_dir()
    wfc = 0.05 * jax.random.normal(next(keys), (2 * hidden, n_output), jnp.float32)
    bfc = 0.05 * jax.random.normal(next(keys), (1, n_output), jnp.float32)

    return {
        "block1": conv_block(1, n_channel),
        "block2": conv_block(n_channel, 2 * n_channel),
        "block3": conv_block(2 * n_channel, 4 * n_channel),
        "head": (wih_f, whh_f, b_f, wih_b, whh_b, b_b, wfc, bfc),
    }


if __name__ == "__main__":
    n_channel, n_output = 4, 10
    # H=320, W=8: after three conv(5x3,pad=1)+pool(5,2) stages the width
    # collapses to 1 and the height becomes the sequence length (T=2).
    B, H, W = 2, 320, 8

    key = jax.random.PRNGKey(0)
    kx, kp = jax.random.split(key)
    x = jax.random.normal(kx, (B, H, W), jnp.float32)
    params = init_params(kp, n_channel, n_output)
    prepped = prepare_params(params, (H, W), n_output)

    fwd = jax.jit(functools.partial(cnn_lstm_linear_forward, prepped=prepped))
    out = fwd(x)
    jax.block_until_ready(out)

    assert out.shape == (B, n_output), out.shape
    assert bool(jnp.all(jnp.isfinite(out)))
    prob_sum = jnp.sum(jnp.exp(out), axis=1)          # log_softmax rows normalize
    assert bool(jnp.all(jnp.abs(prob_sum - 1.0) < 1e-3)), prob_sum
    print("KERNEL_OK")
</pallas_src>

<mosaic_0001>
module attributes {stable_mosaic.version = 11 : i64} {
  func.func @_fused_kernel(%arg0: i32, %arg1: memref<1x320x8xf32, #tpu.memory_space<vmem>>, %arg2: memref<567x320xbf16, #tpu.memory_space<vmem>>, %arg3: memref<72x160xbf16, #tpu.memory_space<vmem>>, %arg4: memref<2x160xf32, #tpu.memory_space<vmem>>, %arg5: memref<108x63xbf16, #tpu.memory_space<vmem>>, %arg6: memref<144x160xbf16, #tpu.memory_space<vmem>>, %arg7: memref<2x160xf32, #tpu.memory_space<vmem>>, %arg8: memref<18x12xbf16, #tpu.memory_space<vmem>>, %arg9: memref<144x160xbf16, #tpu.memory_space<vmem>>, %arg10: memref<2x160xf32, #tpu.memory_space<vmem>>, %arg11: memref<16x1024xbf16, #tpu.memory_space<vmem>>, %arg12: memref<256x1024xbf16, #tpu.memory_space<vmem>>, %arg13: memref<1x1024xf32, #tpu.memory_space<vmem>>, %arg14: memref<16x1024xbf16, #tpu.memory_space<vmem>>, %arg15: memref<1x1024xf32, #tpu.memory_space<vmem>>, %arg16: memref<512x128xbf16, #tpu.memory_space<vmem>>, %arg17: memref<1x128xf32, #tpu.memory_space<vmem>>, %arg18: memref<1x1x128xf32, #tpu.memory_space<vmem>>, %arg19: memref<2x1024xf32, #tpu.memory_space<vmem>>) attributes {dimension_semantics = [#tpu.dimension_semantics<parallel>], iteration_bounds = array<i64: 2>, scalar_prefetch = 0 : i64, scratch_operands = 1 : i64, tpu.core_type = #tpu.core_type<tc>, window_params = [{transform_indices = @transform_0, window_bounds = array<i64: 1, 320, 8>}, {pipeline_mode = #tpu.pipeline_mode<synchronous>, transform_indices = @transform_1, window_bounds = array<i64: 567, 320>}, {pipeline_mode = #tpu.pipeline_mode<synchronous>, transform_indices = @transform_2, window_bounds = array<i64: 72, 160>}, {pipeline_mode = #tpu.pipeline_mode<synchronous>, transform_indices = @transform_3, window_bounds = array<i64: 2, 160>}, {pipeline_mode = #tpu.pipeline_mode<synchronous>, transform_indices = @transform_4, window_bounds = array<i64: 108, 63>}, {pipeline_mode = #tpu.pipeline_mode<synchronous>, transform_indices = @transform_5, window_bounds = array<i64: 144, 160>}, {pipeline_mode = #tpu.pipeline_mode<synchronous>, transform_indices = @transform_6, window_bounds = array<i64: 2, 160>}, {pipeline_mode = #tpu.pipeline_mode<synchronous>, transform_indices = @transform_7, window_bounds = array<i64: 18, 12>}, {pipeline_mode = #tpu.pipeline_mode<synchronous>, transform_indices = @transform_8, window_bounds = array<i64: 144, 160>}, {pipeline_mode = #tpu.pipeline_mode<synchronous>, transform_indices = @transform_9, window_bounds = array<i64: 2, 160>}, {pipeline_mode = #tpu.pipeline_mode<synchronous>, transform_indices = @transform_10, window_bounds = array<i64: 16, 1024>}, {pipeline_mode = #tpu.pipeline_mode<synchronous>, transform_indices = @transform_11, window_bounds = array<i64: 256, 1024>}, {pipeline_mode = #tpu.pipeline_mode<synchronous>, transform_indices = @transform_12, window_bounds = array<i64: 1, 1024>}, {pipeline_mode = #tpu.pipeline_mode<synchronous>, transform_indices = @transform_13, window_bounds = array<i64: 16, 1024>}, {pipeline_mode = #tpu.pipeline_mode<synchronous>, transform_indices = @transform_14, window_bounds = array<i64: 1, 1024>}, {pipeline_mode = #tpu.pipeline_mode<synchronous>, transform_indices = @transform_15, window_bounds = array<i64: 512, 128>}, {pipeline_mode = #tpu.pipeline_mode<synchronous>, transform_indices = @transform_16, window_bounds = array<i64: 1, 128>}, {transform_indices = @transform_17, window_bounds = array<i64: 1, 1, 128>}]} {
    %c0 = arith.constant 0 : index
    %c0_0 = arith.constant 0 : index
    %c0_1 = arith.constant 0 : index
    %0 = vector.load %arg1[%c0, %c0_0, %c0_1] : memref<1x320x8xf32, #tpu.memory_space<vmem>>, vector<1x320x8xf32>
    %1 = vector.shape_cast %0 : vector<1x320x8xf32> to vector<320x8xf32>
    %2 = arith.truncf %1 : vector<320x8xf32> to vector<320x8xbf16>
    %c0_2 = arith.constant 0 : index
    %c0_3 = arith.constant 0 : index
    %3 = vector.load %arg2[%c0_2, %c0_3] : memref<567x320xbf16, #tpu.memory_space<vmem>>, vector<567x320xbf16>
    %cst = arith.constant dense<0.000000e+00> : vector<567x8xf32>
    %4 = tpu.matmul %3, %2, %cst {dimension_numbers = #tpu.dot_dimension_numbers<[1], [0], [0], [1], [0, 0, 1, 1], [], []>} : vector<567x320xbf16>, vector<320x8xbf16>, vector<567x8xf32> -> vector<567x8xf32>
    %5 = vector.extract_strided_slice %4 {offsets = [0, 0], sizes = [63, 8], strides = [1, 1]} : vector<567x8xf32> to vector<63x8xf32>
    %6 = vector.extract_strided_slice %4 {offsets = [63, 0], sizes = [63, 8], strides = [1, 1]} : vector<567x8xf32> to vector<63x8xf32>
    %7 = vector.extract_strided_slice %4 {offsets = [126, 0], sizes = [63, 8], strides = [1, 1]} : vector<567x8xf32> to vector<63x8xf32>
    %8 = vector.extract_strided_slice %4 {offsets = [189, 0], sizes = [63, 8], strides = [1, 1]} : vector<567x8xf32> to vector<63x8xf32>
    %9 = vector.extract_strided_slice %4 {offsets = [252, 0], sizes = [63, 8], strides = [1, 1]} : vector<567x8xf32> to vector<63x8xf32>
    %10 = vector.extract_strided_slice %4 {offsets = [315, 0], sizes = [63, 8], strides = [1, 1]} : vector<567x8xf32> to vector<63x8xf32>
    %11 = vector.extract_strided_slice %4 {offsets = [378, 0], sizes = [63, 8], strides = [1, 1]} : vector<567x8xf32> to vector<63x8xf32>
    %12 = vector.extract_strided_slice %4 {offsets = [441, 0], sizes = [63, 8], strides = [1, 1]} : vector<567x8xf32> to vector<63x8xf32>
    %13 = vector.extract_strided_slice %4 {offsets = [504, 0], sizes = [63, 8], strides = [1, 1]} : vector<567x8xf32> to vector<63x8xf32>
    %14 = tpu.concatenate %5, %6, %7, %8, %9, %10, %11, %12, %13 in 1 : vector<63x8xf32>, vector<63x8xf32>, vector<63x8xf32>, vector<63x8xf32>, vector<63x8xf32>, vector<63x8xf32>, vector<63x8xf32>, vector<63x8xf32>, vector<63x8xf32> -> vector<63x72xf32>
    %15 = arith.truncf %14 : vector<63x72xf32> to vector<63x72xbf16>
    %c0_4 = arith.constant 0 : index
    %c0_5 = arith.constant 0 : index
    %16 = vector.load %arg3[%c0_4, %c0_5] : memref<72x160xbf16, #tpu.memory_space<vmem>>, vector<72x160xbf16>
    %cst_6 = arith.constant dense<0.000000e+00> : vector<63x160xf32>
    %17 = tpu.matmul %15, %16, %cst_6 {dimension_numbers = #tpu.dot_dimension_numbers<[1], [0], [0], [1], [0, 0, 1, 1], [], []>} : vector<63x72xbf16>, vector<72x160xbf16>, vector<63x160xf32> -> vector<63x160xf32>
    %c0_7 = arith.constant 0 : index
    %c0_8 = arith.constant 0 : index
    %18 = vector.load %arg4[%c0_7, %c0_8] : memref<2x160xf32, #tpu.memory_space<vmem>>, vector<1x160xf32>
    %19 = vector.broadcast %18 : vector<1x160xf32> to vector<63x160xf32>
    %20 = arith.mulf %17, %19 : vector<63x160xf32>
    %c1 = arith.constant 1 : index
    %c0_9 = arith.constant 0 : index
    %21 = vector.load %arg4[%c1, %c0_9] : memref<2x160xf32, #tpu.memory_space<vmem>>, vector<1x160xf32>
    %22 = vector.broadcast %21 : vector<1x160xf32> to vector<63x160xf32>
    %23 = arith.addf %20, %22 : vector<63x160xf32>
    %cst_10 = arith.constant 0.000000e+00 : f32
    %24 = vector.broadcast %cst_10 : f32 to vector<63x160xf32>
    %25 = arith.maximumf %23, %24 : vector<63x160xf32>
    %26 = vector.extract_strided_slice %25 {offsets = [0, 0], sizes = [63, 16], strides = [1, 1]} : vector<63x160xf32> to vector<63x16xf32>
    %27 = vector.extract_strided_slice %25 {offsets = [0, 16], sizes = [63, 16], strides = [1, 1]} : vector<63x160xf32> to vector<63x16xf32>
    %28 = arith.maximumf %26, %27 : vector<63x16xf32>
    %29 = vector.extract_strided_slice %25 {offsets = [0, 32], sizes = [63, 16], strides = [1, 1]} : vector<63x160xf32> to vector<63x16xf32>
    %30 = arith.maximumf %28, %29 : vector<63x16xf32>
    %31 = vector.extract_strided_slice %25 {offsets = [0, 48], sizes = [63, 16], strides = [1, 1]} : vector<63x160xf32> to vector<63x16xf32>
    %32 = arith.maximumf %30, %31 : vector<63x16xf32>
    %33 = vector.extract_strided_slice %25 {offsets = [0, 64], sizes = [63, 16], strides = [1, 1]} : vector<63x160xf32> to vector<63x16xf32>
    %34 = arith.maximumf %32, %33 : vector<63x16xf32>
    %35 = vector.extract_strided_slice %25 {offsets = [0, 80], sizes = [63, 16], strides = [1, 1]} : vector<63x160xf32> to vector<63x16xf32>
    %36 = arith.maximumf %34, %35 : vector<63x16xf32>
    %37 = vector.extract_strided_slice %25 {offsets = [0, 96], sizes = [63, 16], strides = [1, 1]} : vector<63x160xf32> to vector<63x16xf32>
    %38 = arith.maximumf %36, %37 : vector<63x16xf32>
    %39 = vector.extract_strided_slice %25 {offsets = [0, 112], sizes = [63, 16], strides = [1, 1]} : vector<63x160xf32> to vector<63x16xf32>
    %40 = arith.maximumf %38, %39 : vector<63x16xf32>
    %41 = vector.extract_strided_slice %25 {offsets = [0, 128], sizes = [63, 16], strides = [1, 1]} : vector<63x160xf32> to vector<63x16xf32>
    %42 = arith.maximumf %40, %41 : vector<63x16xf32>
    %43 = vector.extract_strided_slice %25 {offsets = [0, 144], sizes = [63, 16], strides = [1, 1]} : vector<63x160xf32> to vector<63x16xf32>
    %44 = arith.maximumf %42, %43 : vector<63x16xf32>
    %45 = arith.truncf %44 : vector<63x16xf32> to vector<63x16xbf16>
    %c0_11 = arith.constant 0 : index
    %c0_12 = arith.constant 0 : index
    %46 = vector.load %arg5[%c0_11, %c0_12] : memref<108x63xbf16, #tpu.memory_space<vmem>>, vector<108x63xbf16>
    %cst_13 = arith.constant dense<0.000000e+00> : vector<108x16xf32>
    %47 = tpu.matmul %46, %45, %cst_13 {dimension_numbers = #tpu.dot_dimension_numbers<[1], [0], [0], [1], [0, 0, 1, 1], [], []>} : vector<108x63xbf16>, vector<63x16xbf16>, vector<108x16xf32> -> vector<108x16xf32>
    %48 = vector.extract_strided_slice %47 {offsets = [0, 0], sizes = [12, 16], strides = [1, 1]} : vector<108x16xf32> to vector<12x16xf32>
    %49 = vector.extract_strided_slice %47 {offsets = [12, 0], sizes = [12, 16], strides = [1, 1]} : vector<108x16xf32> to vector<12x16xf32>
    %50 = vector.extract_strided_slice %47 {offsets = [24, 0], sizes = [12, 16], strides = [1, 1]} : vector<108x16xf32> to vector<12x16xf32>
    %51 = vector.extract_strided_slice %47 {offsets = [36, 0], sizes = [12, 16], strides = [1, 1]} : vector<108x16xf32> to vector<12x16xf32>
    %52 = vector.extract_strided_slice %47 {offsets = [48, 0], sizes = [12, 16], strides = [1, 1]} : vector<108x16xf32> to vector<12x16xf32>
    %53 = vector.extract_strided_slice %47 {offsets = [60, 0], sizes = [12, 16], strides = [1, 1]} : vector<108x16xf32> to vector<12x16xf32>
    %54 = vector.extract_strided_slice %47 {offsets = [72, 0], sizes = [12, 16], strides = [1, 1]} : vector<108x16xf32> to vector<12x16xf32>
    %55 = vector.extract_strided_slice %47 {offsets = [84, 0], sizes = [12, 16], strides = [1, 1]} : vector<108x16xf32> to vector<12x16xf32>
    %56 = vector.extract_strided_slice %47 {offsets = [96, 0], sizes = [12, 16], strides = [1, 1]} : vector<108x16xf32> to vector<12x16xf32>
    %57 = tpu.concatenate %48, %49, %50, %51, %52, %53, %54, %55, %56 in 1 : vector<12x16xf32>, vector<12x16xf32>, vector<12x16xf32>, vector<12x16xf32>, vector<12x16xf32>, vector<12x16xf32>, vector<12x16xf32>, vector<12x16xf32>, vector<12x16xf32> -> vector<12x144xf32>
    %58 = arith.truncf %57 : vector<12x144xf32> to vector<12x144xbf16>
    %c0_14 = arith.constant 0 : index
    %c0_15 = arith.constant 0 : index
    %59 = vector.load %arg6[%c0_14, %c0_15] : memref<144x160xbf16, #tpu.memory_space<vmem>>, vector<144x160xbf16>
    %cst_16 = arith.constant dense<0.000000e+00> : vector<12x160xf32>
    %60 = tpu.matmul %58, %59, %cst_16 {dimension_numbers = #tpu.dot_dimension_numbers<[1], [0], [0], [1], [0, 0, 1, 1], [], []>} : vector<12x144xbf16>, vector<144x160xbf16>, vector<12x160xf32> -> vector<12x160xf32>
    %c0_17 = arith.constant 0 : index
    %c0_18 = arith.constant 0 : index
    %61 = vector.load %arg7[%c0_17, %c0_18] : memref<2x160xf32, #tpu.memory_space<vmem>>, vector<1x160xf32>
    %62 = vector.broadcast %61 : vector<1x160xf32> to vector<12x160xf32>
    %63 = arith.mulf %60, %62 : vector<12x160xf32>
    %c1_19 = arith.constant 1 : index
    %c0_20 = arith.constant 0 : index
    %64 = vector.load %arg7[%c1_19, %c0_20] : memref<2x160xf32, #tpu.memory_space<vmem>>, vector<1x160xf32>
    %65 = vector.broadcast %64 : vector<1x160xf32> to vector<12x160xf32>
    %66 = arith.addf %63, %65 : vector<12x160xf32>
    %cst_21 = arith.constant 0.000000e+00 : f32
    %67 = vector.broadcast %cst_21 : f32 to vector<12x160xf32>
    %68 = arith.maximumf %66, %67 : vector<12x160xf32>
    %69 = vector.extract_strided_slice %68 {offsets = [0, 0], sizes = [12, 16], strides = [1, 1]} : vector<12x160xf32> to vector<12x16xf32>
    %70 = vector.extract_strided_slice %68 {offsets = [0, 16], sizes = [12, 16], strides = [1, 1]} : vector<12x160xf32> to vector<12x16xf32>
    %71 = arith.maximumf %69, %70 : vector<12x16xf32>
    %72 = vector.extract_strided_slice %68 {offsets = [0, 32], sizes = [12, 16], strides = [1, 1]} : vector<12x160xf32> to vector<12x16xf32>
    %73 = arith.maximumf %71, %72 : vector<12x16xf32>
    %74 = vector.extract_strided_slice %68 {offsets = [0, 48], sizes = [12, 16], strides = [1, 1]} : vector<12x160xf32> to vector<12x16xf32>
    %75 = arith.maximumf %73, %74 : vector<12x16xf32>
    %76 = vector.extract_strided_slice %68 {offsets = [0, 64], sizes = [12, 16], strides = [1, 1]} : vector<12x160xf32> to vector<12x16xf32>
    %77 = arith.maximumf %75, %76 : vector<12x16xf32>
    %78 = vector.extract_strided_slice %68 {offsets = [0, 80], sizes = [12, 16], strides = [1, 1]} : vector<12x160xf32> to vector<12x16xf32>
    %79 = arith.maximumf %77, %78 : vector<12x16xf32>
    %80 = vector.extract_strided_slice %68 {offsets = [0, 96], sizes = [12, 16], strides = [1, 1]} : vector<12x160xf32> to vector<12x16xf32>
    %81 = arith.maximumf %79, %80 : vector<12x16xf32>
    %82 = vector.extract_strided_slice %68 {offsets = [0, 112], sizes = [12, 16], strides = [1, 1]} : vector<12x160xf32> to vector<12x16xf32>
    %83 = arith.maximumf %81, %82 : vector<12x16xf32>
    %84 = vector.extract_strided_slice %68 {offsets = [0, 128], sizes = [12, 16], strides = [1, 1]} : vector<12x160xf32> to vector<12x16xf32>
    %85 = arith.maximumf %83, %84 : vector<12x16xf32>
    %86 = vector.extract_strided_slice %68 {offsets = [0, 144], sizes = [12, 16], strides = [1, 1]} : vector<12x160xf32> to vector<12x16xf32>
    %87 = arith.maximumf %85, %86 : vector<12x16xf32>
    %88 = arith.truncf %87 : vector<12x16xf32> to vector<12x16xbf16>
    %c0_22 = arith.constant 0 : index
    %c0_23 = arith.constant 0 : index
    %89 = vector.load %arg8[%c0_22, %c0_23] : memref<18x12xbf16, #tpu.memory_space<vmem>>, vector<18x12xbf16>
    %cst_24 = arith.constant dense<0.000000e+00> : vector<18x16xf32>
    %90 = tpu.matmul %89, %88, %cst_24 {dimension_numbers = #tpu.dot_dimension_numbers<[1], [0], [0], [1], [0, 0, 1, 1], [], []>} : vector<18x12xbf16>, vector<12x16xbf16>, vector<18x16xf32> -> vector<18x16xf32>
    %91 = vector.extract_strided_slice %90 {offsets = [0, 0], sizes = [2, 16], strides = [1, 1]} : vector<18x16xf32> to vector<2x16xf32>
    %92 = vector.extract_strided_slice %90 {offsets = [2, 0], sizes = [2, 16], strides = [1, 1]} : vector<18x16xf32> to vector<2x16xf32>
    %93 = vector.extract_strided_slice %90 {offsets = [4, 0], sizes = [2, 16], strides = [1, 1]} : vector<18x16xf32> to vector<2x16xf32>
    %94 = vector.extract_strided_slice %90 {offsets = [6, 0], sizes = [2, 16], strides = [1, 1]} : vector<18x16xf32> to vector<2x16xf32>
    %95 = vector.extract_strided_slice %90 {offsets = [8, 0], sizes = [2, 16], strides = [1, 1]} : vector<18x16xf32> to vector<2x16xf32>
    %96 = vector.extract_strided_slice %90 {offsets = [10, 0], sizes = [2, 16], strides = [1, 1]} : vector<18x16xf32> to vector<2x16xf32>
    %97 = vector.extract_strided_slice %90 {offsets = [12, 0], sizes = [2, 16], strides = [1, 1]} : vector<18x16xf32> to vector<2x16xf32>
    %98 = vector.extract_strided_slice %90 {offsets = [14, 0], sizes = [2, 16], strides = [1, 1]} : vector<18x16xf32> to vector<2x16xf32>
    %99 = vector.extract_strided_slice %90 {offsets = [16, 0], sizes = [2, 16], strides = [1, 1]} : vector<18x16xf32> to vector<2x16xf32>
    %100 = tpu.concatenate %91, %92, %93, %94, %95, %96, %97, %98, %99 in 1 : vector<2x16xf32>, vector<2x16xf32>, vector<2x16xf32>, vector<2x16xf32>, vector<2x16xf32>, vector<2x16xf32>, vector<2x16xf32>, vector<2x16xf32>, vector<2x16xf32> -> vector<2x144xf32>
    %101 = arith.truncf %100 : vector<2x144xf32> to vector<2x144xbf16>
    %c0_25 = arith.constant 0 : index
    %c0_26 = arith.constant 0 : index
    %102 = vector.load %arg9[%c0_25, %c0_26] : memref<144x160xbf16, #tpu.memory_space<vmem>>, vector<144x160xbf16>
    %cst_27 = arith.constant dense<0.000000e+00> : vector<2x160xf32>
    %103 = tpu.matmul %101, %102, %cst_27 {dimension_numbers = #tpu.dot_dimension_numbers<[1], [0], [0], [1], [0, 0, 1, 1], [], []>} : vector<2x144xbf16>, vector<144x160xbf16>, vector<2x160xf32> -> vector<2x160xf32>
    %c0_28 = arith.constant 0 : index
    %c0_29 = arith.constant 0 : index
    %104 = vector.load %arg10[%c0_28, %c0_29] : memref<2x160xf32, #tpu.memory_space<vmem>>, vector<1x160xf32>
    %105 = vector.broadcast %104 : vector<1x160xf32> to vector<2x160xf32>
    %106 = arith.mulf %103, %105 : vector<2x160xf32>
    %c1_30 = arith.constant 1 : index
    %c0_31 = arith.constant 0 : index
    %107 = vector.load %arg10[%c1_30, %c0_31] : memref<2x160xf32, #tpu.memory_space<vmem>>, vector<1x160xf32>
    %108 = vector.broadcast %107 : vector<1x160xf32> to vector<2x160xf32>
    %109 = arith.addf %106, %108 : vector<2x160xf32>
    %cst_32 = arith.constant 0.000000e+00 : f32
    %110 = vector.broadcast %cst_32 : f32 to vector<2x160xf32>
    %111 = arith.maximumf %109, %110 : vector<2x160xf32>
    %112 = vector.extract_strided_slice %111 {offsets = [0, 0], sizes = [2, 16], strides = [1, 1]} : vector<2x160xf32> to vector<2x16xf32>
    %113 = vector.extract_strided_slice %111 {offsets = [0, 16], sizes = [2, 16], strides = [1, 1]} : vector<2x160xf32> to vector<2x16xf32>
    %114 = arith.maximumf %112, %113 : vector<2x16xf32>
    %115 = vector.extract_strided_slice %111 {offsets = [0, 32], sizes = [2, 16], strides = [1, 1]} : vector<2x160xf32> to vector<2x16xf32>
    %116 = arith.maximumf %114, %115 : vector<2x16xf32>
    %117 = vector.extract_strided_slice %111 {offsets = [0, 48], sizes = [2, 16], strides = [1, 1]} : vector<2x160xf32> to vector<2x16xf32>
    %118 = arith.maximumf %116, %117 : vector<2x16xf32>
    %119 = vector.extract_strided_slice %111 {offsets = [0, 64], sizes = [2, 16], strides = [1, 1]} : vector<2x160xf32> to vector<2x16xf32>
    %120 = arith.maximumf %118, %119 : vector<2x16xf32>
    %121 = vector.extract_strided_slice %111 {offsets = [0, 80], sizes = [2, 16], strides = [1, 1]} : vector<2x160xf32> to vector<2x16xf32>
    %122 = arith.maximumf %120, %121 : vector<2x16xf32>
    %123 = vector.extract_strided_slice %111 {offsets = [0, 96], sizes = [2, 16], strides = [1, 1]} : vector<2x160xf32> to vector<2x16xf32>
    %124 = arith.maximumf %122, %123 : vector<2x16xf32>
    %125 = vector.extract_strided_slice %111 {offsets = [0, 112], sizes = [2, 16], strides = [1, 1]} : vector<2x160xf32> to vector<2x16xf32>
    %126 = arith.maximumf %124, %125 : vector<2x16xf32>
    %127 = vector.extract_strided_slice %111 {offsets = [0, 128], sizes = [2, 16], strides = [1, 1]} : vector<2x160xf32> to vector<2x16xf32>
    %128 = arith.maximumf %126, %127 : vector<2x16xf32>
    %129 = vector.extract_strided_slice %111 {offsets = [0, 144], sizes = [2, 16], strides = [1, 1]} : vector<2x160xf32> to vector<2x16xf32>
    %130 = arith.maximumf %128, %129 : vector<2x16xf32>
    %131 = arith.truncf %130 : vector<2x16xf32> to vector<2x16xbf16>
    %c0_33 = arith.constant 0 : index
    %c0_34 = arith.constant 0 : index
    %132 = vector.load %arg11[%c0_33, %c0_34] : memref<16x1024xbf16, #tpu.memory_space<vmem>>, vector<16x1024xbf16>
    %cst_35 = arith.constant dense<0.000000e+00> : vector<2x1024xf32>
    %133 = tpu.matmul %131, %132, %cst_35 {dimension_numbers = #tpu.dot_dimension_numbers<[1], [0], [0], [1], [0, 0, 1, 1], [], []>} : vector<2x16xbf16>, vector<16x1024xbf16>, vector<2x1024xf32> -> vector<2x1024xf32>
    %c0_36 = arith.constant 0 : index
    %c0_37 = arith.constant 0 : index
    %134 = vector.load %arg13[%c0_36, %c0_37] : memref<1x1024xf32, #tpu.memory_space<vmem>>, vector<1x1024xf32>
    %135 = vector.broadcast %134 : vector<1x1024xf32> to vector<2x1024xf32>
    %136 = arith.addf %133, %135 : vector<2x1024xf32>
    %c0_38 = arith.constant 0 : index
    %c0_39 = arith.constant 0 : index
    %137 = vector.load %arg19[%c0_38, %c0_39] : memref<2x1024xf32, #tpu.memory_space<vmem>>, vector<2x1024xf32>
    tpu.vector_store %arg19[%c0_38, %c0_39], %136 {strides = array<i32>} : memref<2x1024xf32, #tpu.memory_space<vmem>>, vector<2x1024xf32>,
    %cst_40 = arith.constant 0.000000e+00 : f32
    %138 = vector.broadcast %cst_40 : f32 to vector<1x256xf32>
    %c0_i32 = arith.constant 0 : i32
    %139 = arith.index_cast %c0_i32 : i32 to index
    %c0_41 = arith.constant 0 : index
    %140 = vector.load %arg19[%139, %c0_41] : memref<2x1024xf32, #tpu.memory_space<vmem>>, vector<1x1024xf32>
    %141 = arith.truncf %138 : vector<1x256xf32> to vector<1x256xbf16>
    %c0_42 = arith.constant 0 : index
    %c0_43 = arith.constant 0 : index
    %142 = vector.load %arg12[%c0_42, %c0_43] : memref<256x1024xbf16, #tpu.memory_space<vmem>>, vector<256x1024xbf16>
    %cst_44 = arith.constant dense<0.000000e+00> : vector<1x1024xf32>
    %143 = tpu.matmul %141, %142, %cst_44 {dimension_numbers = #tpu.dot_dimension_numbers<[1], [0], [0], [1], [0, 0, 1, 1], [], []>} : vector<1x256xbf16>, vector<256x1024xbf16>, vector<1x1024xf32> -> vector<1x1024xf32>
    %144 = arith.addf %140, %143 : vector<1x1024xf32>
    %145 = vector.extract_strided_slice %144 {offsets = [0, 0], sizes = [1, 256], strides = [1, 1]} : vector<1x1024xf32> to vector<1x256xf32>
    %cst_45 = arith.constant 5.000000e-01 : f32
    %146 = vector.broadcast %cst_45 : f32 to vector<1x256xf32>
    %147 = arith.mulf %146, %145 : vector<1x256xf32>
    %148 = math.tanh %147 : vector<1x256xf32>
    %cst_46 = arith.constant 1.000000e+00 : f32
    %149 = vector.broadcast %cst_46 : f32 to vector<1x256xf32>
    %150 = arith.addf %148, %149 : vector<1x256xf32>
    %cst_47 = arith.constant 5.000000e-01 : f32
    %151 = vector.broadcast %cst_47 : f32 to vector<1x256xf32>
    %152 = arith.mulf %151, %150 : vector<1x256xf32>
    %153 = vector.extract_strided_slice %144 {offsets = [0, 256], sizes = [1, 256], strides = [1, 1]} : vector<1x1024xf32> to vector<1x256xf32>
    %cst_48 = arith.constant 5.000000e-01 : f32
    %154 = vector.broadcast %cst_48 : f32 to vector<1x256xf32>
    %155 = arith.mulf %154, %153 : vector<1x256xf32>
    %156 = math.tanh %155 : vector<1x256xf32>
    %cst_49 = arith.constant 1.000000e+00 : f32
    %157 = vector.broadcast %cst_49 : f32 to vector<1x256xf32>
    %158 = arith.addf %156, %157 : vector<1x256xf32>
    %cst_50 = arith.constant 5.000000e-01 : f32
    %159 = vector.broadcast %cst_50 : f32 to vector<1x256xf32>
    %160 = arith.mulf %159, %158 : vector<1x256xf32>
    %161 = vector.extract_strided_slice %144 {offsets = [0, 512], sizes = [1, 256], strides = [1, 1]} : vector<1x1024xf32> to vector<1x256xf32>
    %162 = math.tanh %161 : vector<1x256xf32>
    %163 = vector.extract_strided_slice %144 {offsets = [0, 768], sizes = [1, 256], strides = [1, 1]} : vector<1x1024xf32> to vector<1x256xf32>
    %cst_51 = arith.constant 5.000000e-01 : f32
    %164 = vector.broadcast %cst_51 : f32 to vector<1x256xf32>
    %165 = arith.mulf %164, %163 : vector<1x256xf32>
    %166 = math.tanh %165 : vector<1x256xf32>
    %cst_52 = arith.constant 1.000000e+00 : f32
    %167 = vector.broadcast %cst_52 : f32 to vector<1x256xf32>
    %168 = arith.addf %166, %167 : vector<1x256xf32>
    %cst_53 = arith.constant 5.000000e-01 : f32
    %169 = vector.broadcast %cst_53 : f32 to vector<1x256xf32>
    %170 = arith.mulf %169, %168 : vector<1x256xf32>
    %171 = arith.mulf %160, %138 : vector<1x256xf32>
    %172 = arith.mulf %152, %162 : vector<1x256xf32>
    %173 = arith.addf %171, %172 : vector<1x256xf32>
    %174 = math.tanh %173 : vector<1x256xf32>
    %175 = arith.mulf %170, %174 : vector<1x256xf32>
    %c1_i32 = arith.constant 1 : i32
    %176 = arith.index_cast %c1_i32 : i32 to index
    %c0_54 = arith.constant 0 : index
    %177 = vector.load %arg19[%176, %c0_54] : memref<2x1024xf32, #tpu.memory_space<vmem>>, vector<1x1024xf32>
    %178 = arith.truncf %175 : vector<1x256xf32> to vector<1x256xbf16>
    %c0_55 = arith.constant 0 : index
    %c0_56 = arith.constant 0 : index
    %179 = vector.load %arg12[%c0_55, %c0_56] : memref<256x1024xbf16, #tpu.memory_space<vmem>>, vector<256x1024xbf16>
    %cst_57 = arith.constant dense<0.000000e+00> : vector<1x1024xf32>
    %180 = tpu.matmul %178, %179, %cst_57 {dimension_numbers = #tpu.dot_dimension_numbers<[1], [0], [0], [1], [0, 0, 1, 1], [], []>} : vector<1x256xbf16>, vector<256x1024xbf16>, vector<1x1024xf32> -> vector<1x1024xf32>
    %181 = arith.addf %177, %180 : vector<1x1024xf32>
    %182 = vector.extract_strided_slice %181 {offsets = [0, 0], sizes = [1, 256], strides = [1, 1]} : vector<1x1024xf32> to vector<1x256xf32>
    %cst_58 = arith.constant 5.000000e-01 : f32
    %183 = vector.broadcast %cst_58 : f32 to vector<1x256xf32>
    %184 = arith.mulf %183, %182 : vector<1x256xf32>
    %185 = math.tanh %184 : vector<1x256xf32>
    %cst_59 = arith.constant 1.000000e+00 : f32
    %186 = vector.broadcast %cst_59 : f32 to vector<1x256xf32>
    %187 = arith.addf %185, %186 : vector<1x256xf32>
    %cst_60 = arith.constant 5.000000e-01 : f32
    %188 = vector.broadcast %cst_60 : f32 to vector<1x256xf32>
    %189 = arith.mulf %188, %187 : vector<1x256xf32>
    %190 = vector.extract_strided_slice %181 {offsets = [0, 256], sizes = [1, 256], strides = [1, 1]} : vector<1x1024xf32> to vector<1x256xf32>
    %cst_61 = arith.constant 5.000000e-01 : f32
    %191 = vector.broadcast %cst_61 : f32 to vector<1x256xf32>
    %192 = arith.mulf %191, %190 : vector<1x256xf32>
    %193 = math.tanh %192 : vector<1x256xf32>
    %cst_62 = arith.constant 1.000000e+00 : f32
    %194 = vector.broadcast %cst_62 : f32 to vector<1x256xf32>
    %195 = arith.addf %193, %194 : vector<1x256xf32>
    %cst_63 = arith.constant 5.000000e-01 : f32
    %196 = vector.broadcast %cst_63 : f32 to vector<1x256xf32>
    %197 = arith.mulf %196, %195 : vector<1x256xf32>
    %198 = vector.extract_strided_slice %181 {offsets = [0, 512], sizes = [1, 256], strides = [1, 1]} : vector<1x1024xf32> to vector<1x256xf32>
    %199 = math.tanh %198 : vector<1x256xf32>
    %200 = vector.extract_strided_slice %181 {offsets = [0, 768], sizes = [1, 256], strides = [1, 1]} : vector<1x1024xf32> to vector<1x256xf32>
    %cst_64 = arith.constant 5.000000e-01 : f32
    %201 = vector.broadcast %cst_64 : f32 to vector<1x256xf32>
    %202 = arith.mulf %201, %200 : vector<1x256xf32>
    %203 = math.tanh %202 : vector<1x256xf32>
    %cst_65 = arith.constant 1.000000e+00 : f32
    %204 = vector.broadcast %cst_65 : f32 to vector<1x256xf32>
    %205 = arith.addf %203, %204 : vector<1x256xf32>
    %cst_66 = arith.constant 5.000000e-01 : f32
    %206 = vector.broadcast %cst_66 : f32 to vector<1x256xf32>
    %207 = arith.mulf %206, %205 : vector<1x256xf32>
    %208 = arith.mulf %197, %173 : vector<1x256xf32>
    %209 = arith.mulf %189, %199 : vector<1x256xf32>
    %210 = arith.addf %208, %209 : vector<1x256xf32>
    %211 = math.tanh %210 : vector<1x256xf32>
    %212 = arith.mulf %207, %211 : vector<1x256xf32>
    %c2_i32 = arith.constant 2 : i32
    %213 = vector.extract_strided_slice %131 {offsets = [1, 0], sizes = [1, 16], strides = [1, 1]} : vector<2x16xbf16> to vector<1x16xbf16>
    %c0_67 = arith.constant 0 : index
    %c0_68 = arith.constant 0 : index
    %214 = vector.load %arg14[%c0_67, %c0_68] : memref<16x1024xbf16, #tpu.memory_space<vmem>>, vector<16x1024xbf16>
    %cst_69 = arith.constant dense<0.000000e+00> : vector<1x1024xf32>
    %215 = tpu.matmul %213, %214, %cst_69 {dimension_numbers = #tpu.dot_dimension_numbers<[1], [0], [0], [1], [0, 0, 1, 1], [], []>} : vector<1x16xbf16>, vector<16x1024xbf16>, vector<1x1024xf32> -> vector<1x1024xf32>
    %c0_70 = arith.constant 0 : index
    %c0_71 = arith.constant 0 : index
    %216 = vector.load %arg15[%c0_70, %c0_71] : memref<1x1024xf32, #tpu.memory_space<vmem>>, vector<1x1024xf32>
    %217 = arith.addf %215, %216 : vector<1x1024xf32>
    %218 = vector.extract_strided_slice %217 {offsets = [0, 0], sizes = [1, 256], strides = [1, 1]} : vector<1x1024xf32> to vector<1x256xf32>
    %cst_72 = arith.constant 5.000000e-01 : f32
    %219 = vector.broadcast %cst_72 : f32 to vector<1x256xf32>
    %220 = arith.mulf %219, %218 : vector<1x256xf32>
    %221 = math.tanh %220 : vector<1x256xf32>
    %cst_73 = arith.constant 1.000000e+00 : f32
    %222 = vector.broadcast %cst_73 : f32 to vector<1x256xf32>
    %223 = arith.addf %221, %222 : vector<1x256xf32>
    %cst_74 = arith.constant 5.000000e-01 : f32
    %224 = vector.broadcast %cst_74 : f32 to vector<1x256xf32>
    %225 = arith.mulf %224, %223 : vector<1x256xf32>
    %226 = vector.extract_strided_slice %217 {offsets = [0, 256], sizes = [1, 256], strides = [1, 1]} : vector<1x1024xf32> to vector<1x256xf32>
    %cst_75 = arith.constant 5.000000e-01 : f32
    %227 = vector.broadcast %cst_75 : f32 to vector<1x256xf32>
    %228 = arith.mulf %227, %226 : vector<1x256xf32>
    %229 = math.tanh %228 : vector<1x256xf32>
    %cst_76 = arith.constant 1.000000e+00 : f32
    %230 = vector.broadcast %cst_76 : f32 to vector<1x256xf32>
    %231 = arith.addf %229, %230 : vector<1x256xf32>
    %cst_77 = arith.constant 5.000000e-01 : f32
    %232 = vector.broadcast %cst_77 : f32 to vector<1x256xf32>
    %233 = arith.mulf %232, %231 : vector<1x256xf32>
    %234 = vector.extract_strided_slice %217 {offsets = [0, 512], sizes = [1, 256], strides = [1, 1]} : vector<1x1024xf32> to vector<1x256xf32>
    %235 = math.tanh %234 : vector<1x256xf32>
    %236 = vector.extract_strided_slice %217 {offsets = [0, 768], sizes = [1, 256], strides = [1, 1]} : vector<1x1024xf32> to vector<1x256xf32>
    %cst_78 = arith.constant 5.000000e-01 : f32
    %237 = vector.broadcast %cst_78 : f32 to vector<1x256xf32>
    %238 = arith.mulf %237, %236 : vector<1x256xf32>
    %239 = math.tanh %238 : vector<1x256xf32>
    %cst_79 = arith.constant 1.000000e+00 : f32
    %240 = vector.broadcast %cst_79 : f32 to vector<1x256xf32>
    %241 = arith.addf %239, %240 : vector<1x256xf32>
    %cst_80 = arith.constant 5.000000e-01 : f32
    %242 = vector.broadcast %cst_80 : f32 to vector<1x256xf32>
    %243 = arith.mulf %242, %241 : vector<1x256xf32>
    %244 = arith.mulf %233, %138 : vector<1x256xf32>
    %245 = arith.mulf %225, %235 : vector<1x256xf32>
    %246 = arith.addf %244, %245 : vector<1x256xf32>
    %247 = math.tanh %246 : vector<1x256xf32>
    %248 = arith.mulf %243, %247 : vector<1x256xf32>
    %249 = tpu.concatenate %212, %248 in 1 : vector<1x256xf32>, vector<1x256xf32> -> vector<1x512xf32>
    %250 = arith.truncf %249 : vector<1x512xf32> to vector<1x512xbf16>
    %c0_81 = arith.constant 0 : index
    %c0_82 = arith.constant 0 : index
    %251 = vector.load %arg16[%c0_81, %c0_82] : memref<512x128xbf16, #tpu.memory_space<vmem>>, vector<512x128xbf16>
    %cst_83 = arith.constant dense<0.000000e+00> : vector<1x128xf32>
    %252 = tpu.matmul %250, %251, %cst_83 {dimension_numbers = #tpu.dot_dimension_numbers<[1], [0], [0], [1], [0, 0, 1, 1], [], []>} : vector<1x512xbf16>, vector<512x128xbf16>, vector<1x128xf32> -> vector<1x128xf32>
    %c0_84 = arith.constant 0 : index
    %c0_85 = arith.constant 0 : index
    %253 = vector.load %arg17[%c0_84, %c0_85] : memref<1x128xf32, #tpu.memory_space<vmem>>, vector<1x128xf32>
    %254 = arith.addf %252, %253 : vector<1x128xf32>
    %cst_86 = arith.constant dense<0xFF800000> : vector<1xf32>
    %255 = vector.multi_reduction <maximumf>, %254, %cst_86 [1] : vector<1x128xf32> to vector<1xf32>
    %256 = vector.shape_cast %255 : vector<1xf32> to vector<1x1xf32>
    %257 = vector.broadcast %256 : vector<1x1xf32> to vector<1x128xf32>
    %258 = arith.subf %254, %257 : vector<1x128xf32>
    %259 = math.exp %258 : vector<1x128xf32>
    %cst_87 = arith.constant dense<0.000000e+00> : vector<1xf32>
    %260 = vector.multi_reduction <add>, %259, %cst_87 [1] : vector<1x128xf32> to vector<1xf32>
    %261 = vector.shape_cast %260 : vector<1xf32> to vector<1x1xf32>
    %262 = math.log %261 : vector<1x1xf32>
    %263 = arith.addf %256, %262 : vector<1x1xf32>
    %264 = vector.broadcast %263 : vector<1x1xf32> to vector<1x128xf32>
    %265 = arith.subf %254, %264 : vector<1x128xf32>
    %c0_88 = arith.constant 0 : index
    %c0_89 = arith.constant 0 : index
    %c0_90 = arith.constant 0 : index
    %266 = vector.load %arg18[%c0_88, %c0_89, %c0_90] : memref<1x1x128xf32, #tpu.memory_space<vmem>>, vector<1x1x128xf32>
    %267 = vector.shape_cast %266 : vector<1x1x128xf32> to vector<1x128xf32>
    %268 = vector.shape_cast %265 : vector<1x128xf32> to vector<1x1x128xf32>
    tpu.vector_store %arg18[%c0_88, %c0_89, %c0_90], %268 {strides = array<i32>} : memref<1x1x128xf32, #tpu.memory_space<vmem>>, vector<1x1x128xf32>,
    return
  }
  func.func @transform_0(%arg0: i32) -> (i32, i32, i32) {
    %c0_i32 = arith.constant 0 : i32
    %c0_i32_0 = arith.constant 0 : i32
    %c0_i32_1 = arith.constant 0 : i32
    return %arg0, %c0_i32, %c0_i32_0 : i32, i32, i32
  }
  func.func @transform_1(%arg0: i32) -> (i32, i32) {
    %c0_i32 = arith.constant 0 : i32
    %c0_i32_0 = arith.constant 0 : i32
    %c0_i32_1 = arith.constant 0 : i32
    return %c0_i32, %c0_i32_0 : i32, i32
  }
  func.func @transform_2(%arg0: i32) -> (i32, i32) {
    %c0_i32 = arith.constant 0 : i32
    %c0_i32_0 = arith.constant 0 : i32
    %c0_i32_1 = arith.constant 0 : i32
    return %c0_i32, %c0_i32_0 : i32, i32
  }
  func.func @transform_3(%arg0: i32) -> (i32, i32) {
    %c0_i32 = arith.constant 0 : i32
    %c0_i32_0 = arith.constant 0 : i32
    %c0_i32_1 = arith.constant 0 : i32
    return %c0_i32, %c0_i32_0 : i32, i32
  }
  func.func @transform_4(%arg0: i32) -> (i32, i32) {
    %c0_i32 = arith.constant 0 : i32
    %c0_i32_0 = arith.constant 0 : i32
    %c0_i32_1 = arith.constant 0 : i32
    return %c0_i32, %c0_i32_0 : i32, i32
  }
  func.func @transform_5(%arg0: i32) -> (i32, i32) {
    %c0_i32 = arith.constant 0 : i32
    %c0_i32_0 = arith.constant 0 : i32
    %c0_i32_1 = arith.constant 0 : i32
    return %c0_i32, %c0_i32_0 : i32, i32
  }
  func.func @transform_6(%arg0: i32) -> (i32, i32) {
    %c0_i32 = arith.constant 0 : i32
    %c0_i32_0 = arith.constant 0 : i32
    %c0_i32_1 = arith.constant 0 : i32
    return %c0_i32, %c0_i32_0 : i32, i32
  }
  func.func @transform_7(%arg0: i32) -> (i32, i32) {
    %c0_i32 = arith.constant 0 : i32
    %c0_i32_0 = arith.constant 0 : i32
    %c0_i32_1 = arith.constant 0 : i32
    return %c0_i32, %c0_i32_0 : i32, i32
  }
  func.func @transform_8(%arg0: i32) -> (i32, i32) {
    %c0_i32 = arith.constant 0 : i32
    %c0_i32_0 = arith.constant 0 : i32
    %c0_i32_1 = arith.constant 0 : i32
    return %c0_i32, %c0_i32_0 : i32, i32
  }
  func.func @transform_9(%arg0: i32) -> (i32, i32) {
    %c0_i32 = arith.constant 0 : i32
    %c0_i32_0 = arith.constant 0 : i32
    %c0_i32_1 = arith.constant 0 : i32
    return %c0_i32, %c0_i32_0 : i32, i32
  }
  func.func @transform_10(%arg0: i32) -> (i32, i32) {
    %c0_i32 = arith.constant 0 : i32
    %c0_i32_0 = arith.constant 0 : i32
    %c0_i32_1 = arith.constant 0 : i32
    return %c0_i32, %c0_i32_0 : i32, i32
  }
  func.func @transform_11(%arg0: i32) -> (i32, i32) {
    %c0_i32 = arith.constant 0 : i32
    %c0_i32_0 = arith.constant 0 : i32
    %c0_i32_1 = arith.constant 0 : i32
    return %c0_i32, %c0_i32_0 : i32, i32
  }
  func.func @transform_12(%arg0: i32) -> (i32, i32) {
    %c0_i32 = arith.constant 0 : i32
    %c0_i32_0 = arith.constant 0 : i32
    %c0_i32_1 = arith.constant 0 : i32
    return %c0_i32, %c0_i32_0 : i32, i32
  }
  func.func @transform_13(%arg0: i32) -> (i32, i32) {
    %c0_i32 = arith.constant 0 : i32
    %c0_i32_0 = arith.constant 0 : i32
    %c0_i32_1 = arith.constant 0 : i32
    return %c0_i32, %c0_i32_0 : i32, i32
  }
  func.func @transform_14(%arg0: i32) -> (i32, i32) {
    %c0_i32 = arith.constant 0 : i32
    %c0_i32_0 = arith.constant 0 : i32
    %c0_i32_1 = arith.constant 0 : i32
    return %c0_i32, %c0_i32_0 : i32, i32
  }
  func.func @transform_15(%arg0: i32) -> (i32, i32) {
    %c0_i32 = arith.constant 0 : i32
    %c0_i32_0 = arith.constant 0 : i32
    %c0_i32_1 = arith.constant 0 : i32
    return %c0_i32, %c0_i32_0 : i32, i32
  }
  func.func @transform_16(%arg0: i32) -> (i32, i32) {
    %c0_i32 = arith.constant 0 : i32
    %c0_i32_0 = arith.constant 0 : i32
    %c0_i32_1 = arith.constant 0 : i32
    return %c0_i32, %c0_i32_0 : i32, i32
  }
  func.func @transform_17(%arg0: i32) -> (i32, i32, i32) {
    %c0_i32 = arith.constant 0 : i32
    %c0_i32_0 = arith.constant 0 : i32
    %c0_i32_1 = arith.constant 0 : i32
    return %arg0, %c0_i32, %c0_i32_0 : i32, i32, i32
  }
}

</mosaic_0001>

<bundles_post_ra>
// kernel: cnn_lstm_linear_forward.1
= control target key start
LH: loop header
LB: loop body
LE: loop exit
PB: predicated region body
PF: predicated region fallthrough
CT: control target
= control target key end

     0   :  { %s10368_s0 = inlined_call_operand.vmem [shape: f32[2,320,8], index: 0, kind: input, shape index: {}]   ;;  %s10369_s1 = inlined_call_operand.vmem [shape: bf16[567,320], index: 1, kind: input, shape index: {}]   ;;  %s10370_s2 = inlined_call_operand.vmem [shape: bf16[72,160], index: 2, kind: input, shape index: {}]   ;;  %s10371_s3 = inlined_call_operand.vmem [shape: f32[2,160], index: 3, kind: input, shape index: {}]   ;;  %s10372_s4 = inlined_call_operand.vmem [shape: bf16[108,63], index: 4, kind: input, shape index: {}]   ;;  %s10373_s5 = inlined_call_operand.vmem [shape: bf16[144,160], index: 5, kind: input, shape index: {}]   ;;  %s10374_s6 = inlined_call_operand.vmem [shape: f32[2,160], index: 6, kind: input, shape index: {}]   ;;  %s10375_s7 = inlined_call_operand.vmem [shape: bf16[18,12], index: 7, kind: input, shape index: {}]   ;;  %s10376_s8 = inlined_call_operand.vmem [shape: bf16[144,160], index: 8, kind: input, shape index: {}]   ;;  %s10377_s9 = inlined_call_operand.vmem [shape: f32[2,160], index: 9, kind: input, shape index: {}]   ;;  %s10378_s10 = inlined_call_operand.vmem [shape: bf16[16,1024], index: 10, kind: input, shape index: {}]   ;;  %s10379_s11 = inlined_call_operand.vmem [shape: bf16[256,1024], index: 11, kind: input, shape index: {}]   ;;  %s10380_s12 = inlined_call_operand.vmem [shape: f32[1,1024], index: 12, kind: input, shape index: {}]   ;;  %s10381_s13 = inlined_call_operand.vmem [shape: bf16[16,1024], index: 13, kind: input, shape index: {}]   ;;  %s10382_s14 = inlined_call_operand.vmem [shape: f32[1,1024], index: 14, kind: input, shape index: {}]   ;;  %s10383_s15 = inlined_call_operand.vmem [shape: bf16[512,128], index: 15, kind: input, shape index: {}]   ;;  %s10384_s16 = inlined_call_operand.vmem [shape: f32[1,128], index: 16, kind: input, shape index: {}]   ;;  %s10385_s17 = inlined_call_operand.hbm [shape: f32[2,1,128], index: 17, kind: output, shape index: {}]  }
   0x1   :  { %10451 = sst [smem:[#allocation51_spill]] %s10368_s0 }
   0x2   :  { %10452 = sst [smem:[#allocation52_spill]] %s10369_s1 }
   0x3   :  { %10453 = sst [smem:[#allocation53_spill]] %s10370_s2 }
   0x4   :  { %10454 = sst [smem:[#allocation54_spill]] %s10371_s3 }
   0x5   :  { %10455 = sst [smem:[#allocation55_spill]] %s10372_s4 }
   0x6   :  { %10456 = sst [smem:[#allocation56_spill]] %s10373_s5 }
   0x7   :  { %10457 = sst [smem:[#allocation57_spill]] %s10374_s6 }
   0x8   :  { %10458 = sst [smem:[#allocation58_spill]] %s10375_s7 }
   0x9   :  { %22 = vsyncpa [#allocation4], 0 }
   0xa   :  { %24 = vsyncpa [#allocation4 + $0x1], 0  ;;  %s7692_s24 = smov 0   ;;  %s7694_s25 = smov 0  }
   0xb   :  { %s7696_s26 = smov 0   ;;  %s7698_s27 = smov 0  }
   0xc LB: > { %10459 = sst [smem:[#allocation6_spill]] %s7570_s24  ;;  %s7713_s28 = sadd.s32 4294967295, %s7582_s27   ;;  %s7582_s27 = sphi %s7698_s27, %s10573_s27   ;;  %s7578_s26 = sphi %s7696_s26, %s10575_s26   ;;  %s7574_s25 = sphi %s7694_s25, %s10577_s25   ;;  %s7570_s24 = sphi %s7692_s24, %s10576_s24  }
   0xd   : > { %10460 = sst [smem:[#allocation7_spill]] %s7578_s26  ;;  %s6141_s29 = sadd.s32 4294967294, %s7582_s27  }
   0xe   : > { %s7717_s0 = sadd.s32 1, %s7582_s27   ;;  %s399_s30 = sadd.s32 1, %s7578_s26 }
   0xf   : > { %10461 = sst [smem:[#allocation8_spill]] %s7717_s0  ;;  %s396_s18 = ssub.s32 %s7582_s27, %s7717_s0 }
  0x10   : > { %p409_p0 = scmp.ne.s32.totalorder %s7578_s26, %s7574_s25  ;;  %p397_p1 = scmp.eq.s32.totalorder %s396_s18, 0 }
  0x11   : > { %p410_p2 = scmp.eq.s32.totalorder %s7713_s28, 1  ;;  %p415_p3 = scmp.ne.s32.totalorder %s7574_s25, %s7570_s24 }
  0x12   : > { %p416_p4 = scmp.eq.s32.totalorder %s6141_s29, 1  ;;  %p6144_p7 = scmp.ge.s32.totalorder %s7582_s27, 1 }
  0x13   : > { %s7728_s19 = scalar_select %p397_p1, %s7578_s26, %s399_s30  }
  0x14   : > { %p7730_p5 = por %p410_p2, %p409_p0  ;;  %p7734_p6 = por %p416_p4, %p415_p3 }
  0x15   : > { %10462 = sst [smem:[#allocation9_spill]] %s7728_s19  ;;  %p490_p8 = scmp.lt.s32.totalorder %s7582_s27, 3 }
  0x16   : > { %s10464_s20 = scalar_select %p7734_p6, 1, 0 }
  0x17   : > { %p491_p9 = pnand %p6144_p7, %p490_p8 }
  0x18   : > { %10465 = sst [smem:[#allocation10_spill]] %s10464_s20 }
  0x19   : > { %494 = sbr.rel (%p491_p9) target bundleno = 3849 (0xf09), region = 88 }
  0x20   : > { %p541_p10 = scmp.lt.s32.totalorder %s7713_s28, 1  ;;  %v10392_v0 = vmov 0   ;;  %s10466_s23 = sld [smem:[#allocation52_spill]]  ;;  %vm1284_vm0 = vcmask 523264   ;;  %vm2042_vm1 = vcmask 1040384   ;;  %vm2092_vm2 = vcmask 1041408  }
  0x21   : > { %1393 = vmatprep.subr.bf16.mxu0 %v10392_v0  ;;  %s10467_s20 = sld [smem:[#allocation51_spill]]  ;;  %vm2142_vm3 = vcmask 1042432   ;;  %s7587_s21 = smov 24   ;;  %vm2192_vm4 = vcmask 1043456   ;;  %vm2242_vm5 = vcmask 1044480   ;;  %vm2292_vm6 = vcmask 1045504  }
  0x22   : > { %s542_s29 = scalar_select %p541_p10, %s7713_s28, 1  ;;  %vm2341_vm7 = vcmask 1046528   ;;  %vm2413_vm8 = vcmask 64512   ;;  %vm2422_vm9 = vcmask 130048   ;;  %vm2431_vm10 = vcmask 195584  }
  0x23   : > { %s10470_s2 = sld [smem:[#allocation53_spill]]  ;;  %s10405_s26 = smov 32   ;;  %vm2440_vm11 = vcmask 261120   ;;  %vm2449_vm12 = vcmask 326656   ;;  %vm2458_vm13 = vcmask 392192   ;;  %vm2467_vm14 = vcmask 457728  }
  0x24   : > { %s6772_s19 = smul.u32 320, %s542_s29  ;;  %s7589_s30 = smov 40   ;;  %vm2542_vm15 = vcmask 588800  }
  0x25   : > { %s10403_s22 = smov 48   ;;  %s7591_s0 = smov 56  }
  0x26   : > { %v7224_v1 = vld [vmem:[%s10466_s23 + $0x8] ss:$12 sps:$4 sm:$0xff]   ;;  %v7227_v2 = vld [vmem:[%s10466_s23 + $0x4] ss:$12 sps:$4 sm:$0xff]   ;;  %v7228_v35 = vld [vmem:[%s10466_s23 + $0x20] ss:$12 sps:$4 sm:$0xff]  }
  0x27   : > { %6657 = vmatprep.mubr.msk.bf16.mxu1 %vm1284_vm0, %v7224_v1  ;;  %1425 = vmatprep.mubr.bf16.mxu0 %v7227_v2  ;;  %s7753_s24 = scalar_lea.vmem %s10467_s20, %s6772_s19  ;;  %v7232_v38 = vld [vmem:[%s10466_s23 + $0x38] ss:$12 sps:$4 sm:$0xff]   ;;  %v7235_v46 = vld [vmem:[%s10466_s23 + $0x50] ss:$12 sps:$4 sm:$0xff]   ;;  %v7240_v47 = vld [vmem:[%s10466_s23 + $0x68] ss:$12 sps:$4 sm:$0xff]  }
  0x28   : > { %v547_v3 = vld [vmem:[%s7753_s24] sm:$0xff]  ;;  %v548_v4 = vld [vmem:[%s7753_s24 + $0x8] sm:$0xff]  ;;  %v549_v5 = vld [vmem:[%s7753_s24 + $0x10] sm:$0xff]  ;;  %s7585_s19 = smov 8   ;;  %s10477_s3 = sld [smem:[#allocation54_spill]] }
  0x29   : > { %v587_v6 = vpack.c.bf16 %v548_v4, %v547_v3  ;;  %v550_v7 = vld [vmem:[%s7753_s24 + $0x18] sm:$0xff]  ;;  %v551_v9 = vld [vmem:[%s7753_s24 + $0x20] sm:$0xff]  ;;  %v552_v10 = vld [vmem:[%s7753_s24 + $0x28] sm:$0xff]  ;;  %s10395_s18 = smov 112   ;;  %s10478_s4 = sld [smem:[#allocation55_spill]] }
  0x2a   : > { %v588_v8 = vpack.c.bf16 %v550_v7, %v549_v5  ;;  %v589_v11 = vpack.c.bf16 %v552_v10, %v551_v9  ;;  %v553_v12 = vld [vmem:[%s7753_s24 + $0x30] sm:$0xff]  ;;  %v554_v13 = vld [vmem:[%s7753_s24 + $0x38] sm:$0xff]  ;;  %v579_v14 = vld [vmem:[%s7753_s24 + $0x100] sm:$0xff]  ;;  %s10479_s5 = sld [smem:[#allocation56_spill]]  ;;  %s10481_s20 = smov 32  }
  0x2b   : > { %1394 = vmatpush1.bf16.msra.mxu0 %v587_v6  ;;  %v580_v15 = vld [vmem:[%s7753_s24 + $0x108] sm:$0xff]  ;;  %v581_v17 = vld [vmem:[%s7753_s24 + $0x110] sm:$0xff]  ;;  %v582_v18 = vld [vmem:[%s7753_s24 + $0x118] sm:$0xff]  ;;  %v590_v21 = vpack.c.bf16 %v554_v13, %v553_v12  ;;  %s10487_s6 = sld [smem:[#allocation57_spill]]  ;;  %s10488_s7 = sld [smem:[#allocation58_spill]] }
  0x2c   : > { %1395 = vmatprep.subr.bf16.mxu0 %v10392_v0  ;;  %v603_v16 = vpack.c.bf16 %v580_v15, %v579_v14  ;;  %v604_v19 = vpack.c.bf16 %v582_v18, %v581_v17  ;;  %v583_v20 = vld [vmem:[%s7753_s24 + $0x120] sm:$0xff]  ;;  %v584_v22 = vld [vmem:[%s7753_s24 + $0x128] sm:$0xff]  ;;  %v585_v26 = vld [vmem:[%s7753_s24 + $0x130] sm:$0xff] }
  0x2d   : > { %v555_v23 = vld [vmem:[%s7753_s24 + $0x40] sm:$0xff]  ;;  %v556_v24 = vld [vmem:[%s7753_s24 + $0x48] sm:$0xff]  ;;  %v605_v25 = vpack.c.bf16 %v584_v22, %v583_v20  ;;  %v586_v27 = vld [vmem:[%s7753_s24 + $0x138] sm:$0xff] }
  0x2e   : > { %6649 = vmatprep.subr.bf16.mxu1 %v603_v16  ;;  %v591_v28 = vpack.c.bf16 %v556_v24, %v555_v23  ;;  %v557_v29 = vld [vmem:[%s7753_s24 + $0x50] sm:$0xff]  ;;  %v558_v30 = vld [vmem:[%s7753_s24 + $0x58] sm:$0xff]  ;;  %v606_v31 = vpack.c.bf16 %v586_v27, %v585_v26  ;;  %v559_v33 = vld [vmem:[%s7753_s24 + $0x60] sm:$0xff] }
  0x2f   : > { %1396 = vmatpush1.bf16.msra.mxu0 %v588_v8  ;;  %6650 = vmatpush3.bf16.msra.mxu1 %v603_v16  ;;  %v592_v32 = vpack.c.bf16 %v558_v30, %v557_v29  ;;  %v560_v34 = vld [vmem:[%s7753_s24 + $0x68] sm:$0xff]  ;;  %v561_v37 = vld [vmem:[%s7753_s24 + $0x70] sm:$0xff]  ;;  %v562_v39 = vld [vmem:[%s7753_s24 + $0x78] sm:$0xff] }
  0x30   : > { %1397 = vmatprep.subr.bf16.mxu0 %v10392_v0  ;;  %6651 = vmatprep.subr.bf16.mxu1 %v604_v19  ;;  %v593_v36 = vpack.c.bf16 %v560_v34, %v559_v33  ;;  %v594_v40 = vpack.c.bf16 %v562_v39, %v561_v37  ;;  %v563_v41 = vld [vmem:[%s7753_s24 + $0x80] sm:$0xff]  ;;  %v564_v42 = vld [vmem:[%s7753_s24 + $0x88] sm:$0xff]  ;;  %v565_v43 = vld [vmem:[%s7753_s24 + $0x90] sm:$0xff] }
  0x31   : > { %v566_v44 = vld [vmem:[%s7753_s24 + $0x98] sm:$0xff]  ;;  %v595_v45 = vpack.c.bf16 %v564_v42, %v563_v41  ;;  %v567_v49 = vld [vmem:[%s7753_s24 + $0xa0] sm:$0xff]  ;;  %v568_v50 = vld [vmem:[%s7753_s24 + $0xa8] sm:$0xff] }
  0x32   : > { %v596_v48 = vpack.c.bf16 %v566_v44, %v565_v43  ;;  %v569_v51 = vld [vmem:[%s7753_s24 + $0xb0] sm:$0xff]  ;;  %v570_v52 = vld [vmem:[%s7753_s24 + $0xb8] sm:$0xff]  ;;  %v7243_v53 = vld [vmem:[%s10466_s23 + $0x80] ss:$12 sps:$4 sm:$0xff]   ;;  %v597_v54 = vpack.c.bf16 %v568_v50, %v567_v49 }
  0x33   : > { %1398 = vmatpush1.bf16.msra.mxu0 %v589_v11  ;;  %6652 = vmatpush3.bf16.msra.mxu1 %v604_v19  ;;  %v7248_v55 = vld [vmem:[%s10466_s23 + $0x98] ss:$12 sps:$4 sm:$0xff]   ;;  %v598_v56 = vpack.c.bf16 %v570_v52, %v569_v51  ;;  %v572_v58 = vld [vmem:[%s7753_s24 + $0xc8] sm:$0xff]  ;;  %v7251_v59 = vld [vmem:[%s10466_s23 + $0xb0] ss:$12 sps:$4 sm:$0xff]  }
  0x34   : > { %1399 = vmatprep.subr.bf16.mxu0 %v10392_v0  ;;  %6653 = vmatprep.subr.bf16.mxu1 %v605_v25  ;;  %v571_v57 = vld [vmem:[%s7753_s24 + $0xc0] sm:$0xff]  ;;  %v573_v60 = vld [vmem:[%s7753_s24 + $0xd0] sm:$0xff]  ;;  %v574_v61 = vld [vmem:[%s7753_s24 + $0xd8] sm:$0xff] }
  0x35   : > { %v7256_v62 = vld [vmem:[%s10466_s23 + $0xc8] ss:$12 sps:$4 sm:$0xff]   ;;  %v599_v63 = vpack.c.bf16 %v572_v58, %v571_v57  ;;  %v575_v1 = vld [vmem:[%s7753_s24 + $0xe0] sm:$0xff]  ;;  %v600_v2 = vpack.c.bf16 %v574_v61, %v573_v60  ;;  %v578_v6 = vld [vmem:[%s7753_s24 + $0xf8] sm:$0xff] }
  0x36   : > { %v576_v3 = vld [vmem:[%s7753_s24 + $0xe8] sm:$0xff]  ;;  %v577_v5 = vld [vmem:[%s7753_s24 + $0xf0] sm:$0xff]  ;;  %v7264_v7 = vld [vmem:[%s10466_s23 + $0xf8] ss:$12 sps:$4 sm:$0xff]   ;;  %s10407_s24 = smov 16  }
  0x37   : > { %1400 = vmatpush1.bf16.msra.mxu0 %v590_v21  ;;  %6654 = vmatpush3.bf16.msra.mxu1 %v605_v25  ;;  %v7259_v4 = vld [vmem:[%s10466_s23 + $0xe0] ss:$12 sps:$4 sm:$0xff]   ;;  %v601_v8 = vpack.c.bf16 %v576_v3, %v575_v1  ;;  %v602_v9 = vpack.c.bf16 %v578_v6, %v577_v5  ;;  %v7229_v11 = vld [vmem:[%s10466_s23 + $0x1c] ss:$12 sps:$4 sm:$0xff]   ;;  %v7231_v14 = vld [vmem:[%s10466_s23 + $0x18] ss:$12 sps:$4 sm:$0xff]  }
  0x38   : > { %1401 = vmatprep.subr.bf16.mxu0 %v10392_v0  ;;  %6655 = vmatprep.subr.bf16.mxu1 %v606_v31  ;;  %v7225_v10 = vld [vmem:[%s10466_s23] ss:$12 sps:$4 sm:$0xff]   ;;  %v7267_v12 = vld [vmem:[%s10466_s23 + $0x110] ss:$12 sps:$4 sm:$0xff]   ;;  %v7272_v13 = vld [vmem:[%s10466_s23 + $0x128] ss:$12 sps:$4 sm:$0xff]  }
  0x39   : > { %v7233_v15 = vld [vmem:[%s10466_s23 + $0x34] ss:$12 sps:$4 sm:$0xff]   ;;  %v7280_v17 = vld [vmem:[%s10466_s23 + $0x158] ss:$12 sps:$4 sm:$0xff]   ;;  %v7236_v18 = vld [vmem:[%s10466_s23 + $0x30] ss:$12 sps:$4 sm:$0xff]  }
  0x3a   : > { %v7275_v16 = vld [vmem:[%s10466_s23 + $0x140] ss:$12 sps:$4 sm:$0xff]   ;;  %v7283_v20 = vld [vmem:[%s10466_s23 + $0x170] ss:$12 sps:$4 sm:$0xff]   ;;  %v7288_v21 = vld [vmem:[%s10466_s23 + $0x188] ss:$12 sps:$4 sm:$0xff]  }
  0x3b   : > { %1402 = vmatpush1.bf16.msra.mxu0 %v591_v28  ;;  %6656 = vmatpush3.bf16.msra.mxu1 %v606_v31  ;;  %v7237_v19 = vld [vmem:[%s10466_s23 + $0x4c] ss:$12 sps:$4 sm:$0xff]   ;;  %v7239_v22 = vld [vmem:[%s10466_s23 + $0x48] ss:$12 sps:$4 sm:$0xff]   ;;  %v7241_v23 = vld [vmem:[%s10466_s23 + $0x64] ss:$12 sps:$4 sm:$0xff]  }
  0x3c   : > { %1403 = vmatprep.subr.bf16.mxu0 %v10392_v0  ;;  %v7291_v24 = vld [vmem:[%s10466_s23 + $0x1a0] ss:$12 sps:$4 sm:$0xff]   ;;  %v7296_v25 = vld [vmem:[%s10466_s23 + $0x1b8] ss:$12 sps:$4 sm:$0xff]   ;;  %v7245_v27 = vld [vmem:[%s10466_s23 + $0x7c] ss:$12 sps:$4 sm:$0xff]  }
  0x3d   : > { %v7244_v26 = vld [vmem:[%s10466_s23 + $0x60] ss:$12 sps:$4 sm:$0xff]   ;;  %v7299_v28 = vld [vmem:[%s10466_s23 + $0x1d0] ss:$12 sps:$4 sm:$0xff]   ;;  %v7304_v29 = vld [vmem:[%s10466_s23 + $0x1e8] ss:$12 sps:$4 sm:$0xff]  }
  0x3e   : > { %6658 = vmatmul.mubr.msk.bf16.vlgmr.msra.gmra.mrb[0].mxu1 %vm1284_vm0, %v7228_v35  ;;  %v7247_v30 = vld [vmem:[%s10466_s23 + $0x78] ss:$12 sps:$4 sm:$0xff]   ;;  %v7249_v31 = vld [vmem:[%s10466_s23 + $0x94] ss:$12 sps:$4 sm:$0xff]   ;;  %v7252_v34 = vld [vmem:[%s10466_s23 + $0x90] ss:$12 sps:$4 sm:$0xff]  }
  0x3f   : > { %1404 = vmatpush1.bf16.msra.mxu0 %v592_v32  ;;  %6661 = vmatprep.mubr.msk.bf16.mxu1 %vm1284_vm0, %v7232_v38  ;;  %v7307_v32 = vld [vmem:[%s10466_s23 + $0x200] ss:$12 sps:$4 sm:$0xff]   ;;  %v7312_v33 = vld [vmem:[%s10466_s23 + $0x218] ss:$12 sps:$4 sm:$0xff]   ;;  %v7255_v37 = vld [vmem:[%s10466_s23 + $0xa8] ss:$12 sps:$4 sm:$0xff]  }
  0x40   : > { %1405 = vmatprep.subr.bf16.mxu0 %v10392_v0  ;;  %v7253_v35 = vld [vmem:[%s10466_s23 + $0xac] ss:$12 sps:$4 sm:$0xff]   ;;  %v7257_v38 = vld [vmem:[%s10466_s23 + $0xc4] ss:$12 sps:$4 sm:$0xff]   ;;  %v7320_v39 = vld [vmem:[%s10466_s23 + $0x248] ss:$12 sps:$4 sm:$0xff]  }
  0x41   : > { %v7260_v41 = vld [vmem:[%s10466_s23 + $0xc0] ss:$12 sps:$4 sm:$0xff]   ;;  %v7261_v42 = vld [vmem:[%s10466_s23 + $0xdc] ss:$12 sps:$4 sm:$0xff]   ;;  %v7263_v43 = vld [vmem:[%s10466_s23 + $0xd8] ss:$12 sps:$4 sm:$0xff]  }
  0x42   : > { %v7265_v44 = vld [vmem:[%s10466_s23 + $0xf4] ss:$12 sps:$4 sm:$0xff]   ;;  %v7273_v50 = vld [vmem:[%s10466_s23 + $0x124] ss:$12 sps:$4 sm:$0xff]   ;;  %v7293_v3 = vld [vmem:[%s10466_s23 + $0x19c] ss:$12 sps:$4 sm:$0xff]  }
  0x43   : > { %1406 = vmatpush1.bf16.msra.mxu0 %v593_v36  ;;  %v7315_v36 = vld [vmem:[%s10466_s23 + $0x230] ss:$12 sps:$4 sm:$0xff]   ;;  %v7271_v49 = vld [vmem:[%s10466_s23 + $0x108] ss:$12 sps:$4 sm:$0xff]   ;;  %v7276_v51 = vld [vmem:[%s10466_s23 + $0x120] ss:$12 sps:$4 sm:$0xff]  }
  0x44   : > { %1407 = vmatprep.subr.bf16.mxu0 %v10392_v0  ;;  %v7336_v52 = vld [vmem:[%s10466_s23 + $0x2a8] ss:$12 sps:$4 sm:$0xff]   ;;  %v7284_v57 = vld [vmem:[%s10466_s23 + $0x150] ss:$12 sps:$4 sm:$0xff]   ;;  %v7344_v58 = vld [vmem:[%s10466_s23 + $0x2d8] ss:$12 sps:$4 sm:$0xff]  }
  0x45   : > { %v7347_v60 = vld [vmem:[%s10466_s23 + $0x2f0] ss:$12 sps:$4 sm:$0xff]   ;;  %v7287_v61 = vld [vmem:[%s10466_s23 + $0x168] ss:$12 sps:$4 sm:$0xff]   ;;  %v7353_v1 = vld [vmem:[%s10466_s23 + $0x320] ss:$12 sps:$4 sm:$0xff]  }
  0x46   : > { %6662 = vmatmul.mubr.msk.bf16.gmra.mrb[4].mxu1 %vm1284_vm0, %v7235_v46  ;;  %v7331_v46 = vld [vmem:[%s10466_s23 + $0x290] ss:$12 sps:$4 sm:$0xff]   ;;  %v7297_v5 = vld [vmem:[%s10466_s23 + $0x1b4] ss:$12 sps:$4 sm:$0xff]  }
  0x47   : > { %1408 = vmatpush1.bf16.msra.mxu0 %v594_v40  ;;  %6665 = vmatprep.mubr.msk.bf16.mxu1 %vm1284_vm0, %v7240_v47  ;;  %v7323_v40 = vld [vmem:[%s10466_s23 + $0x260] ss:$12 sps:$4 sm:$0xff]   ;;  %v7268_v47 = vld [vmem:[%s10466_s23 + $0xf0] ss:$12 sps:$4 sm:$0xff]  }
  0x48   : > { %1409 = vmatprep.subr.bf16.mxu0 %v10392_v0  ;;  %v7300_v6 = vld [vmem:[%s10466_s23 + $0x1b0] ss:$12 sps:$4 sm:$0xff]  }
  0x4b   : > { %1410 = vmatpush1.bf16.msra.mxu0 %v595_v45  ;;  %v7328_v45 = vld [vmem:[%s10466_s23 + $0x278] ss:$12 sps:$4 sm:$0xff]  }
  0x4c   : > { %1411 = vmatprep.subr.bf16.mxu0 %v10392_v0 }
  0x4e   : > { %6666 = vmatmul.mubr.msk.bf16.gmra.mrb[8].mxu1 %vm1284_vm0, %v7243_v53  ;;  %v7277_v53 = vld [vmem:[%s10466_s23 + $0x13c] ss:$12 sps:$4 sm:$0xff]  }
  0x4f   : > { %1412 = vmatpush1.bf16.msra.mxu0 %v596_v48  ;;  %6669 = vmatprep.mubr.msk.bf16.mxu1 %vm1284_vm0, %v7248_v55  ;;  %v7269_v48 = vld [vmem:[%s10466_s23 + $0x10c] ss:$12 sps:$4 sm:$0xff]  }
  0x50   : > { %1413 = vmatprep.subr.bf16.mxu0 %v10392_v0  ;;  %v7279_v55 = vld [vmem:[%s10466_s23 + $0x138] ss:$12 sps:$4 sm:$0xff]  }
  0x53   : > { %1414 = vmatpush1.bf16.msra.mxu0 %v597_v54  ;;  %v7339_v54 = vld [vmem:[%s10466_s23 + $0x2c0] ss:$12 sps:$4 sm:$0xff]  }
  0x54   : > { %1415 = vmatprep.subr.bf16.mxu0 %v10392_v0 }
  0x56   : > { %6670 = vmatmul.mubr.msk.bf16.gmra.mrb[12].mxu1 %vm1284_vm0, %v7251_v59  ;;  %v7285_v59 = vld [vmem:[%s10466_s23 + $0x16c] ss:$12 sps:$4 sm:$0xff]  }
  0x57   : > { %1416 = vmatpush1.bf16.msra.mxu0 %v598_v56  ;;  %6673 = vmatprep.mubr.msk.bf16.mxu1 %vm1284_vm0, %v7256_v62  ;;  %v7281_v56 = vld [vmem:[%s10466_s23 + $0x154] ss:$12 sps:$4 sm:$0xff]   ;;  %v7289_v62 = vld [vmem:[%s10466_s23 + $0x184] ss:$12 sps:$4 sm:$0xff]  }
  0x58   : > { %1417 = vmatprep.subr.bf16.mxu0 %v10392_v0 }
  0x5b   : > { %1418 = vmatpush1.bf16.msra.mxu0 %v599_v63  ;;  %v7352_v63 = vld [vmem:[%s10466_s23 + $0x308] ss:$12 sps:$4 sm:$0xff]  }
  0x5c   : > { %1419 = vmatprep.subr.bf16.mxu0 %v10392_v0 }
  0x5e   : > { %6674 = vmatmul.mubr.msk.bf16.gmra.mrb[16].mxu1 %vm1284_vm0, %v7259_v4  ;;  %v7295_v4 = vld [vmem:[%s10466_s23 + $0x198] ss:$12 sps:$4 sm:$0xff]  }
  0x5f   : > { %1420 = vmatpush1.bf16.msra.mxu0 %v600_v2  ;;  %6677 = vmatprep.mubr.msk.bf16.mxu1 %vm1284_vm0, %v7264_v7  ;;  %v7292_v2 = vld [vmem:[%s10466_s23 + $0x180] ss:$12 sps:$4 sm:$0xff]   ;;  %v7360_v7 = vld [vmem:[%s10466_s23 + $0x338] ss:$12 sps:$4 sm:$0xff]  }
  0x60   : > { %1421 = vmatprep.subr.bf16.mxu0 %v10392_v0 }
  0x63   : > { %1422 = vmatpush1.bf16.msra.mxu0 %v601_v8  ;;  %v7301_v8 = vld [vmem:[%s10466_s23 + $0x1cc] ss:$12 sps:$4 sm:$0xff]  }
  0x64   : > { %1423 = vmatprep.subr.bf16.mxu0 %v10392_v0 }
  0x66   : > { %6678 = vmatmul.mubr.msk.bf16.gmra.mrb[20].mxu1 %vm1284_vm0, %v7267_v12  ;;  %v7308_v12 = vld [vmem:[%s10466_s23 + $0x1e0] ss:$12 sps:$4 sm:$0xff]  }
  0x67   : > { %1424 = vmatpush1.bf16.msra.mxu0 %v602_v9  ;;  %6681 = vmatprep.mubr.msk.bf16.mxu1 %vm1284_vm0, %v7272_v13  ;;  %v7363_v9 = vld [vmem:[%s10466_s23 + $0x350] ss:$0 sps:$4 sm:$0xff]   ;;  %v7309_v13 = vld [vmem:[%s10466_s23 + $0x1fc] ss:$12 sps:$4 sm:$0xff]  }
  0x6a   : > { %1426 = vmatmul.mubr.bf16.vlgmr.msra.gmra.mrb[0].mxu0 %v7225_v10  ;;  %v7303_v10 = vld [vmem:[%s10466_s23 + $0x1c8] ss:$12 sps:$4 sm:$0xff]  }
  0x6b   : > { %1433 = vmatprep.mubr.bf16.mxu0 %v7229_v11  ;;  %v7305_v11 = vld [vmem:[%s10466_s23 + $0x1e4] ss:$12 sps:$4 sm:$0xff]  }
  0x6e   : > { %6682 = vmatmul.mubr.msk.bf16.gmra.mrb[24].mxu1 %vm1284_vm0, %v7275_v16  ;;  %v7316_v16 = vld [vmem:[%s10466_s23 + $0x210] ss:$12 sps:$4 sm:$0xff]  }
  0x6f   : > { %6685 = vmatprep.mubr.msk.bf16.mxu1 %vm1284_vm0, %v7280_v17 }
  0x72   : > { %1434 = vmatmul.mubr.bf16.gmra.mrb[4].mxu0 %v7231_v14  ;;  %v7311_v14 = vld [vmem:[%s10466_s23 + $0x1f8] ss:$12 sps:$4 sm:$0xff]  }
  0x73   : > { %1441 = vmatprep.mubr.bf16.mxu0 %v7233_v15  ;;  %v7313_v15 = vld [vmem:[%s10466_s23 + $0x214] ss:$12 sps:$4 sm:$0xff]  }
  0x76   : > { %6686 = vmatmul.mubr.msk.bf16.gmra.mrb[28].mxu1 %vm1284_vm0, %v7283_v20 }
  0x77   : > { %6689 = vmatprep.mubr.msk.bf16.mxu1 %vm1284_vm0, %v7288_v21 }
  0x7a   : > { %1442 = vmatmul.mubr.bf16.gmra.mrb[8].mxu0 %v7236_v18  ;;  %v7317_v18 = vld [vmem:[%s10466_s23 + $0x22c] ss:$12 sps:$4 sm:$0xff]  }
  0x7b   : > { %1449 = vmatprep.mubr.bf16.mxu0 %v7237_v19 }
  0x7e   : > { %6690 = vmatmul.mubr.msk.bf16.gmra.mrb[32].mxu1 %vm1284_vm0, %v7291_v24  ;;  %v7321_v24 = vld [vmem:[%s10466_s23 + $0x244] ss:$12 sps:$4 sm:$0xff]  }
  0x7f   : > { %6693 = vmatprep.mubr.msk.bf16.mxu1 %vm1284_vm0, %v7296_v25 }
  0x82   : > { %1450 = vmatmul.mubr.bf16.gmra.mrb[12].mxu0 %v7239_v22  ;;  %v7319_v22 = vld [vmem:[%s10466_s23 + $0x228] ss:$12 sps:$4 sm:$0xff]  }
  0x83   : > { %1457 = vmatprep.mubr.bf16.mxu0 %v7241_v23 }
  0x86   : > { %6694 = vmatmul.mubr.msk.bf16.gmra.mrb[36].mxu1 %vm1284_vm0, %v7299_v28  ;;  %v7324_v28 = vld [vmem:[%s10466_s23 + $0x240] ss:$12 sps:$4 sm:$0xff]  }
  0x87   : > { %6697 = vmatprep.mubr.msk.bf16.mxu1 %vm1284_vm0, %v7304_v29 }
  0x8a   : > { %1458 = vmatmul.mubr.bf16.gmra.mrb[16].mxu0 %v7244_v26 }
  0x8b   : > { %1465 = vmatprep.mubr.bf16.mxu0 %v7245_v27 }
  0x8e   : > { %6698 = vmatmul.mubr.msk.bf16.gmra.mrb[40].mxu1 %vm1284_vm0, %v7307_v32 }
  0x8f   : > { %6701 = vmatprep.mubr.msk.bf16.mxu1 %vm1284_vm0, %v7312_v33 }
  0x92   : > { %1466 = vmatmul.mubr.bf16.gmra.mrb[20].mxu0 %v7247_v30  ;;  %v7325_v30 = vld [vmem:[%s10466_s23 + $0x25c] ss:$12 sps:$4 sm:$0xff]  }
  0x93   : > { %1473 = vmatprep.mubr.bf16.mxu0 %v7249_v31 }
  0x96   : > { %6702 = vmatmul.mubr.msk.bf16.gmra.mrb[44].mxu1 %vm1284_vm0, %v7315_v36  ;;  %v7329_v36 = vld [vmem:[%s10466_s23 + $0x274] ss:$12 sps:$4 sm:$0xff]  }
  0x97   : > { %6705 = vmatprep.mubr.msk.bf16.mxu1 %vm1284_vm0, %v7320_v39 }
  0x9a   : > { %1474 = vmatmul.mubr.bf16.gmra.mrb[24].mxu0 %v7252_v34  ;;  %v7327_v34 = vld [vmem:[%s10466_s23 + $0x258] ss:$12 sps:$4 sm:$0xff]  }
  0x9b   : > { %1481 = vmatprep.mubr.bf16.mxu0 %v7253_v35 }
  0x9e   : > { %6706 = vmatmul.mubr.msk.bf16.gmra.mrb[48].mxu1 %vm1284_vm0, %v7323_v40  ;;  %v7332_v40 = vld [vmem:[%s10466_s23 + $0x270] ss:$12 sps:$4 sm:$0xff]  }
  0x9f   : > { %6709 = vmatprep.mubr.msk.bf16.mxu1 %vm1284_vm0, %v7328_v45 }
  0xa2   : > { %1482 = vmatmul.mubr.bf16.gmra.mrb[28].mxu0 %v7255_v37 }
  0xa3   : > { %1489 = vmatprep.mubr.bf16.mxu0 %v7257_v38 }
  0xa6   : > { %6710 = vmatmul.mubr.msk.bf16.gmra.mrb[52].mxu1 %vm1284_vm0, %v7331_v46 }
  0xa7   : > { %6713 = vmatprep.mubr.msk.bf16.mxu1 %vm1284_vm0, %v7336_v52  ;;  %v7337_v52 = vld [vmem:[%s10466_s23 + $0x2a4] ss:$12 sps:$4 sm:$0xff]  }
  0xaa   : > { %1490 = vmatmul.mubr.bf16.gmra.mrb[32].mxu0 %v7260_v41 }
  0xab   : > { %1497 = vmatprep.mubr.bf16.mxu0 %v7261_v42  ;;  %v7333_v42 = vld [vmem:[%s10466_s23 + $0x28c] ss:$12 sps:$4 sm:$0xff]  }
  0xae   : > { %6714 = vmatmul.mubr.msk.bf16.gmra.mrb[56].mxu1 %vm1284_vm0, %v7339_v54 }
  0xaf   : > { %6717 = vmatprep.mubr.msk.bf16.mxu1 %vm1284_vm0, %v7344_v58 }
  0xb2   : > { %1498 = vmatmul.mubr.bf16.gmra.mrb[36].mxu0 %v7263_v43 }
  0xb3   : > { %1505 = vmatprep.mubr.bf16.mxu0 %v7265_v44 }
  0xb6   : > { %6718 = vmatmul.mubr.msk.bf16.gmra.mrb[60].mxu1 %vm1284_vm0, %v7347_v60 }
  0xb7   : > { %6721 = vmatprep.mubr.msk.bf16.mxu1 %vm1284_vm0, %v7352_v63 }
  0xba   : > { %1506 = vmatmul.mubr.bf16.gmra.mrb[40].mxu0 %v7268_v47 }
  0xbb   : > { %1513 = vmatprep.mubr.bf16.mxu0 %v7269_v48 }
  0xbe   : > { %6722 = vmatmul.mubr.msk.bf16.gmra.mrb[64].mxu1 %vm1284_vm0, %v7353_v1  ;;  %v7341_v1 = vld [vmem:[%s10466_s23 + $0x2bc] ss:$12 sps:$4 sm:$0xff]  }
  0xbf   : > { %6725 = vmatprep.mubr.msk.bf16.mxu1 %vm1284_vm0, %v7360_v7 }
  0xc2   : > { %1514 = vmatmul.mubr.bf16.gmra.mrb[44].mxu0 %v7271_v49  ;;  %v7335_v49 = vld [vmem:[%s10466_s23 + $0x288] ss:$12 sps:$4 sm:$0xff]  }
  0xc3   : > { %1521 = vmatprep.mubr.bf16.mxu0 %v7273_v50 }
  0xc6   : > { %6726 = vmatmul.mubr.msk.bf16.gmra.mrb[68].mxu1 %vm1284_vm0, %v7363_v9 }
  0xc7   : > { %2593 = vmatprep.mubr.bf16.mxu1 %v10392_v0 }
  0xca   : > { %1522 = vmatmul.mubr.bf16.gmra.mrb[48].mxu0 %v7276_v51 }
  0xcb   : > { %1529 = vmatprep.mubr.bf16.mxu0 %v7277_v53 }
  0xd2   : > { %1530 = vmatmul.mubr.bf16.gmra.mrb[52].mxu0 %v7279_v55 }
  0xd3   : > { %1537 = vmatprep.mubr.bf16.mxu0 %v7281_v56 }
  0xda   : > { %1538 = vmatmul.mubr.bf16.gmra.mrb[56].mxu0 %v7284_v57 }
  0xdb   : > { %1545 = vmatprep.mubr.bf16.mxu0 %v7285_v59 }
  0xe2   : > { %1546 = vmatmul.mubr.bf16.gmra.mrb[60].mxu0 %v7287_v61  ;;  %v7340_v61 = vld [vmem:[%s10466_s23 + $0x2a0] ss:$12 sps:$4 sm:$0xff]  }
  0xe3   : > { %1553 = vmatprep.mubr.bf16.mxu0 %v7289_v62 }
  0xea   : > { %1554 = vmatmul.mubr.bf16.gmra.mrb[64].mxu0 %v7292_v2 }
  0xeb   : > { %1561 = vmatprep.mubr.bf16.mxu0 %v7293_v3 }
  0xf2   : > { %1562 = vmatmul.mubr.bf16.gmra.mrb[68].mxu0 %v7295_v4 }
  0xf3   : > { %1569 = vmatprep.mubr.bf16.mxu0 %v7297_v5 }
  0xfa   : > { %1570 = vmatmul.mubr.bf16.gmra.mrb[72].mxu0 %v7300_v6 }
  0xfb   : > { %1577 = vmatprep.mubr.bf16.mxu0 %v7301_v8 }
 0x102   : > { %1578 = vmatmul.mubr.bf16.gmra.mrb[76].mxu0 %v7303_v10  ;;  %v7343_v10 = vld [vmem:[%s10466_s23 + $0x2b8] ss:$12 sps:$4 sm:$0xff]  }
 0x103   : > { %1585 = vmatprep.mubr.bf16.mxu0 %v7305_v11 }
 0x10a   : > { %1586 = vmatmul.mubr.bf16.gmra.mrb[80].mxu0 %v7308_v12 }
 0x10b   : > { %1593 = vmatprep.mubr.bf16.mxu0 %v7309_v13  ;;  %v7345_v13 = vld [vmem:[%s10466_s23 + $0x2d4] ss:$12 sps:$4 sm:$0xff]  }
 0x111   : > { %v6659_v17 = vpop.f32.mrb[0].mxu1 }
 0x112   : > { %1594 = vmatmul.mubr.bf16.gmra.mrb[84].mxu0 %v7311_v14  ;;  %v1747_v19 = vpop.f32.mrb[1].mxu1 }
 0x113   : > { %1601 = vmatprep.mubr.bf16.mxu0 %v7313_v15  ;;  %v6660_v20 = vpop.f32.mrb[2].mxu1 }
 0x114   : > { %v1750_v21 = vpop.f32.mrb[3].mxu1 }
 0x119   : > { %v8092_v23 = vpop.f32.mrb[4].mxu1 }
 0x11a   : > { %1602 = vmatmul.mubr.bf16.gmra.mrb[88].mxu0 %v7316_v16  ;;  %v1763_v25 = vpop.f32.mrb[5].mxu1 }
 0x11b   : > { %1609 = vmatprep.mubr.bf16.mxu0 %v7317_v18  ;;  %v8097_v26 = vpop.f32.mrb[6].mxu1 }
 0x11c   : > { %v8099_v27 = vpop.f32.mrb[7].mxu1 }
 0x121   : > { %v8104_v29 = vpop.f32.mrb[8].mxu1 }
 0x122   : > { %1610 = vmatmul.mubr.bf16.gmra.mrb[92].mxu0 %v7319_v22  ;;  %v8109_v31 = vpop.f32.mrb[9].mxu1  ;;  %v7348_v22 = vld [vmem:[%s10466_s23 + $0x2d0] ss:$12 sps:$4 sm:$0xff]  }
 0x123   : > { %1617 = vmatprep.mubr.bf16.mxu0 %v7321_v24  ;;  %v8111_v32 = vpop.f32.mrb[10].mxu1 }
 0x124   : > { %v8113_v33 = vpop.f32.mrb[11].mxu1 }
 0x129   : > { %v8118_v35 = vpop.f32.mrb[12].mxu1 }
 0x12a   : > { %1618 = vmatmul.mubr.bf16.gmra.mrb[96].mxu0 %v7324_v28  ;;  %v8123_v37 = vpop.f32.mrb[13].mxu1 }
 0x12b   : > { %1625 = vmatprep.mubr.bf16.mxu0 %v7325_v30  ;;  %v8125_v38 = vpop.f32.mrb[14].mxu1 }
 0x12c   : > { %v8127_v39 = vpop.f32.mrb[15].mxu1 }
 0x131   : > { %v8132_v41 = vpop.f32.mrb[16].mxu1 }
 0x132   : > { %1626 = vmatmul.mubr.bf16.gmra.mrb[100].mxu0 %v7327_v34  ;;  %v8137_v43 = vpop.f32.mrb[17].mxu1 }
 0x133   : > { %1633 = vmatprep.mubr.bf16.mxu0 %v7329_v36  ;;  %v8139_v44 = vpop.f32.mrb[18].mxu1 }
 0x134   : > { %v8141_v45 = vpop.f32.mrb[19].mxu1 }
 0x139   : > { %v8148_v50 = vpop.f32.mrb[20].mxu1 }
 0x13a   : > { %1634 = vmatmul.mubr.bf16.gmra.mrb[104].mxu0 %v7332_v40  ;;  %v8153_v53 = vpop.f32.mrb[21].mxu1 }
 0x13b   : > { %1641 = vmatprep.mubr.bf16.mxu0 %v7333_v42  ;;  %v8157_v56 = vpop.f32.mrb[22].mxu1 }
 0x13c   : > { %v8159_v57 = vpop.f32.mrb[23].mxu1 }
 0x13d   : > { %v1427_v46 = vpop.f32.mrb[0].mxu0 }
 0x13e   : > { %v8143_v47 = vadd.f32 %v1747_v19, %v1427_v46  ;;  %v1429_v48 = vpop.f32.mrb[1].mxu0 }
 0x13f   : > { %v1430_v51 = vpop.f32.mrb[2].mxu0  ;;  %v7351_v48 = vld [vmem:[%s10466_s23 + $0x2e8] ss:$12 sps:$4 sm:$0xff]  }
 0x140   : > { %v8155_v54 = vadd.f32 %v1750_v21, %v1430_v51  ;;  %v1432_v55 = vpop.f32.mrb[3].mxu0 }
 0x141   : > { %v8166_v62 = vpop.f32.mrb[24].mxu1 }
 0x142   : > { %1642 = vmatmul.mubr.bf16.gmra.mrb[108].mxu0 %v7335_v49  ;;  %v8171_v2 = vpop.f32.mrb[25].mxu1 }
 0x143   : > { %1649 = vmatprep.mubr.bf16.mxu0 %v7337_v52  ;;  %v8175_v5 = vpop.f32.mrb[26].mxu1 }
 0x144   : > { %v8177_v6 = vpop.f32.mrb[27].mxu1 }
 0x145   : > { %v1435_v58 = vpop.f32.mrb[4].mxu0 }
 0x146   : > { %v8161_v59 = vadd.f32 %v6659_v17, %v1435_v58  ;;  %v1437_v60 = vpop.f32.mrb[5].mxu0 }
 0x147   : > { %v1438_v63 = vpop.f32.mrb[6].mxu0 }
 0x148   : > { %v8173_v3 = vadd.f32 %v6660_v20, %v1438_v63  ;;  %v1440_v4 = vpop.f32.mrb[7].mxu0 }
 0x149   : > { %v8184_v11 = vpop.f32.mrb[28].mxu1 }
 0x14a   : > { %1650 = vmatmul.mubr.bf16.gmra.mrb[112].mxu0 %v7340_v61  ;;  %v8189_v14 = vpop.f32.mrb[29].mxu1 }
 0x14b   : > { %1657 = vmatprep.mubr.bf16.mxu0 %v7341_v1  ;;  %v8194_v17 = vpop.f32.mrb[30].mxu1 }
 0x14c   : > { %v8196_v18 = vpop.f32.mrb[31].mxu1 }
 0x14d   : > { %v1443_v7 = vpop.f32.mrb[8].mxu0 }
 0x14e   : > { %v8179_v8 = vadd.f32 %v1763_v25, %v1443_v7  ;;  %v1445_v9 = vpop.f32.mrb[9].mxu0 }
 0x14f   : > { %v1446_v12 = vpop.f32.mrb[10].mxu0 }
 0x150   : > { %v8192_v15 = vadd.f32 %v8099_v27, %v1446_v12  ;;  %v1448_v16 = vpop.f32.mrb[11].mxu0  ;;  %v7349_v27 = vld [vmem:[%s10466_s23 + $0x2ec] ss:$12 sps:$4 sm:$0xff]  }
 0x151   : > { %v8204_v24 = vpop.f32.mrb[32].mxu1 }
 0x152   : > { %1658 = vmatmul.mubr.bf16.gmra.mrb[116].mxu0 %v7343_v10  ;;  %v8209_v28 = vpop.f32.mrb[33].mxu1 }
 0x153   : > { %1665 = vmatprep.mubr.bf16.mxu0 %v7345_v13  ;;  %v7356_v13 = vld [vmem:[%s10466_s23 + $0x300] ss:$12 sps:$4 sm:$0xff]  }
 0x155   : > { %v1451_v19 = vpop.f32.mrb[12].mxu0 }
 0x156   : > { %v8199_v20 = vadd.f32 %v8092_v23, %v1451_v19  ;;  %v1453_v21 = vpop.f32.mrb[13].mxu0  ;;  %v8214_v23 = vpop.f32.mrb[34].mxu1 }
 0x157   : > { %v1454_v25 = vpop.f32.mrb[14].mxu0  ;;  %v8216_v36 = vpop.f32.mrb[35].mxu1  ;;  %v7357_v21 = vld [vmem:[%s10466_s23 + $0x31c] ss:$12 sps:$4 sm:$0xff]  }
 0x158   : > { %10468 = vst [vmem:[#allocation11_spill] sm:$0xff] %v8199_v20  ;;  %v8212_v30 = vadd.f32 %v8097_v26, %v1454_v25  ;;  %v1456_v34 = vpop.f32.mrb[15].mxu0  ;;  %v7354_v26 = vld [vmem:[%s10466_s23 + $0x304] ss:$12 sps:$4 sm:$0xff]  }
 0x159   : > { %v8222_v49 = vpop.f32.mrb[36].mxu1 }
 0x15a   : > { %10469 = vst [vmem:[#allocation12_spill] sm:$0xff] %v8212_v30  ;;  %1666 = vmatmul.mubr.bf16.gmra.mrb[120].mxu0 %v7348_v22  ;;  %v8227_v52 = vpop.f32.mrb[37].mxu1  ;;  %v2043_v63 = vrot.slane %v8212_v30, 7 }
 0x15b   : > { %1673 = vmatprep.mubr.bf16.mxu0 %v7349_v27  ;;  %v8230_v61 = vpop.f32.mrb[38].mxu1 }
 0x15d   : > { %v1459_v40 = vpop.f32.mrb[16].mxu0 }
 0x15e   : > { %v1780_v42 = vadd.f32 %v8109_v31, %v1459_v40  ;;  %v1461_v46 = vpop.f32.mrb[17].mxu0  ;;  %v8232_v31 = vpop.f32.mrb[39].mxu1 }
 0x15f   : > { %v1462_v51 = vpop.f32.mrb[18].mxu0 }
 0x160   : > { %v2044_v55 = vrot.slane %v1780_v42, 7  ;;  %v1783_v58 = vadd.f32 %v8113_v33, %v1462_v51  ;;  %v1464_v60 = vpop.f32.mrb[19].mxu0 }
 0x161   : > { %v8241_v16 = vpop.f32.mrb[40].mxu1 }
 0x162   : > { %v2046_v1 = vrot.slane %v1783_v58, 7  ;;  %1674 = vmatmul.mubr.bf16.gmra.mrb[124].mxu0 %v7351_v48  ;;  %v2045_v4 = vsel %vm2042_vm1, %v2043_v63, %v2044_v55  ;;  %v8247_v22 = vpop.f32.mrb[41].mxu1 }
 0x163   : > { %1681 = vmatprep.mubr.bf16.mxu0 %v7354_v26  ;;  %v8250_v34 = vpop.f32.mrb[42].mxu1 }
 0x164   : > { %v2047_v7 = vsel %vm2042_vm1, %v2044_v55, %v2046_v1  ;;  %v8252_v40 = vpop.f32.mrb[43].mxu1 }
 0x165   : > { %v1467_v9 = vpop.f32.mrb[20].mxu0  ;;  %v6829_v10 = vpack.i.bf16 %v2047_v7, %v2045_v4 }
 0x166   : > { %v1788_v12 = vadd.f32 %v8104_v29, %v1467_v9  ;;  %v1469_v33 = vpop.f32.mrb[21].mxu0 }
 0x167   : > { %6830 = vrot.lane.b32.xlu0 %v6829_v10, %s7585_s19  ;;  %v1470_v19 = vpop.f32.mrb[22].mxu0 }
 0x168   : > { %v2048_v25 = vrot.slane %v1788_v12, 7  ;;  %v1791_v29 = vadd.f32 %v8111_v32, %v1470_v19  ;;  %v1472_v27 = vpop.f32.mrb[23].mxu0  ;;  %v7359_v32 = vld [vmem:[%s10466_s23 + $0x318] ss:$12 sps:$4 sm:$0xff]  }
 0x169   : > { %v8260_v60 = vpop.f32.mrb[44].mxu1 }
 0x16a   : > { %v2050_v42 = vrot.slane %v1791_v29, 7  ;;  %1682 = vmatmul.mubr.bf16.gmra.mrb[128].mxu0 %v7356_v13  ;;  %v2049_v46 = vsel %vm2042_vm1, %v2046_v1, %v2048_v25  ;;  %v7361_v1 = vld [vmem:[%s10466_s23 + $0x334] ss:$12 sps:$4 sm:$0xff]   ;;  %v8266_v4 = vpop.f32.mrb[45].mxu1 }
 0x16b   : > { %1689 = vmatprep.mubr.bf16.mxu0 %v7357_v21  ;;  %v8269_v10 = vpop.f32.mrb[46].mxu1  ;;  %v747_v21 = vld [vmem:[%s10466_s23 + $0x348] sm:$0xff] }
 0x16c   : > { %v2051_v48 = vsel %vm2042_vm1, %v2048_v25, %v2050_v42  ;;  %v8271_v12 = vpop.f32.mrb[47].mxu1 }
 0x16d   : > { %v1475_v51 = vpop.f32.mrb[24].mxu0  ;;  %v6834_v26 = vpack.i.bf16 %v2051_v48, %v2049_v46  ;;  %v7364_v46 = vld [vmem:[%s10466_s23 + $0x330] ss:$12 sps:$4 sm:$0xff]  }
 0x16e   : > { %v1796_v55 = vadd.f32 %v8123_v37, %v1475_v51  ;;  %v1477_v58 = vpop.f32.mrb[25].mxu0 }
 0x16f   : > { %6835 = vrot.lane.b32.xlu0 %v6834_v26, %s7585_s19  ;;  %v1478_v63 = vpop.f32.mrb[26].mxu0 }
 0x170   : > { %v2052_v7 = vrot.slane %v1796_v55, 7  ;;  %v1799_v9 = vadd.f32 %v8127_v39, %v1478_v63  ;;  %v1480_v37 = vpop.f32.mrb[27].mxu0 }
 0x172   : > { %v2054_v33 = vrot.slane %v1799_v9, 7  ;;  %1690 = vmatmul.mubr.bf16.gmra.mrb[132].mxu0 %v7359_v32  ;;  %v2053_v13 = vsel %vm2042_vm1, %v2050_v42, %v2052_v7  ;;  %v6252_v42 = vcombine.high %v747_v21, %v747_v21 }
 0x173   : > { %1697 = vmatprep.mubr.bf16.mxu0 %v7361_v1 }
 0x174   : > { %v2055_v19 = vsel %vm2042_vm1, %v2052_v7, %v2054_v33 }
 0x175   : > { %v1483_v25 = vpop.f32.mrb[28].mxu0  ;;  %v6839_v29 = vpack.i.bf16 %v2055_v19, %v2053_v13  ;;  %v6251_v13 = vcombine.low %v747_v21, %v747_v21 }
 0x176   : > { %v1804_v39 = vadd.f32 %v8118_v35, %v1483_v25  ;;  %v1485_v27 = vpop.f32.mrb[29].mxu0  ;;  %v8287_v35 = vpop.f32.mrb[48].mxu1 }
 0x177   : > { %6840 = vrot.lane.b32.xlu0 %v6839_v29, %s7585_s19  ;;  %v1486_v48 = vpop.f32.mrb[30].mxu0  ;;  %v8292_v7 = vpop.f32.mrb[49].mxu1 }
 0x178   : > { %v2056_v51 = vrot.slane %v1804_v39, 7  ;;  %v1807_v26 = vadd.f32 %v8125_v38, %v1486_v48  ;;  %v1488_v55 = vpop.f32.mrb[31].mxu0  ;;  %v8297_v19 = vpop.f32.mrb[50].mxu1 }
 0x179   : > { %v8299_v25 = vpop.f32.mrb[51].mxu1 }
 0x17a   : > { %v2058_v58 = vrot.slane %v1807_v26, 7  ;;  %1698 = vmatmul.mubr.bf16.gmra.mrb[136].mxu0 %v7364_v46  ;;  %v8285_v32 = vsel %vm2042_vm1, %v2054_v33, %v2056_v51  ;;  %v2093_v29 = vrot.slane %v1807_v26, 6 }
 0x17b   : > { %1705 = vmatprep.mubr.bf16.mxu0 %v6252_v42 }
 0x17c   : > { %v8290_v63 = vsel %vm2042_vm1, %v2056_v51, %v2058_v58 }
 0x17d   : > { %v1491_v1 = vpop.f32.mrb[32].mxu0 }
 0x17e   : > { %v1812_v38 = vadd.f32 %v8137_v43, %v1491_v1  ;;  %v1493_v37 = vpop.f32.mrb[33].mxu0 }
 0x17f   : > { %v1494_v33 = vpop.f32.mrb[34].mxu0 }
 0x180   : > { %v2094_v39 = vrot.slane %v1812_v38, 6  ;;  %v1815_v27 = vadd.f32 %v8141_v45, %v1494_v33  ;;  %v1496_v46 = vpop.f32.mrb[35].mxu0 }
 0x182   : > { %v2096_v48 = vrot.slane %v1815_v27, 6  ;;  %1706 = vmatmul.mubr.bf16.gmra.mrb[140].mxu0 %v6251_v13  ;;  %v2095_v42 = vsel %vm2092_vm2, %v2093_v29, %v2094_v39  ;;  %v8310_v29 = vpop.f32.mrb[52].mxu1 }
 0x183   : > { %4933 = vmatprep.mubr.bf16.mxu0 %v10392_v0  ;;  %v8312_v46 = vpop.f32.mrb[53].mxu1 }
 0x184   : > { %v2097_v43 = vsel %vm2092_vm2, %v2094_v39, %v2096_v48 }
 0x185   : > { %v1499_v21 = vpop.f32.mrb[36].mxu0  ;;  %v6844_v51 = vpack.i.bf16 %v2097_v43, %v2095_v42  ;;  %v8315_v43 = vpop.f32.mrb[54].mxu1 }
 0x186   : > { %v1820_v55 = vadd.f32 %v8132_v41, %v1499_v21  ;;  %v1501_v58 = vpop.f32.mrb[37].mxu0  ;;  %v8318_v21 = vpop.f32.mrb[55].mxu1 }
 0x187   : > { %6845 = vrot.lane.b32.xlu0 %v6844_v51, %s10407_s24  ;;  %v1502_v26 = vpop.f32.mrb[38].mxu0 }
 0x188   : > { %v2098_v1 = vrot.slane %v1820_v55, 6  ;;  %v1823_v45 = vadd.f32 %v8139_v44, %v1502_v26  ;;  %v1504_v38 = vpop.f32.mrb[39].mxu0 }
 0x18a   : > { %v2100_v37 = vrot.slane %v1823_v45, 6  ;;  %v2099_v13 = vsel %vm2092_vm2, %v2096_v48, %v2098_v1 }
 0x18c   : > { %v2101_v33 = vsel %vm2092_vm2, %v2098_v1, %v2100_v37 }
 0x18d   : > { %v1507_v39 = vpop.f32.mrb[40].mxu0  ;;  %v6849_v27 = vpack.i.bf16 %v2101_v33, %v2099_v13 }
 0x18e   : > { %v1828_v41 = vadd.f32 %v8153_v53, %v1507_v39  ;;  %v1509_v42 = vpop.f32.mrb[41].mxu0 }
 0x18f   : > { %6850 = vrot.lane.b32.xlu1 %v6849_v27, %s10407_s24  ;;  %v1510_v44 = vpop.f32.mrb[42].mxu0 }
 0x190   : > { %v2102_v51 = vrot.slane %v1828_v41, 6  ;;  %v1831_v48 = vadd.f32 %v8159_v57, %v1510_v44  ;;  %v1512_v55 = vpop.f32.mrb[43].mxu0  ;;  %v8329_v44 = vpop.f32.mrb[56].mxu1 }
 0x192   : > { %v2104_v58 = vrot.slane %v1831_v48, 6  ;;  %v2103_v26 = vsel %vm2092_vm2, %v2100_v37, %v2102_v51  ;;  %v8334_v48 = vpop.f32.mrb[57].mxu1 }
 0x194   : > { %v2105_v1 = vsel %vm2092_vm2, %v2102_v51, %v2104_v58 }
 0x195   : > { %v1515_v45 = vpop.f32.mrb[44].mxu0  ;;  %v6854_v38 = vpack.i.bf16 %v2105_v1, %v2103_v26 }
 0x196   : > { %v1836_v53 = vadd.f32 %v8148_v50, %v1515_v45  ;;  %v1517_v13 = vpop.f32.mrb[45].mxu0 }
 0x197   : > { %6855 = vrot.lane.b32.xlu1 %v6854_v38, %s10407_s24  ;;  %v1518_v33 = vpop.f32.mrb[46].mxu0 }
 0x198   : > { %v2106_v39 = vrot.slane %v1836_v53, 6  ;;  %v1839_v27 = vadd.f32 %v8157_v56, %v1518_v33  ;;  %v1520_v41 = vpop.f32.mrb[47].mxu0  ;;  %v8339_v56 = vpop.f32.mrb[58].mxu1 }
 0x19a   : > { %v2108_v42 = vrot.slane %v1839_v27, 6  ;;  %v8327_v57 = vsel %vm2092_vm2, %v2104_v58, %v2106_v39  ;;  %v8341_v58 = vpop.f32.mrb[59].mxu1  ;;  %v2143_v45 = vrot.slane %v1839_v27, 5 }
 0x19c   : > { %v8332_v37 = vsel %vm2092_vm2, %v2106_v39, %v2108_v42  ;;  %vm7597_vm2 = vmmov 0  }
 0x19d   : > { %v1523_v51 = vpop.f32.mrb[48].mxu0 }
 0x19e   : > { %v1844_v55 = vadd.f32 %v8171_v2, %v1523_v51  ;;  %v1525_v26 = vpop.f32.mrb[49].mxu0 }
 0x19f   : > { %v1526_v1 = vpop.f32.mrb[50].mxu0 }
 0x1a0   : > { %v2144_v38 = vrot.slane %v1844_v55, 5  ;;  %v1847_v53 = vadd.f32 %v8177_v6, %v1526_v1  ;;  %v1528_v13 = vpop.f32.mrb[51].mxu0 }
 0x1a2   : > { %v2146_v33 = vrot.slane %v1847_v53, 5  ;;  %v2145_v39 = vsel %vm2142_vm3, %v2143_v45, %v2144_v38  ;;  %v8351_v53 = vpop.f32.mrb[60].mxu1 }
 0x1a4   : > { %v2147_v41 = vsel %vm2142_vm3, %v2144_v38, %v2146_v33 }
 0x1a5   : > { %v1531_v42 = vpop.f32.mrb[52].mxu0  ;;  %v6859_v0 = vpack.i.bf16 %v2147_v41, %v2145_v39  ;;  %v8353_v39 = vpop.f32.mrb[61].mxu1 }
 0x1a6   : > { %v1852_v2 = vadd.f32 %v8166_v62, %v1531_v42  ;;  %v1533_v51 = vpop.f32.mrb[53].mxu0 }
 0x1a7   : > { %6860 = vrot.lane.b32.xlu1 %v6859_v0, %s7587_s21  ;;  %v1534_v26 = vpop.f32.mrb[54].mxu0  ;;  %v8356_v0 = vpop.f32.mrb[62].mxu1 }
 0x1a8   : > { %v2148_v50 = vrot.slane %v1852_v2, 5  ;;  %v1855_v27 = vadd.f32 %v8175_v5, %v1534_v26  ;;  %v1536_v55 = vpop.f32.mrb[55].mxu0  ;;  %v8359_v42 = vpop.f32.mrb[63].mxu1 }
 0x1aa   : > { %v2150_v6 = vrot.slane %v1855_v27, 5  ;;  %v2149_v1 = vsel %vm2142_vm3, %v2146_v33, %v2148_v50  ;;  %v7367_v27 = vld [vmem:[%s10470_s2] ss:$8 sps:$4 sm:$0xff]  }
 0x1ac   : > { %v2151_v45 = vsel %vm2142_vm3, %v2148_v50, %v2150_v6 }
 0x1ad   : > { %v1539_v38 = vpop.f32.mrb[56].mxu0  ;;  %v6864_v13 = vpack.i.bf16 %v2151_v45, %v2149_v1 }
 0x1ae   : > { %v1860_v62 = vadd.f32 %v8189_v14, %v1539_v38  ;;  %v1541_v41 = vpop.f32.mrb[57].mxu0  ;;  %v7369_v14 = vld [vmem:[%s10470_s2 + $0x4] ss:$8 sps:$4 sm:$0xff]  }
 0x1af   : > { %6865 = vrot.lane.b32.xlu0 %v6864_v13, %s7587_s21  ;;  %v1542_v5 = vpop.f32.mrb[58].mxu0  ;;  %2561 = vmatprep.subr.bf16.mxu1 %v7369_v14 }
 0x1b0   : > { %v2152_v2 = vrot.slane %v1860_v62, 5  ;;  %v1863_v33 = vadd.f32 %v8196_v18, %v1542_v5  ;;  %v1544_v50 = vpop.f32.mrb[59].mxu0  ;;  %2562 = vmatpush1.bf16.msra.mxu1 %v7367_v27  ;;  %v8373_v5 = vpop.f32.mrb[64].mxu1 }
 0x1b1   : > { %v8375_v50 = vpop.f32.mrb[65].mxu1 }
 0x1b2   : > { %v2154_v51 = vrot.slane %v1863_v33, 5  ;;  %v2153_v26 = vsel %vm2142_vm3, %v2150_v6, %v2152_v2 }
 0x1b4   : > { %v2155_v55 = vsel %vm2142_vm3, %v2152_v2, %v2154_v51 }
 0x1b5   : > { %v1547_v1 = vpop.f32.mrb[60].mxu0  ;;  %v6869_v45 = vpack.i.bf16 %v2155_v55, %v2153_v26  ;;  %v8380_v26 = vpop.f32.mrb[66].mxu1 }
 0x1b6   : > { %v1868_v18 = vadd.f32 %v8184_v11, %v1547_v1  ;;  %v1549_v38 = vpop.f32.mrb[61].mxu0  ;;  %v8385_v27 = vpop.f32.mrb[67].mxu1 }
 0x1b7   : > { %6870 = vrot.lane.b32.xlu0 %v6869_v45, %s7587_s21  ;;  %v1550_v6 = vpop.f32.mrb[62].mxu0 }
 0x1b8   : > { %v2156_v13 = vrot.slane %v1868_v18, 5  ;;  %v1871_v62 = vadd.f32 %v8194_v17, %v1550_v6  ;;  %v1552_v41 = vpop.f32.mrb[63].mxu0 }
 0x1ba   : > { %v2158_v33 = vrot.slane %v1871_v62, 5  ;;  %v8378_v2 = vsel %vm2142_vm3, %v2154_v51, %v2156_v13  ;;  %v2193_v18 = vrot.slane %v1871_v62, 4 }
 0x1bc   : > { %v8383_v11 = vsel %vm2142_vm3, %v2156_v13, %v2158_v33  ;;  %vm3062_vm3 = vcmask 1047552  }
 0x1bd   : > { %v1555_v14 = vpop.f32.mrb[64].mxu0 }
 0x1be   : > { %v1876_v55 = vadd.f32 %v8209_v28, %v1555_v14  ;;  %v1557_v1 = vpop.f32.mrb[65].mxu0 }
 0x1bf   : > { %v1558_v45 = vpop.f32.mrb[66].mxu0 }
 0x1c0   : > { %v2194_v38 = vrot.slane %v1876_v55, 4  ;;  %v1879_v51 = vadd.f32 %v8216_v36, %v1558_v45  ;;  %v1560_v6 = vpop.f32.mrb[67].mxu0 }
 0x1c2   : > { %v2196_v41 = vrot.slane %v1879_v51, 4  ;;  %v2195_v13 = vsel %vm2192_vm4, %v2193_v18, %v2194_v38  ;;  %v8398_v18 = vpop.f32.mrb[68].mxu1 }
 0x1c3   : > { %v8400_v6 = vpop.f32.mrb[69].mxu1 }
 0x1c4   : > { %v2197_v33 = vsel %vm2192_vm4, %v2194_v38, %v2196_v41 }
 0x1c5   : > { %v1563_v9 = vpop.f32.mrb[68].mxu0  ;;  %v6874_v20 = vpack.i.bf16 %v2197_v33, %v2195_v13  ;;  %v7372_v33 = vld [vmem:[%s10470_s2 + $0x14] ss:$8 sps:$4 sm:$0xff]  }
 0x1c6   : > { %v1884_v30 = vadd.f32 %v8204_v24, %v1563_v9  ;;  %v1565_v17 = vpop.f32.mrb[69].mxu0  ;;  %2563 = vmatprep.subr.bf16.mxu1 %v7372_v33 }
 0x1c7   : > { %6875 = vrot.lane.b32.xlu1 %v6874_v20, %s10405_s26  ;;  %v1566_v28 = vpop.f32.mrb[70].mxu0  ;;  %v6728_v20 = vpop.f32.mrb[70].mxu1 }
 0x1c8   : > { %v2198_v14 = vrot.slane %v1884_v30, 4  ;;  %v1887_v62 = vadd.f32 %v8214_v23, %v1566_v28  ;;  %v1568_v55 = vpop.f32.mrb[71].mxu0 }
 0x1ca   : > { %v2200_v36 = vrot.slane %v1887_v62, 4  ;;  %v2199_v1 = vsel %vm2192_vm4, %v2196_v41, %v2198_v14  ;;  %v7370_v41 = vld [vmem:[%s10470_s2 + $0x10] ss:$8 sps:$4 sm:$0xff]  }
 0x1cb   : > { %2564 = vmatpush1.bf16.msra.mxu1 %v7370_v41 }
 0x1cc   : > { %v2201_v45 = vsel %vm2192_vm4, %v2198_v14, %v2200_v36 }
 0x1cd   : > { %v1571_v38 = vpop.f32.mrb[72].mxu0  ;;  %v6879_v51 = vpack.i.bf16 %v2201_v45, %v2199_v1  ;;  %v8414_v45 = vpop.f32.mrb[71].mxu1 }
 0x1ce   : > { %v1892_v24 = vadd.f32 %v8227_v52, %v1571_v38  ;;  %v1573_v9 = vpop.f32.mrb[73].mxu0 }
 0x1cf   : > { %6880 = vrot.lane.b32.xlu1 %v6879_v51, %s10405_s26  ;;  %v1574_v30 = vpop.f32.mrb[74].mxu0 }
 0x1d0   : > { %v2202_v23 = vrot.slane %v1892_v24, 4  ;;  %v1895_v17 = vadd.f32 %v8232_v31, %v1574_v30  ;;  %v1576_v13 = vpop.f32.mrb[75].mxu0 }
 0x1d2   : > { %v2204_v28 = vrot.slane %v1895_v17, 4  ;;  %v2203_v52 = vsel %vm2192_vm4, %v2200_v36, %v2202_v23 }
 0x1d4   : > { %v2205_v14 = vsel %vm2192_vm4, %v2202_v23, %v2204_v28 }
 0x1d5   : > { %v1579_v62 = vpop.f32.mrb[76].mxu0  ;;  %v6884_v55 = vpack.i.bf16 %v2205_v14, %v2203_v52 }
 0x1d6   : > { %v1900_v31 = vadd.f32 %v8222_v49, %v1579_v62  ;;  %v1581_v1 = vpop.f32.mrb[77].mxu0 }
 0x1d7   : > { %6885 = vrot.lane.b32.xlu1 %v6884_v55, %s10405_s26  ;;  %v1582_v38 = vpop.f32.mrb[78].mxu0 }
 0x1d8   : > { %v2206_v51 = vrot.slane %v1900_v31, 4  ;;  %v1903_v24 = vadd.f32 %v8230_v61, %v1582_v38  ;;  %v1584_v9 = vpop.f32.mrb[79].mxu0 }
 0x1da   : > { %v2208_v20 = vrot.slane %v1903_v24, 4  ;;  %v8419_v36 = vsel %vm2192_vm4, %v2204_v28, %v2206_v51  ;;  %v2243_v33 = vrot.slane %v1903_v24, 3 }
 0x1dc   : > { %v8422_v30 = vsel %vm2192_vm4, %v2206_v51, %v2208_v20 }
 0x1dd   : > { %v1587_v23 = vpop.f32.mrb[80].mxu0  ;;  %v6959_v49 = vpack.i.bf16 %v8422_v30, %v8419_v36 }
 0x1de   : > { %v1908_v17 = vadd.f32 %v8247_v22, %v1587_v23  ;;  %v1589_v13 = vpop.f32.mrb[81].mxu0 }
 0x1df   : > { %v1590_v41 = vpop.f32.mrb[82].mxu0  ;;  %v7373_v13 = vld [vmem:[%s10470_s2 + $0x20] ss:$8 sps:$4 sm:$0xff]  }
 0x1e0   : > { %v2244_v52 = vrot.slane %v1908_v17, 3  ;;  %v1911_v61 = vadd.f32 %v8252_v40, %v1590_v41  ;;  %v1592_v14 = vpop.f32.mrb[83].mxu0 }
 0x1e2   : > { %v2246_v62 = vrot.slane %v1911_v61, 3  ;;  %v2245_v28 = vsel %vm2242_vm5, %v2243_v33, %v2244_v52 }
 0x1e4   : > { %v2247_v55 = vsel %vm2242_vm5, %v2244_v52, %v2246_v62 }
 0x1e5   : > { %v1595_v31 = vpop.f32.mrb[84].mxu0  ;;  %v6889_v1 = vpack.i.bf16 %v2247_v55, %v2245_v28 }
 0x1e6   : > { %v1916_v38 = vadd.f32 %v8241_v16, %v1595_v31  ;;  %v1597_v51 = vpop.f32.mrb[85].mxu0  ;;  %v7375_v16 = vld [vmem:[%s10470_s2 + $0x24] ss:$8 sps:$4 sm:$0xff]  }
 0x1e7   : > { %6890 = vrot.lane.b32.xlu0 %v6889_v1, %s7589_s30  ;;  %v1598_v22 = vpop.f32.mrb[86].mxu0  ;;  %2565 = vmatprep.subr.bf16.mxu1 %v7375_v16 }
 0x1e8   : > { %v2248_v9 = vrot.slane %v1916_v38, 3  ;;  %v1919_v24 = vadd.f32 %v8250_v34, %v1598_v22  ;;  %v1600_v20 = vpop.f32.mrb[87].mxu0  ;;  %2566 = vmatpush1.bf16.msra.mxu1 %v7373_v13 }
 0x1ea   : > { %v2250_v40 = vrot.slane %v1919_v24, 3  ;;  %v2249_v23 = vsel %vm2242_vm5, %v2246_v62, %v2248_v9 }
 0x1ec   : > { %v2251_v17 = vsel %vm2242_vm5, %v2248_v9, %v2250_v40 }
 0x1ed   : > { %v1603_v41 = vpop.f32.mrb[88].mxu0  ;;  %v6894_v33 = vpack.i.bf16 %v2251_v17, %v2249_v23 }
 0x1ee   : > { %v1924_v52 = vadd.f32 %v8266_v4, %v1603_v41  ;;  %v1605_v61 = vpop.f32.mrb[89].mxu0 }
 0x1ef   : > { %6895 = vrot.lane.b32.xlu0 %v6894_v33, %s7589_s30  ;;  %v1606_v34 = vpop.f32.mrb[90].mxu0 }
 0x1f0   : > { %v2252_v14 = vrot.slane %v1924_v52, 3  ;;  %v1927_v62 = vadd.f32 %v8271_v12, %v1606_v34  ;;  %v1608_v28 = vpop.f32.mrb[91].mxu0 }
 0x1f2   : > { %v2254_v55 = vrot.slane %v1927_v62, 3  ;;  %v2253_v31 = vsel %vm2242_vm5, %v2250_v40, %v2252_v14 }
 0x1f4   : > { %v2255_v1 = vsel %vm2242_vm5, %v2252_v14, %v2254_v55 }
 0x1f5   : > { %v1611_v38 = vpop.f32.mrb[92].mxu0  ;;  %v6899_v51 = vpack.i.bf16 %v2255_v1, %v2253_v31 }
 0x1f6   : > { %v1932_v22 = vadd.f32 %v8260_v60, %v1611_v38  ;;  %v1613_v4 = vpop.f32.mrb[93].mxu0 }
 0x1f7   : > { %6900 = vrot.lane.b32.xlu0 %v6899_v51, %s7589_s30  ;;  %v1614_v9 = vpop.f32.mrb[94].mxu0 }
 0x1f8   : > { %v2256_v24 = vrot.slane %v1932_v22, 3  ;;  %v1935_v20 = vadd.f32 %v8269_v10, %v1614_v9  ;;  %v1616_v23 = vpop.f32.mrb[95].mxu0 }
 0x1fa   : > { %v2258_v17 = vrot.slane %v1935_v20, 3  ;;  %v8450_v12 = vsel %vm2242_vm5, %v2254_v55, %v2256_v24  ;;  %v2293_v52 = vrot.slane %v1935_v20, 2  ;;  %v7376_v55 = vld [vmem:[%s10470_s2 + $0x30] ss:$8 sps:$4 sm:$0xff]  }
 0x1fc   : > { %v8453_v40 = vsel %vm2242_vm5, %v2256_v24, %v2258_v17  ;;  %vm3040_vm5 = vcmask 515072  }
 0x1fd   : > { %v1619_v13 = vpop.f32.mrb[96].mxu0  ;;  %v6964_v16 = vpack.i.bf16 %v8453_v40, %v8450_v12 }
 0x1fe   : > { %v1940_v60 = vadd.f32 %v8292_v7, %v1619_v13  ;;  %v1621_v41 = vpop.f32.mrb[97].mxu0  ;;  %v7378_v7 = vld [vmem:[%s10470_s2 + $0x34] ss:$8 sps:$4 sm:$0xff]  }
 0x1ff   : > { %v1622_v33 = vpop.f32.mrb[98].mxu0  ;;  %2567 = vmatprep.subr.bf16.mxu1 %v7378_v7 }
 0x200   : > { %v2294_v61 = vrot.slane %v1940_v60, 2  ;;  %v1943_v10 = vadd.f32 %v8299_v25, %v1622_v33  ;;  %v1624_v34 = vpop.f32.mrb[99].mxu0  ;;  %2568 = vmatpush1.bf16.msra.mxu1 %v7376_v55 }
 0x202   : > { %v2296_v14 = vrot.slane %v1943_v10, 2  ;;  %v2295_v62 = vsel %vm2292_vm6, %v2293_v52, %v2294_v61 }
 0x204   : > { %v2297_v28 = vsel %vm2292_vm6, %v2294_v61, %v2296_v14 }
 0x205   : > { %v1627_v31 = vpop.f32.mrb[100].mxu0  ;;  %v6904_v1 = vpack.i.bf16 %v2297_v28, %v2295_v62 }
 0x206   : > { %v1948_v38 = vadd.f32 %v8287_v35, %v1627_v31  ;;  %v1629_v51 = vpop.f32.mrb[101].mxu0 }
 0x207   : > { %6905 = vrot.lane.b32.xlu1 %v6904_v1, %s10403_s22  ;;  %v1630_v25 = vpop.f32.mrb[102].mxu0 }
 0x208   : > { %v2298_v22 = vrot.slane %v1948_v38, 2  ;;  %v1951_v4 = vadd.f32 %v8297_v19, %v1630_v25  ;;  %v1632_v9 = vpop.f32.mrb[103].mxu0 }
 0x20a   : > { %v2300_v24 = vrot.slane %v1951_v4, 2  ;;  %v2299_v20 = vsel %vm2292_vm6, %v2296_v14, %v2298_v22 }
 0x20c   : > { %v2301_v23 = vsel %vm2292_vm6, %v2298_v22, %v2300_v24 }
 0x20d   : > { %v1635_v17 = vpop.f32.mrb[104].mxu0  ;;  %v6909_v13 = vpack.i.bf16 %v2301_v23, %v2299_v20 }
 0x20e   : > { %v1956_v35 = vadd.f32 %v8312_v46, %v1635_v17  ;;  %v1637_v60 = vpop.f32.mrb[105].mxu0 }
 0x20f   : > { %6910 = vrot.lane.b32.xlu1 %v6909_v13, %s10403_s22  ;;  %v1638_v41 = vpop.f32.mrb[106].mxu0  ;;  %v2496_v60 = vld [vmem:[%s10470_s2 + $0x40] sm:$0xff]  ;;  %s10484_s2 = smov 80  }
 0x210   : > { %v2302_v33 = vrot.slane %v1956_v35, 2  ;;  %v1959_v52 = vadd.f32 %v8318_v21, %v1638_v41  ;;  %v1640_v61 = vpop.f32.mrb[107].mxu0 }
 0x212   : > { %v2304_v10 = vrot.slane %v1959_v52, 2  ;;  %v2303_v19 = vsel %vm2292_vm6, %v2300_v24, %v2302_v33  ;;  %v6298_v52 = vcombine.low %v2496_v60, %v2496_v60 }
 0x214   : > { %v2305_v34 = vsel %vm2292_vm6, %v2302_v33, %v2304_v10 }
 0x215   : > { %v1643_v14 = vpop.f32.mrb[108].mxu0  ;;  %v6914_v62 = vpack.i.bf16 %v2305_v34, %v2303_v19  ;;  %v2556_v19 = vsel %vm2192_vm4, %v6298_v52, 0 }
 0x216   : > { %v1964_v28 = vadd.f32 %v8310_v29, %v1643_v14  ;;  %v1645_v55 = vpop.f32.mrb[109].mxu0 }
 0x217   : > { %6915 = vrot.lane.b32.xlu1 %v6914_v62, %s10403_s22  ;;  %v1646_v46 = vpop.f32.mrb[110].mxu0 }
 0x218   : > { %v2306_v7 = vrot.slane %v1964_v28, 2  ;;  %v1967_v31 = vadd.f32 %v8315_v43, %v1646_v46  ;;  %v1648_v1 = vpop.f32.mrb[111].mxu0 }
 0x21a   : > { %v2308_v38 = vrot.slane %v1967_v31, 2  ;;  %v8481_v21 = vsel %vm2292_vm6, %v2304_v10, %v2306_v7  ;;  %v2342_v24 = vrot.slane %v1967_v31, 1 }
 0x21c   : > { %v8484_v51 = vsel %vm2292_vm6, %v2306_v7, %v2308_v38 }
 0x21d   : > { %v1651_v25 = vpop.f32.mrb[112].mxu0  ;;  %v6974_v22 = vpack.i.bf16 %v8484_v51, %v8481_v21 }
 0x21e   : > { %v1972_v29 = vadd.f32 %v8334_v48, %v1651_v25  ;;  %v1653_v4 = vpop.f32.mrb[113].mxu0  ;;  %v6299_v48 = vcombine.high %v2496_v60, %v2496_v60 }
 0x21f   : > { %v1654_v9 = vpop.f32.mrb[114].mxu0 }
 0x220   : > { %v2343_v20 = vrot.slane %v1972_v29, 1  ;;  %v1975_v43 = vadd.f32 %v8341_v58, %v1654_v9  ;;  %v1656_v23 = vpop.f32.mrb[115].mxu0  ;;  %6300 = vmatprep.subr.msk.bf16.mxu1 %vm2192_vm4, %v6299_v48 }
 0x221   : > { %2570 = vmatpush1.bf16.msra.mxu1 %v2556_v19 }
 0x222   : > { %v2345_v17 = vrot.slane %v1975_v43, 1  ;;  %v2344_v13 = vsel %vm2341_vm7, %v2342_v24, %v2343_v20 }
 0x224   : > { %v2346_v35 = vsel %vm2341_vm7, %v2343_v20, %v2345_v17 }
 0x225   : > { %v1659_v41 = vpop.f32.mrb[116].mxu0  ;;  %v6919_v33 = vpack.i.bf16 %v2346_v35, %v2344_v13 }
 0x226   : > { %v1980_v61 = vadd.f32 %v8329_v44, %v1659_v41  ;;  %v1661_v10 = vpop.f32.mrb[117].mxu0  ;;  %v10471_v44 = vpack.i.bf16 %v8290_v63, %v8285_v32  ;;  %v10472_v41 = vpack.i.bf16 %v8383_v11, %v8378_v2 }
 0x227   : > { %6920 = vrot.lane.b32.xlu0 %v6919_v33, %s7591_s0  ;;  %v1662_v58 = vpop.f32.mrb[118].mxu0 }
 0x228   : > { %v2347_v34 = vrot.slane %v1980_v61, 1  ;;  %v1983_v14 = vadd.f32 %v8339_v56, %v1662_v58  ;;  %v1664_v62 = vpop.f32.mrb[119].mxu0 }
 0x22a   : > { %v2349_v28 = vrot.slane %v1983_v14, 1  ;;  %v2348_v55 = vsel %vm2341_vm7, %v2345_v17, %v2347_v34 }
 0x22b   : > { %6925 = vrot.lane.b32.xlu0 %v10471_v44, %s7585_s19  ;;  %s10401_s19 = smov 64  }
 0x22c   : > { %v2350_v46 = vsel %vm2341_vm7, %v2347_v34, %v2349_v28 }
 0x22d   : > { %v1667_v7 = vpop.f32.mrb[120].mxu0  ;;  %v6929_v31 = vpack.i.bf16 %v2350_v46, %v2348_v55 }
 0x22e   : > { %v1988_v1 = vadd.f32 %v8353_v39, %v1667_v7  ;;  %v1669_v38 = vpop.f32.mrb[121].mxu0  ;;  %v8547_v7 = vpop.permute.xlu1 %6850 }
 0x22f   : > { %6930 = vrot.lane.b32.xlu0 %v6929_v31, %s7591_s0  ;;  %v1670_v56 = vpop.f32.mrb[122].mxu0 }
 0x230   : > { %v2351_v25 = vrot.slane %v1988_v1, 1  ;;  %v1991_v29 = vadd.f32 %v8359_v42, %v1670_v56  ;;  %v1672_v4 = vpop.f32.mrb[123].mxu0 }
 0x232   : > { %v2353_v9 = vrot.slane %v1991_v29, 1  ;;  %v2352_v24 = vsel %vm2341_vm7, %v2349_v28, %v2351_v25 }
 0x234   : > { %v2354_v32 = vsel %vm2341_vm7, %v2351_v25, %v2353_v9 }
 0x235   : > { %v1675_v63 = vpop.f32.mrb[124].mxu0  ;;  %v6934_v20 = vpack.i.bf16 %v2354_v32, %v2352_v24 }
 0x236   : > { %v1996_v43 = vadd.f32 %v8351_v53, %v1675_v63  ;;  %v1677_v23 = vpop.f32.mrb[125].mxu0 }
 0x237   : > { %6935 = vrot.lane.b32.xlu0 %v6934_v20, %s7591_s0  ;;  %v1678_v39 = vpop.f32.mrb[126].mxu0 }
 0x238   : > { %v2355_v17 = vrot.slane %v1996_v43, 1  ;;  %v1999_v13 = vadd.f32 %v8356_v0, %v1678_v39  ;;  %v1680_v35 = vpop.f32.mrb[127].mxu0 }
 0x23a   : > { %v2356_v42 = vsel %vm2341_vm7, %v2353_v9, %v2355_v17 }
 0x23b   : > { %v6979_v60 = vpack.i.bf16 %v2355_v17, %v2356_v42  ;;  %6950 = vrot.lane.b32.xlu0 %v10472_v41, %s7587_s21  ;;  %s10399_s21 = smov 80  }
 0x23d   : > { %v1683_v33 = vpop.f32.mrb[128].mxu0 }
 0x23e   : > { %v2004_v48 = vadd.f32 %v8375_v50, %v1683_v33  ;;  %v1685_v53 = vpop.f32.mrb[129].mxu0  ;;  %v10473_v50 = vpack.i.bf16 %v8332_v37, %v8327_v57  ;;  %v6853_v33 = vunpack.i.h.bf16 %v8547_v7 }
 0x23f   : > { %6965 = vrot.lane.b32.xlu0 %v6964_v16, %s7589_s30  ;;  %v1686_v52 = vpop.f32.mrb[130].mxu0 }
 0x240   : > { %v6939_v0 = vpack.i.bf16 %v2004_v48, %v1999_v13  ;;  %v2007_v61 = vadd.f32 %v8385_v27, %v1686_v52  ;;  %v1688_v10 = vpop.f32.mrb[131].mxu0 }
 0x242   : > { %6940 = vrot.lane.b32.xlu1 %v6939_v0, %s10401_s19 }
 0x243   : > { %6980 = vrot.lane.b32.xlu0 %v6979_v60, %s7591_s0  ;;  %s10397_s0 = smov 96  }
 0x245   : > { %v1691_v2 = vpop.f32.mrb[132].mxu0 }
 0x246   : > { %v2012_v11 = vadd.f32 %v8373_v5, %v1691_v2  ;;  %6945 = vrot.lane.b32.xlu1 %v10473_v50, %s10407_s24  ;;  %v1693_v12 = vpop.f32.mrb[133].mxu0 }
 0x247   : > { %v1694_v40 = vpop.f32.mrb[134].mxu0 }
 0x248   : > { %v6954_v16 = vpack.i.bf16 %v2012_v11, %v2007_v61  ;;  %v2015_v58 = vadd.f32 %v8380_v26, %v1694_v40  ;;  %v1696_v27 = vpop.f32.mrb[135].mxu0 }
 0x24a   : > { %6955 = vrot.lane.b32.xlu1 %v6954_v16, %s10401_s19 }
 0x24d   : > { %v1699_v19 = vpop.f32.mrb[136].mxu0 }
 0x24e   : > { %v2020_v34 = vadd.f32 %v8400_v6, %v1699_v19  ;;  %6960 = vrot.lane.b32.xlu1 %v6959_v49, %s10405_s26  ;;  %v1701_v5 = vpop.f32.mrb[137].mxu0  ;;  %v6831_v49 = vpop.permute.xlu0 %6830 }
 0x24f   : > { %v1702_v14 = vpop.f32.mrb[138].mxu0  ;;  %v6833_v9 = vunpack.i.h.bf16 %v6831_v49  ;;  %v6832_v32 = vunpack.i.l.bf16 %v6831_v49 }
 0x250   : > { %v6969_v57 = vpack.i.bf16 %v2020_v34, %v2015_v58  ;;  %v1704_v37 = vpop.f32.mrb[139].mxu0  ;;  %v2023_v62 = vadd.f32 %v8414_v45, %v1702_v14 }
 0x251   : > { %v2415_v17 = vsel %vm2413_vm8, %v8155_v54, %v6833_v9  ;;  %v2414_v42 = vsel %vm2413_vm8, %v8143_v47, %v6832_v32 }
 0x252   : > { %6970 = vrot.lane.b32.xlu1 %v6969_v57, %s10401_s19  ;;  %v6836_v44 = vpop.permute.xlu0 %6835 }
 0x253   : > { %v6838_v63 = vunpack.i.h.bf16 %v6836_v44  ;;  %v6837_v20 = vunpack.i.l.bf16 %v6836_v44 }
 0x255   : > { %v1707_v26 = vpop.f32.mrb[140].mxu0  ;;  %v2417_v60 = vsel %vm2413_vm8, %v8173_v3, %v6838_v63  ;;  %v2416_v41 = vsel %vm2413_vm8, %v8161_v59, %v6837_v20  ;;  %v6852_v59 = vunpack.i.l.bf16 %v8547_v7 }
 0x256   : > { %v2028_v28 = vadd.f32 %v8398_v18, %v1707_v26  ;;  %6975 = vrot.lane.b32.xlu1 %v6974_v22, %s10403_s22  ;;  %v1709_v6 = vpop.f32.mrb[141].mxu0  ;;  %v6841_v46 = vpop.permute.xlu0 %6840 }
 0x257   : > { %v1710_v55 = vpop.f32.mrb[142].mxu0  ;;  %v8551_v18 = vpop.permute.xlu1 %6855  ;;  %v6843_v43 = vunpack.i.h.bf16 %v6841_v46  ;;  %v6842_v23 = vunpack.i.l.bf16 %v6841_v46 }
 0x258   : > { %v6984_v36 = vpack.i.bf16 %v2028_v28, %v2023_v62  ;;  %v1711_v30 = vpop.f32.mrb[143].mxu0  ;;  %v6858_v12 = vunpack.i.h.bf16 %v8551_v18  ;;  %v6857_v34 = vunpack.i.l.bf16 %v8551_v18 }
 0x259   : > { %v2419_v54 = vsel %vm2413_vm8, %v8192_v15, %v6843_v43  ;;  %v2418_v53 = vsel %vm2413_vm8, %v8179_v8, %v6842_v23  ;;  %v2426_v15 = vsel %vm2422_vm9, %v2417_v60, %v6853_v33  ;;  %v10474_v33 = vmov 0  }
 0x25a   : > { %6985 = vrot.lane.b32.xlu1 %v6984_v36, %s10401_s19  ;;  %v6846_v45 = vpop.permute.xlu0 %6845  ;;  %v2428_v63 = vsel %vm2422_vm9, %v2419_v54, %v6858_v12  ;;  %v2427_v20 = vsel %vm2422_vm9, %v2418_v53, %v6857_v34 }
 0x25b   : > { %v6861_v21 = vpop.permute.xlu1 %6860  ;;  %v6848_v39 = vunpack.i.h.bf16 %v6846_v45  ;;  %v6847_v13 = vunpack.i.l.bf16 %v6846_v45 }
 0x25c   : > { %v6863_v52 = vunpack.i.h.bf16 %v6861_v21  ;;  %v6862_v0 = vunpack.i.l.bf16 %v6861_v21 }
 0x25d   : > { %v2424_v47 = vsel %vm2422_vm9, %v2415_v17, %v6848_v39  ;;  %v2423_v3 = vsel %vm2422_vm9, %v2414_v42, %v6847_v13 }
 0x25e   : > { %v8549_v31 = vpop.permute.xlu0 %6865  ;;  %v2433_v16 = vsel %vm2431_vm10, %v2424_v47, %v6863_v52  ;;  %v2432_v58 = vsel %vm2431_vm10, %v2423_v3, %v6862_v0 }
 0x25f   : > { %v6876_v22 = vpop.permute.xlu1 %6875  ;;  %v6868_v37 = vunpack.i.h.bf16 %v8549_v31  ;;  %v6867_v62 = vunpack.i.l.bf16 %v8549_v31 }
 0x260   : > { %v6878_v61 = vunpack.i.h.bf16 %v6876_v22  ;;  %v6877_v10 = vunpack.i.l.bf16 %v6876_v22  ;;  %v2425_v22 = vsel %vm2422_vm9, %v2416_v41, %v6852_v59 }
 0x261   : > { %v2435_v23 = vsel %vm2431_vm10, %v2426_v15, %v6868_v37  ;;  %v2434_v39 = vsel %vm2431_vm10, %v2425_v22, %v6867_v62  ;;  %v10475_v37 = vld [vmem:[#allocation12_spill] sm:$0xff] }
 0x262   : > { %v8553_v1 = vpop.permute.xlu0 %6870  ;;  %v2442_v5 = vsel %vm2440_vm11, %v2433_v16, %v6878_v61  ;;  %v2441_v14 = vsel %vm2440_vm11, %v2432_v58, %v6877_v10 }
 0x263   : > { %v8557_v56 = vpop.permute.xlu1 %6880  ;;  %v6873_v44 = vunpack.i.h.bf16 %v8553_v1  ;;  %v6872_v42 = vunpack.i.l.bf16 %v8553_v1 }
 0x264   : > { %v6883_v7 = vunpack.i.h.bf16 %v8557_v56  ;;  %v6882_v31 = vunpack.i.l.bf16 %v8557_v56 }
 0x265   : > { %v2436_v16 = vsel %vm2431_vm10, %v2427_v20, %v6872_v42 }
 0x266   : > { %v6891_v51 = vpop.permute.xlu0 %6890  ;;  %v2444_v60 = vsel %vm2440_vm11, %v2435_v23, %v6883_v7  ;;  %v2443_v41 = vsel %vm2440_vm11, %v2434_v39, %v6882_v31 }
 0x267   : > { %v8561_v29 = vpop.permute.xlu1 %6885  ;;  %v6893_v2 = vunpack.i.h.bf16 %v6891_v51  ;;  %v6892_v11 = vunpack.i.l.bf16 %v6891_v51 }
 0x268   : > { %v6887_v54 = vunpack.i.l.bf16 %v8561_v29 }
 0x269   : > { %v2451_v26 = vsel %vm2449_vm12, %v2442_v5, %v6893_v2  ;;  %v2450_v28 = vsel %vm2449_vm12, %v2441_v14, %v6892_v11 }
 0x26a   : > { %v8555_v38 = vpop.permute.xlu0 %6895  ;;  %v2445_v5 = vsel %vm2440_vm11, %v2436_v16, %v6887_v54 }
 0x26b   : > { %v6897_v9 = vunpack.i.l.bf16 %v8555_v38 }
 0x26d   : > { %v2452_v52 = vsel %vm2449_vm12, %v2443_v41, %v6897_v9 }
 0x26e   : > { %v8559_v25 = vpop.permute.xlu0 %6900 }
 0x26f   : > { %v6903_v58 = vunpack.i.h.bf16 %v8559_v25 }
 0x279   : > { %v6906_v24 = vpop.permute.xlu1 %6905 }
 0x27a   : > { %v6908_v8 = vunpack.i.h.bf16 %v6906_v24  ;;  %v6907_v40 = vunpack.i.l.bf16 %v6906_v24 }
 0x27c   : > { %v2460_v55 = vsel %vm2458_vm13, %v2451_v26, %v6908_v8  ;;  %v2459_v36 = vsel %vm2458_vm13, %v2450_v28, %v6907_v40  ;;  %v10476_v26 = vld [vmem:[#allocation11_spill] sm:$0xff] }
 0x281   : > { %v8565_v35 = vpop.permute.xlu1 %6910 }
 0x282   : > { %v6913_v56 = vunpack.i.h.bf16 %v8565_v35  ;;  %v6912_v43 = vunpack.i.l.bf16 %v8565_v35  ;;  %v6888_v35 = vunpack.i.h.bf16 %v8561_v29 }
 0x284   : > { %v2461_v61 = vsel %vm2458_vm13, %v2452_v52, %v6912_v43 }
 0x289   : > { %v8583_v50 = vpop.permute.xlu1 %6915 }
 0x28a   : > { %v6918_v14 = vunpack.i.h.bf16 %v8583_v50 }
 0x299   : > { %v6921_v4 = vpop.permute.xlu0 %6920 }
 0x29a   : > { %v6923_v27 = vunpack.i.h.bf16 %v6921_v4  ;;  %v6922_v19 = vunpack.i.l.bf16 %v6921_v4  ;;  %v6898_v4 = vunpack.i.h.bf16 %v8555_v38  ;;  %v2437_v38 = vsel %vm2431_vm10, %v2428_v63, %v6873_v44 }
 0x29c   : > { %v2469_v46 = vsel %vm2467_vm14, %v2460_v55, %v6923_v27  ;;  %v2468_v45 = vsel %vm2467_vm14, %v2459_v36, %v6922_v19  ;;  %v2453_v53 = vsel %vm2449_vm12, %v2444_v60, %v6898_v4  ;;  %v6902_v27 = vunpack.i.l.bf16 %v8559_v25 }
 0x29d   : > { %v8574_v48 = vpop.permute.xlu0 %6925  ;;  %v2462_v47 = vsel %vm2458_vm13, %v2453_v53, %v6913_v56 }
 0x29e   : > { %v6928_v59 = vunpack.i.h.bf16 %v8574_v48  ;;  %v6927_v2 = vunpack.i.l.bf16 %v8574_v48  ;;  %v2446_v48 = vsel %vm2440_vm11, %v2437_v38, %v6888_v35 }
 0x2a0   : > { %v2421_v62 = vsel %vm2413_vm8, %v10475_v37, %v6928_v59  ;;  %v2420_v28 = vsel %vm2413_vm8, %v10476_v26, %v6927_v2  ;;  %vm3236_vm8 = vcmask 916480  }
 0x2a1   : > { %v6931_v57 = vpop.permute.xlu0 %6930 }
 0x2a2   : > { %v6933_v17 = vunpack.i.h.bf16 %v6931_v57  ;;  %v6932_v13 = vunpack.i.l.bf16 %v6931_v57  ;;  %v6917_v57 = vunpack.i.l.bf16 %v8583_v50  ;;  %v2455_v50 = vsel %vm2449_vm12, %v2446_v48, %v6903_v58 }
 0x2a4   : > { %v2471_v11 = vsel %vm2467_vm14, %v2462_v47, %v6933_v17  ;;  %v2470_v29 = vsel %vm2467_vm14, %v2461_v61, %v6932_v13 }
 0x2a9   : > { %v8603_v18 = vpop.permute.xlu0 %6935 }
 0x2aa   : > { %v6937_v25 = vunpack.i.l.bf16 %v8603_v18 }
 0x2ad   : > { %v6951_v1 = vpop.permute.xlu0 %6950 }
 0x2ae   : > { %v6952_v7 = vunpack.i.l.bf16 %v6951_v1 }
 0x2b1   : > { %v6966_v55 = vpop.permute.xlu0 %6965 }
 0x2b2   : > { %v6968_v23 = vunpack.i.h.bf16 %v6966_v55  ;;  %v6967_v39 = vunpack.i.l.bf16 %v6966_v55 }
 0x2b4   : > { %v6941_v6 = vpop.permute.xlu1 %6940 }
 0x2b5   : > { %v6943_v30 = vunpack.i.h.bf16 %v6941_v6  ;;  %v6942_v49 = vunpack.i.l.bf16 %v6941_v6  ;;  %v6938_v6 = vunpack.i.h.bf16 %v8603_v18  ;;  %v2464_v18 = vsel %vm2458_vm13, %v2455_v50, %v6918_v14  ;;  %v6981_v38 = vpop.permute.xlu0 %6980 }
 0x2b6   : > { %v6983_v52 = vunpack.i.h.bf16 %v6981_v38 }
 0x2b7   : > { %v2477_v21 = vsel %vm1284_vm0, %v2469_v46, %v6943_v30  ;;  %v2476_v51 = vsel %vm1284_vm0, %v2468_v45, %v6942_v49  ;;  %v2454_v46 = vsel %vm2449_vm12, %v2445_v5, %v6902_v27  ;;  %v6953_v45 = vunpack.i.h.bf16 %v6951_v1 }
 0x2b8   : > { %v2484_v24 = vpack.c.bf16 %v2477_v21, %v2476_v51  ;;  %v6946_v32 = vpop.permute.xlu1 %6945  ;;  %v2463_v21 = vsel %vm2458_vm13, %v2454_v46, %v6917_v57  ;;  %v2473_v4 = vsel %vm2467_vm14, %v2464_v18, %v6938_v6 }
 0x2b9   : > { %v6948_v15 = vunpack.i.h.bf16 %v6946_v32  ;;  %v6947_v12 = vunpack.i.l.bf16 %v6946_v32  ;;  %v2472_v9 = vsel %vm2467_vm14, %v2463_v21, %v6937_v25 }
 0x2ba   : > { %6301 = vmatmul.mubr.msk.bf16.vlgmr.msra.gmra.mrb[72].mxu1 %vm2542_vm15, %v2484_v24 }
 0x2bb   : > { %2603 = vmatprep.mubr.bf16.mxu1 %v10474_v33  ;;  %v2430_v36 = vsel %vm2422_vm9, %v2421_v62, %v6948_v15  ;;  %v2429_v30 = vsel %vm2422_vm9, %v2420_v28, %v6947_v12 }
 0x2bc   : > { %v6956_v0 = vpop.permute.xlu1 %6955  ;;  %v2438_v24 = vsel %vm2431_vm10, %v2429_v30, %v6952_v7  ;;  %v2439_v32 = vsel %vm2431_vm10, %v2430_v36, %v6953_v45  ;;  %vm3514_vm10 = vcmask 97280  }
 0x2bd   : > { %v6958_v10 = vunpack.i.h.bf16 %v6956_v0  ;;  %v6957_v3 = vunpack.i.l.bf16 %v6956_v0  ;;  %v6982_v0 = vunpack.i.l.bf16 %v6981_v38 }
 0x2bf   : > { %v2479_v8 = vsel %vm1284_vm0, %v2471_v11, %v6958_v10  ;;  %v2478_v40 = vsel %vm1284_vm0, %v2470_v29, %v6957_v3  ;;  %v2636_v29 = vlaneseq }
 0x2c0   : > { %v2485_v19 = vpack.c.bf16 %v2479_v8, %v2478_v40  ;;  %v6961_v34 = vpop.permute.xlu1 %6960  ;;  %v2634_v8 = vld [vmem:[%s10477_s3] ss:$2 sm:$0x3]  ;;  %v6305_v40 = vld [vmem:[%s10477_s3 + $0x1] ss:$2 sm:$0x3] }
 0x2c1   : > { %v6963_v49 = vunpack.i.h.bf16 %v6961_v34  ;;  %v6962_v44 = vunpack.i.l.bf16 %v6961_v34  ;;  %v8674_v15 = vshrl.u32 %v2636_v29, 7  ;;  %s10485_s3 = smov 96  }
 0x2c2   : > { %6302 = vmatmul.mubr.msk.bf16.gmra.mrb[76].mxu1 %vm2542_vm15, %v2485_v19 }
 0x2c3   : > { %2613 = vmatprep.mubr.bf16.mxu1 %v10474_v33  ;;  %v2448_v63 = vsel %vm2440_vm11, %v2439_v32, %v6963_v49  ;;  %v2447_v20 = vsel %vm2440_vm11, %v2438_v24, %v6962_v44  ;;  %v8677_v12 = vsub.s32 0, %v8674_v15  ;;  %v8696_v14 = vsub.s32 1, %v8674_v15 }
 0x2c4   : > { %v6971_v31 = vpop.permute.xlu1 %6970  ;;  %v2456_v41 = vsel %vm2449_vm12, %v2447_v20, %v6967_v39  ;;  %v2457_v35 = vsel %vm2449_vm12, %v2448_v63, %v6968_v23  ;;  %v7596_v39 = vmov 0.0  }
 0x2c5   : > { %v6973_v51 = vunpack.i.h.bf16 %v6971_v31  ;;  %v6972_v22 = vunpack.i.l.bf16 %v6971_v31  ;;  %v8686_v16 = vrot.slane %v2634_v8, %v8677_v12  ;;  %v8689_v58 = vrot.slane %v6305_v40, %v8677_v12  ;;  %6729 = vmatprep.subr.bf16.mxu1 %v7596_v39 }
 0x2c6   : > { %v8704_v28 = vrot.slane %v2634_v8, %v8696_v14  ;;  %v8714_v50 = vrot.slane %v6305_v40, %v8696_v14 }
 0x2c7   : > { %v2481_v56 = vsel %vm1284_vm0, %v2473_v4, %v6973_v51  ;;  %v2480_v43 = vsel %vm1284_vm0, %v2472_v9, %v6972_v22 }
 0x2c8   : > { %v2486_v17 = vpack.c.bf16 %v2481_v56, %v2480_v43  ;;  %v6976_v13 = vpop.permute.xlu1 %6975 }
 0x2c9   : > { %v6978_v42 = vunpack.i.h.bf16 %v6976_v13  ;;  %v6977_v60 = vunpack.i.l.bf16 %v6976_v13 }
 0x2ca   : > { %6303 = vmatmul.mubr.msk.bf16.gmra.mrb[80].mxu1 %vm2542_vm15, %v2486_v17 }
 0x2cb   : > { %v2466_v54 = vsel %vm2458_vm13, %v2457_v35, %v6978_v42  ;;  %v2465_v53 = vsel %vm2458_vm13, %v2456_v41, %v6977_v60  ;;  %2623 = vmatprep.mubr.bf16.mxu1 %v10474_v33 }
 0x2cc   : > { %v6986_v47 = vpop.permute.xlu1 %6985  ;;  %v2474_v10 = vsel %vm2467_vm14, %v2465_v53, %v6982_v0  ;;  %v2475_v3 = vsel %vm2467_vm14, %v2466_v54, %v6983_v52 }
 0x2cd   : > { %v6988_v61 = vunpack.i.h.bf16 %v6986_v47  ;;  %v6987_v1 = vunpack.i.l.bf16 %v6986_v47 }
 0x2cf   : > { %v2483_v59 = vsel %vm1284_vm0, %v2475_v3, %v6988_v61  ;;  %v2482_v2 = vsel %vm1284_vm0, %v2474_v10, %v6987_v1 }
 0x2d0   : > { %v2487_v11 = vpack.c.bf16 %v2483_v59, %v2482_v2 }
 0x2d2   : > { %6304 = vmatmul.mubr.msk.bf16.gmra.mrb[84].mxu1 %vm2542_vm15, %v2487_v11 }
 0x2d3   : > { %6737 = vmatprep.mubr.msk.bf16.mxu1 %vm7597_vm2, %v7596_v39 }
 0x38d   : > { %v2595_v27 = vpop.f32.mrb[72].mxu1 }
 0x38e   : > { %v2646_v19 = vmul.f32 %v8686_v16, %v2595_v27  ;;  %v2597_v34 = vpop.f32.mrb[73].mxu1 }
 0x38f   : > { %v2599_v48 = vpop.f32.mrb[74].mxu1  ;;  %v2647_v44 = vmul.f32 %v8704_v28, %v2597_v34 }
 0x390   : > { %v8693_v5 = vadd.f32 %v8689_v58, %v2646_v19  ;;  %v2648_v57 = vmul.f32 %v8686_v16, %v2599_v48  ;;  %v2601_v37 = vpop.f32.mrb[75].mxu1 }
 0x391   : > { %v2649_v55 = vmul.f32 %v8704_v28, %v2601_v37  ;;  %v8723_v31 = vadd.f32 %v8714_v50, %v2647_v44 }
 0x392   : > { %v8700_v62 = vadd.f32 %v8689_v58, %v2648_v57  ;;  %v2691_v26 = vmax.f32 %v8693_v5, 0.0 }
 0x393   : > { %v8719_v45 = vadd.f32 %v8714_v50, %v2649_v55  ;;  %v2692_v24 = vmax.f32 %v8723_v31, 0.0 }
 0x394   : > { %v2693_v6 = vmax.f32 %v8700_v62, 0.0 }
 0x395   : > { %v2605_v25 = vpop.f32.mrb[76].mxu1  ;;  %v2694_v51 = vmax.f32 %v8719_v45, 0.0 }
 0x396   : > { %v2607_v36 = vpop.f32.mrb[77].mxu1  ;;  %v6989_v30 = vpack.i.bf16 %v2693_v6, %v2691_v26  ;;  %v2650_v18 = vmul.f32 %v8686_v16, %v2605_v25 }
 0x397   : > { %v2609_v49 = vpop.f32.mrb[78].mxu1  ;;  %v7024_v56 = vpack.i.bf16 %v2694_v51, %v2692_v24  ;;  %v2651_v3 = vmul.f32 %v8704_v28, %v2607_v36 }
 0x398   : > { %6990 = vrot.lane.b32.xlu0 %v6989_v30, %s10395_s18  ;;  %v2611_v46 = vpop.f32.mrb[79].mxu1  ;;  %6995 = vrot.lane.b32.xlu1 %v6989_v30, %s10397_s0  ;;  %v2652_v7 = vmul.f32 %v8686_v16, %v2609_v49  ;;  %v8734_v32 = vadd.f32 %v8689_v58, %v2650_v18 }
 0x399   : > { %v2653_v1 = vmul.f32 %v8704_v28, %v2611_v46  ;;  %v8790_v29 = vadd.f32 %v8714_v50, %v2651_v3 }
 0x39a   : > { %v8730_v22 = vadd.f32 %v8689_v58, %v2652_v7  ;;  %v2695_v43 = vmax.f32 %v8734_v32, 0.0 }
 0x39b   : > { %v8786_v2 = vadd.f32 %v8714_v50, %v2653_v1 }
 0x39c   : > { %7010 = vrot.lane.b32.xlu0 %v6989_v30, %s10403_s22  ;;  %7000 = vrot.lane.b32.xlu1 %v6989_v30, %s10399_s21  ;;  %v2697_v20 = vmax.f32 %v8730_v22, 0.0 }
 0x39d   : > { %v2615_v21 = vpop.f32.mrb[80].mxu1  ;;  %v2698_v40 = vmax.f32 %v8786_v2, 0.0 }
 0x39e   : > { %v2617_v4 = vpop.f32.mrb[81].mxu1  ;;  %v7029_v38 = vpack.i.bf16 %v2697_v20, %v2695_v43  ;;  %v2654_v60 = vmul.f32 %v8686_v16, %v2615_v21 }
 0x39f   : > { %v2619_v9 = vpop.f32.mrb[82].mxu1  ;;  %v2655_v48 = vmul.f32 %v8704_v28, %v2617_v4 }
 0x3a0   : > { %7015 = vrot.lane.b32.xlu0 %v6989_v30, %s10405_s26  ;;  %v2621_v63 = vpop.f32.mrb[83].mxu1  ;;  %7005 = vrot.lane.b32.xlu1 %v6989_v30, %s10401_s19  ;;  %v2656_v17 = vmul.f32 %v8686_v16, %v2619_v9  ;;  %v8759_v54 = vadd.f32 %v8689_v58, %v2654_v60 }
 0x3a1   : > { %v2657_v19 = vmul.f32 %v8704_v28, %v2621_v63  ;;  %v8822_v55 = vadd.f32 %v8714_v50, %v2655_v48 }
 0x3a2   : > { %v8756_v35 = vadd.f32 %v8689_v58, %v2656_v17  ;;  %v2699_v52 = vmax.f32 %v8759_v54, 0.0 }
 0x3a3   : > { %v8816_v37 = vadd.f32 %v8714_v50, %v2657_v19  ;;  %v2700_v49 = vmax.f32 %v8822_v55, 0.0 }
 0x3a4   : > { %7020 = vrot.lane.b32.xlu0 %v6989_v30, %s10407_s24  ;;  %7025 = vrot.lane.b32.xlu1 %v7024_v56, %s10395_s18  ;;  %v2701_v53 = vmax.f32 %v8756_v35, 0.0 }
 0x3a5   : > { %v2625_v23 = vpop.f32.mrb[84].mxu1 }
 0x3a6   : > { %v2627_v13 = vpop.f32.mrb[85].mxu1  ;;  %v7064_v47 = vpack.i.bf16 %v2701_v53, %v2699_v52  ;;  %v2658_v61 = vmul.f32 %v8686_v16, %v2625_v23 }
 0x3a7   : > { %v2629_v42 = vpop.f32.mrb[86].mxu1  ;;  %v2659_v57 = vmul.f32 %v8704_v28, %v2627_v13 }
 0x3a8   : > { %7030 = vrot.lane.b32.xlu0 %v7029_v38, %s10395_s18  ;;  %7040 = vrot.lane.b32.xlu1 %v7029_v38, %s10399_s21  ;;  %v2631_v41 = vpop.f32.mrb[87].mxu1  ;;  %v2660_v0 = vmul.f32 %v8686_v16, %v2629_v42  ;;  %v8781_v59 = vadd.f32 %v8689_v58, %v2658_v61 }
 0x3a9   : > { %v2661_v34 = vmul.f32 %v8704_v28, %v2631_v41  ;;  %v8825_v36 = vadd.f32 %v8714_v50, %v2659_v57  ;;  %v2702_v28 = vmax.f32 %v8816_v37, 0.0 }
 0x3aa   : > { %v8777_v10 = vadd.f32 %v8689_v58, %v2660_v0  ;;  %v2703_v8 = vmax.f32 %v8781_v59, 0.0  ;;  %v2696_v58 = vmax.f32 %v8790_v29, 0.0 }
 0x3ab   : > { %v8819_v25 = vadd.f32 %v8714_v50, %v2661_v34  ;;  %v2704_v44 = vmax.f32 %v8825_v36, 0.0  ;;  %v7134_v50 = vpack.i.bf16 %v2702_v28, %v2700_v49  ;;  %v7383_v36 = vld [vmem:[%s10478_s4 + $0x10] sm:$0xff]  }
 0x3ac   : > { %7035 = vrot.lane.b32.xlu0 %v7029_v38, %s10397_s0  ;;  %7045 = vrot.lane.b32.xlu1 %v7029_v38, %s10401_s19  ;;  %v2705_v11 = vmax.f32 %v8777_v10, 0.0  ;;  %v7114_v27 = vpack.i.bf16 %v2698_v40, %v2696_v58 }
 0x3ad   : > { %v2706_v30 = vmax.f32 %v8819_v25, 0.0  ;;  %v7382_v25 = vld [vmem:[%s10478_s4 + $0x8] sm:$0xff]  }
 0x3ae   : > { %v7094_v16 = vpack.i.bf16 %v2705_v11, %v2703_v8 }
 0x3af   : > { %v7144_v46 = vpack.i.bf16 %v2706_v30, %v2704_v44 }
 0x3b0   : > { %7060 = vrot.lane.b32.xlu0 %v7029_v38, %s10407_s24  ;;  %7050 = vrot.lane.b32.xlu1 %v7029_v38, %s10403_s22 }
 0x3b4   : > { %7065 = vrot.lane.b32.xlu0 %v7064_v47, %s10395_s18  ;;  %7055 = vrot.lane.b32.xlu1 %v7029_v38, %s10405_s26 }
 0x3b8   : > { %7070 = vrot.lane.b32.xlu0 %v7064_v47, %s10397_s0  ;;  %7085 = vrot.lane.b32.xlu1 %v7064_v47, %s10403_s22 }
 0x3bc   : > { %7075 = vrot.lane.b32.xlu0 %v7064_v47, %s10399_s21  ;;  %7090 = vrot.lane.b32.xlu1 %v7064_v47, %s10405_s26 }
 0x3c0   : > { %7080 = vrot.lane.b32.xlu0 %v7064_v47, %s10401_s19  ;;  %7095 = vrot.lane.b32.xlu1 %v7094_v16, %s10395_s18 }
 0x3c4   : > { %7115 = vrot.lane.b32.xlu0 %v7114_v27, %s10395_s18  ;;  %7100 = vrot.lane.b32.xlu1 %v7094_v16, %s10397_s0  ;;  %s10480_s0 = smov 16  }
 0x3c8   : > { %7120 = vrot.lane.b32.xlu0 %v7094_v16, %s10401_s19  ;;  %7105 = vrot.lane.b32.xlu1 %v7094_v16, %s10399_s21  ;;  %s10482_s21 = smov 48  }
 0x3cc   : > { %7125 = vrot.lane.b32.xlu0 %v7094_v16, %s10403_s22  ;;  %7110 = vrot.lane.b32.xlu1 %v7064_v47, %s10407_s24 }
 0x3d0   : > { %7130 = vrot.lane.b32.xlu0 %v7094_v16, %s10405_s26  ;;  %7140 = vrot.lane.b32.xlu1 %v7094_v16, %s10407_s24  ;;  %s10483_s26 = smov 64  }
 0x3d4   : > { %7135 = vrot.lane.b32.xlu0 %v7134_v50, %s10395_s18  ;;  %7145 = vrot.lane.b32.xlu1 %v7144_v46, %s10395_s18  ;;  %s10486_s18 = smov 112  }
 0x40a   : > { %v6991_v7 = vpop.permute.xlu0 %6990  ;;  %v6996_v18 = vpop.permute.xlu1 %6995 }
 0x40b   : > { %v6993_v21 = vunpack.i.h.bf16 %v6991_v7  ;;  %v6992_v4 = vunpack.i.l.bf16 %v6991_v7  ;;  %v6998_v56 = vunpack.i.h.bf16 %v6996_v18  ;;  %v6997_v23 = vunpack.i.l.bf16 %v6996_v18 }
 0x40d   : > { %v2740_v9 = vmax.f32 %v2693_v6, %v6993_v21  ;;  %v2739_v63 = vmax.f32 %v2691_v26, %v6992_v4 }
 0x40e   : > { %v7011_v17 = vpop.permute.xlu0 %7010  ;;  %v7001_v13 = vpop.permute.xlu1 %7000 }
 0x40f   : > { %v2772_v38 = vmax.f32 %v2740_v9, %v6998_v56  ;;  %v2771_v42 = vmax.f32 %v2739_v63, %v6997_v23  ;;  %v7003_v60 = vunpack.i.h.bf16 %v7001_v13  ;;  %v7002_v41 = vunpack.i.l.bf16 %v7001_v13 }
 0x410   : > { %v7013_v27 = vunpack.i.h.bf16 %v7011_v17  ;;  %v7012_v62 = vunpack.i.l.bf16 %v7011_v17 }
 0x411   : > { %v2803_v61 = vmax.f32 %v2771_v42, %v7002_v41  ;;  %v2804_v1 = vmax.f32 %v2772_v38, %v7003_v60 }
 0x412   : > { %v7016_v0 = vpop.permute.xlu0 %7015  ;;  %v7006_v47 = vpop.permute.xlu1 %7005 }
 0x413   : > { %v7008_v3 = vunpack.i.h.bf16 %v7006_v47  ;;  %v7007_v16 = vunpack.i.l.bf16 %v7006_v47  ;;  %v7018_v34 = vunpack.i.h.bf16 %v7016_v0  ;;  %v7017_v48 = vunpack.i.l.bf16 %v7016_v0 }
 0x415   : > { %v2835_v6 = vmax.f32 %v2803_v61, %v7007_v16  ;;  %v2836_v19 = vmax.f32 %v2804_v1, %v7008_v3 }
 0x416   : > { %v7021_v5 = vpop.permute.xlu0 %7020  ;;  %v7026_v26 = vpop.permute.xlu1 %7025 }
 0x417   : > { %v2867_v57 = vmax.f32 %v2835_v6, %v7012_v62  ;;  %v2868_v50 = vmax.f32 %v2836_v19, %v7013_v27  ;;  %v7023_v46 = vunpack.i.h.bf16 %v7021_v5  ;;  %v7022_v7 = vunpack.i.l.bf16 %v7021_v5 }
 0x418   : > { %v7028_v38 = vunpack.i.h.bf16 %v7026_v26  ;;  %v7027_v17 = vunpack.i.l.bf16 %v7026_v26 }
 0x419   : > { %v2899_v18 = vmax.f32 %v2867_v57, %v7017_v48  ;;  %v2900_v21 = vmax.f32 %v2868_v50, %v7018_v34 }
 0x41a   : > { %v7031_v4 = vpop.permute.xlu0 %7030  ;;  %v7041_v9 = vpop.permute.xlu1 %7040 }
 0x41b   : > { %v2931_v63 = vmax.f32 %v2899_v18, %v7022_v7  ;;  %v2932_v56 = vmax.f32 %v2900_v21, %v7023_v46  ;;  %v7033_v23 = vunpack.i.h.bf16 %v7031_v4  ;;  %v7032_v13 = vunpack.i.l.bf16 %v7031_v4 }
 0x41c   : > { %v7043_v62 = vunpack.i.h.bf16 %v7041_v9  ;;  %v7042_v19 = vunpack.i.l.bf16 %v7041_v9 }
 0x41d   : > { %v2939_v42 = vmax.f32 %v2931_v63, %v2692_v24  ;;  %v2940_v60 = vmax.f32 %v2932_v56, %v2694_v51  ;;  %v2742_v41 = vmax.f32 %v2697_v20, %v7033_v23  ;;  %v2741_v0 = vmax.f32 %v2695_v43, %v7032_v13 }
 0x41e   : > { %v7036_v47 = vpop.permute.xlu0 %7035  ;;  %v7046_v61 = vpop.permute.xlu1 %7045 }
 0x41f   : > { %v2979_v1 = vmax.f32 %v2939_v42, %v7027_v17  ;;  %v2980_v3 = vmax.f32 %v2940_v60, %v7028_v38  ;;  %v7038_v16 = vunpack.i.h.bf16 %v7036_v47  ;;  %v7037_v27 = vunpack.i.l.bf16 %v7036_v47 }
 0x420   : > { %v7048_v22 = vunpack.i.h.bf16 %v7046_v61  ;;  %v7047_v32 = vunpack.i.l.bf16 %v7046_v61 }
 0x421   : > { %v2987_v6 = vpack.c.bf16 %v2980_v3, %v2979_v1  ;;  %v2773_v31 = vmax.f32 %v2741_v0, %v7037_v27  ;;  %v2774_v24 = vmax.f32 %v2742_v41, %v7038_v16 }
 0x422   : > { %v7061_v5 = vpop.permute.xlu0 %7060  ;;  %v7051_v45 = vpop.permute.xlu1 %7050 }
 0x423   : > { %v2805_v51 = vmax.f32 %v2773_v31, %v7042_v19  ;;  %v2806_v26 = vmax.f32 %v2774_v24, %v7043_v62  ;;  %6730 = vmatpush3.bf16.msra.mxu1 %v2987_v6  ;;  %v7053_v57 = vunpack.i.h.bf16 %v7051_v45  ;;  %v7052_v50 = vunpack.i.l.bf16 %v7051_v45 }
 0x424   : > { %6731 = vmatprep.subr.bf16.mxu1 %v7596_v39  ;;  %v7063_v41 = vunpack.i.h.bf16 %v7061_v5  ;;  %v7062_v0 = vunpack.i.l.bf16 %v7061_v5 }
 0x425   : > { %v2837_v34 = vmax.f32 %v2805_v51, %v7047_v32  ;;  %v2838_v48 = vmax.f32 %v2806_v26, %v7048_v22 }
 0x426   : > { %v7066_v20 = vpop.permute.xlu0 %7065  ;;  %v7056_v43 = vpop.permute.xlu1 %7055 }
 0x427   : > { %v2869_v18 = vmax.f32 %v2837_v34, %v7052_v50  ;;  %v2870_v21 = vmax.f32 %v2838_v48, %v7053_v57  ;;  %v7058_v4 = vunpack.i.h.bf16 %v7056_v43  ;;  %v7057_v9 = vunpack.i.l.bf16 %v7056_v43 }
 0x428   : > { %v7068_v63 = vunpack.i.h.bf16 %v7066_v20  ;;  %v7067_v56 = vunpack.i.l.bf16 %v7066_v20 }
 0x429   : > { %v2901_v38 = vmax.f32 %v2869_v18, %v7057_v9  ;;  %v2902_v17 = vmax.f32 %v2870_v21, %v7058_v4 }
 0x42a   : > { %v7071_v46 = vpop.permute.xlu0 %7070  ;;  %v7086_v7 = vpop.permute.xlu1 %7085  ;;  %v2744_v47 = vmax.f32 %v2701_v53, %v7068_v63  ;;  %v2743_v61 = vmax.f32 %v2699_v52, %v7067_v56 }
 0x42b   : > { %v7073_v42 = vunpack.i.h.bf16 %v7071_v46  ;;  %v7072_v60 = vunpack.i.l.bf16 %v7071_v46  ;;  %v2933_v62 = vmax.f32 %v2901_v38, %v7062_v0  ;;  %v2934_v6 = vmax.f32 %v2902_v17, %v7063_v41 }
 0x42c   : > { %v7088_v21 = vunpack.i.h.bf16 %v7086_v7  ;;  %v7087_v4 = vunpack.i.l.bf16 %v7086_v7 }
 0x42d   : > { %v2775_v19 = vmax.f32 %v2743_v61, %v7072_v60  ;;  %v2776_v31 = vmax.f32 %v2744_v47, %v7073_v42  ;;  %v2941_v54 = vmax.f32 %v2933_v62, %v2696_v58  ;;  %v2942_v52 = vmax.f32 %v2934_v6, %v2698_v40 }
 0x42e   : > { %v7076_v23 = vpop.permute.xlu0 %7075  ;;  %v8860_v13 = vpop.permute.xlu1 %7090 }
 0x42f   : > { %v7078_v1 = vunpack.i.h.bf16 %v7076_v23  ;;  %v7077_v3 = vunpack.i.l.bf16 %v7076_v23  ;;  %v7093_v10 = vunpack.i.h.bf16 %v8860_v13 }
 0x431   : > { %v2807_v26 = vmax.f32 %v2775_v19, %v7077_v3  ;;  %v2808_v22 = vmax.f32 %v2776_v31, %v7078_v1 }
 0x432   : > { %v7081_v16 = vpop.permute.xlu0 %7080  ;;  %v7096_v27 = vpop.permute.xlu1 %7095 }
 0x433   : > { %v7083_v24 = vunpack.i.h.bf16 %v7081_v16  ;;  %v7082_v45 = vunpack.i.l.bf16 %v7081_v16  ;;  %v7098_v51 = vunpack.i.h.bf16 %v7096_v27  ;;  %v7097_v5 = vunpack.i.l.bf16 %v7096_v27 }
 0x435   : > { %v2839_v43 = vmax.f32 %v2807_v26, %v7082_v45  ;;  %v2840_v34 = vmax.f32 %v2808_v22, %v7083_v24  ;;  %v2746_v50 = vmax.f32 %v2705_v11, %v7098_v51  ;;  %v2745_v9 = vmax.f32 %v2703_v8, %v7097_v5 }
 0x436   : > { %v7116_v32 = vpop.permute.xlu0 %7115  ;;  %v7101_v35 = vpop.permute.xlu1 %7100  ;;  %v7092_v11 = vunpack.i.l.bf16 %v8860_v13 }
 0x437   : > { %v7118_v53 = vunpack.i.h.bf16 %v7116_v32  ;;  %v7117_v20 = vunpack.i.l.bf16 %v7116_v32  ;;  %v7103_v48 = vunpack.i.h.bf16 %v7101_v35  ;;  %v7102_v57 = vunpack.i.l.bf16 %v7101_v35 }
 0x438   : > { %v2871_v40 = vmax.f32 %v2839_v43, %v7087_v4  ;;  %v2872_v23 = vmax.f32 %v2840_v34, %v7088_v21 }
 0x439   : > { %v2981_v46 = vmax.f32 %v2941_v54, %v7117_v20  ;;  %v2982_v18 = vmax.f32 %v2942_v52, %v7118_v53  ;;  %v2778_v56 = vmax.f32 %v2746_v50, %v7103_v48  ;;  %v2777_v38 = vmax.f32 %v2745_v9, %v7102_v57 }
 0x43a   : > { %v7121_v63 = vpop.permute.xlu0 %7120  ;;  %v7106_v29 = vpop.permute.xlu1 %7105  ;;  %v2903_v16 = vmax.f32 %v2871_v40, %v7092_v11  ;;  %v2904_v27 = vmax.f32 %v2872_v23, %v7093_v10  ;;  %v7386_v40 = vld [vmem:[%s10478_s4 + $0x28] sm:$0xff]   ;;  %v7387_v23 = vld [vmem:[%s10478_s4 + $0x30] sm:$0x3f]  }
 0x43b   : > { %v2988_v58 = vpack.c.bf16 %v2982_v18, %v2981_v46  ;;  %v7108_v2 = vunpack.i.h.bf16 %v7106_v29  ;;  %v7107_v17 = vunpack.i.l.bf16 %v7106_v29  ;;  %v7123_v42 = vunpack.i.h.bf16 %v7121_v63 }
 0x43c   : > { %v7122_v7 = vunpack.i.l.bf16 %v7121_v63  ;;  %v7598_v18 = vmov 65535  }
 0x43d   : > { %v2810_v60 = vmax.f32 %v2778_v56, %v7108_v2  ;;  %6732 = vmatpush3.bf16.msra.mxu1 %v2988_v58  ;;  %v2809_v41 = vmax.f32 %v2777_v38, %v7107_v17  ;;  %v3063_v21 = vsel %vm2341_vm7, 4294967295, %v7598_v18  ;;  %v7381_v2 = vld [vmem:[%s10478_s4] sm:$0xff]   ;;  %v7409_v18 = vld [vmem:[%s10479_s5 + $0x70] ss:$8 sps:$4 sm:$0xff]   ;;  %vm3233_vm7 = vcmask 785408  }
 0x43e   : > { %v7126_v59 = vpop.permute.xlu0 %7125  ;;  %v7111_v8 = vpop.permute.xlu1 %7110  ;;  %6733 = vmatprep.subr.bf16.mxu1 %v7596_v39  ;;  %v3064_v29 = vsel %vm3062_vm3, %v3063_v21, 0  ;;  %v7388_v38 = vld [vmem:[%s10479_s5] ss:$8 sps:$4 sm:$0xff]   ;;  %v7390_v17 = vld [vmem:[%s10479_s5 + $0x4] ss:$8 sps:$4 sm:$0xff]  }
 0x43f   : > { %v7128_v0 = vunpack.i.h.bf16 %v7126_v59  ;;  %v7127_v47 = vunpack.i.l.bf16 %v7126_v59  ;;  %v2842_v61 = vmax.f32 %v2810_v60, %v7123_v42  ;;  %v7113_v1 = vunpack.i.h.bf16 %v7111_v8  ;;  %v7393_v42 = vld [vmem:[%s10479_s5 + $0x14] ss:$8 sps:$4 sm:$0xff]   ;;  %v7396_v59 = vld [vmem:[%s10479_s5 + $0x24] ss:$8 sps:$4 sm:$0xff]  }
 0x440   : > { %v2841_v3 = vmax.f32 %v2809_v41, %v7122_v7  ;;  %v7112_v62 = vunpack.i.l.bf16 %v7111_v8  ;;  %v7394_v41 = vld [vmem:[%s10479_s5 + $0x20] ss:$8 sps:$4 sm:$0xff]   ;;  %v7411_v21 = vld [vmem:[%s10479_s5 + $0x74] ss:$8 sps:$4 sm:$0xff]  }
 0x441   : > { %v2936_v6 = vmax.f32 %v2904_v27, %v7113_v1  ;;  %v2874_v13 = vmax.f32 %v2842_v61, %v7128_v0 }
 0x442   : > { %v2935_v19 = vmax.f32 %v2903_v16, %v7112_v62  ;;  %v7131_v31 = vpop.permute.xlu0 %7130  ;;  %v7141_v24 = vpop.permute.xlu1 %7140  ;;  %v2873_v45 = vmax.f32 %v2841_v3, %v7127_v47  ;;  %v7397_v62 = vld [vmem:[%s10479_s5 + $0x30] ss:$8 sps:$4 sm:$0xff]  }
 0x443   : > { %v7133_v51 = vunpack.i.h.bf16 %v7131_v31  ;;  %v7132_v26 = vunpack.i.l.bf16 %v7131_v31  ;;  %v7143_v32 = vunpack.i.h.bf16 %v7141_v24  ;;  %v7142_v35 = vunpack.i.l.bf16 %v7141_v24 }
 0x444   : > { %v2943_v20 = vmax.f32 %v2935_v19, %v2700_v49  ;;  %v2944_v54 = vmax.f32 %v2936_v6, %v2702_v28  ;;  %v7399_v6 = vld [vmem:[%s10479_s5 + $0x34] ss:$8 sps:$4 sm:$0xff]  }
 0x445   : > { %v2905_v22 = vmax.f32 %v2873_v45, %v7132_v26  ;;  %v2906_v5 = vmax.f32 %v2874_v13, %v7133_v51  ;;  %v7400_v13 = vld [vmem:[%s10479_s5 + $0x40] ss:$8 sps:$4 sm:$0xff]   ;;  %v7402_v51 = vld [vmem:[%s10479_s5 + $0x44] ss:$8 sps:$4 sm:$0xff]  }
 0x446   : > { %v7136_v53 = vpop.permute.xlu0 %7135  ;;  %v7146_v52 = vpop.permute.xlu1 %7145 }
 0x447   : > { %v2937_v43 = vmax.f32 %v2905_v22, %v7142_v35  ;;  %v2938_v34 = vmax.f32 %v2906_v5, %v7143_v32  ;;  %v7138_v48 = vunpack.i.h.bf16 %v7136_v53  ;;  %v7137_v57 = vunpack.i.l.bf16 %v7136_v53  ;;  %v7405_v32 = vld [vmem:[%s10479_s5 + $0x54] ss:$8 sps:$4 sm:$0xff]   ;;  %v7403_v53 = vld [vmem:[%s10479_s5 + $0x50] ss:$8 sps:$4 sm:$0xff]  }
 0x448   : > { %v7148_v50 = vunpack.i.h.bf16 %v7146_v52  ;;  %v7147_v46 = vunpack.i.l.bf16 %v7146_v52 }
 0x449   : > { %v2983_v4 = vmax.f32 %v2943_v20, %v7137_v57  ;;  %v2984_v9 = vmax.f32 %v2944_v54, %v7138_v48  ;;  %v2945_v55 = vmax.f32 %v2937_v43, %v2704_v44  ;;  %v2946_v37 = vmax.f32 %v2938_v34, %v2706_v30  ;;  %v7384_v30 = vld [vmem:[%s10478_s4 + $0x18] sm:$0xff]   ;;  %v7385_v44 = vld [vmem:[%s10478_s4 + $0x20] sm:$0xff]  }
 0x44a   : > { %v7406_v57 = vld [vmem:[%s10479_s5 + $0x60] ss:$8 sps:$4 sm:$0xff]  }
 0x44b   : > { %v2989_v28 = vpack.c.bf16 %v2984_v9, %v2983_v4  ;;  %v2985_v49 = vmax.f32 %v2945_v55, %v7147_v46  ;;  %v2986_v63 = vmax.f32 %v2946_v37, %v7148_v50  ;;  %v7408_v50 = vld [vmem:[%s10479_s5 + $0x64] ss:$8 sps:$4 sm:$0xff]  }
 0x44d   : > { %v2990_v58 = vpack.c.bf16 %v2986_v63, %v2985_v49  ;;  %6734 = vmatpush3.bf16.msra.mxu1 %v2989_v28 }
 0x44e   : > { %6735 = vmatprep.subr.bf16.mxu1 %v7596_v39 }
 0x44f   : > { %v3066_v56 = vand.u32 %v3064_v29, %v2990_v58  ;;  %v7414_v29 = vld [vmem:[%s10479_s5 + $0x84] ss:$8 sps:$4 sm:$0xff]   ;;  %v7412_v58 = vld [vmem:[%s10479_s5 + $0x80] ss:$8 sps:$4 sm:$0xff]  }
 0x451   : > { %6736 = vmatpush3.bf16.msra.mxu1 %v3066_v56 }
 0x452   : > { %3352 = vmatprep.subr.bf16.mxu1 %v7390_v17 }
 0x454   : > { %6738 = vmatmul.mubr.msk.bf16.vlgmr.msra.gmra.mrb[88].mxu1 %vm3040_vm5, %v7381_v2 }
 0x455   : > { %6741 = vmatprep.mubr.msk.bf16.mxu1 %vm7597_vm2, %v7596_v39  ;;  %3353 = vmatpush1.bf16.msra.mxu1 %v7388_v38 }
 0x456   : > { %3354 = vmatprep.subr.bf16.mxu1 %v7393_v42 }
 0x45c   : > { %6742 = vmatmul.mubr.msk.bf16.gmra.mrb[92].mxu1 %vm3040_vm5, %v7382_v25 }
 0x45d   : > { %6745 = vmatprep.mubr.msk.bf16.mxu1 %vm7597_vm2, %v7596_v39 }
 0x464   : > { %6746 = vmatmul.mubr.msk.bf16.gmra.mrb[96].mxu1 %vm3040_vm5, %v7383_v36 }
 0x465   : > { %6749 = vmatprep.mubr.msk.bf16.mxu1 %vm7597_vm2, %v7596_v39 }
 0x46c   : > { %6750 = vmatmul.mubr.msk.bf16.gmra.mrb[100].mxu1 %vm3040_vm5, %v7384_v30 }
 0x46d   : > { %6753 = vmatprep.mubr.msk.bf16.mxu1 %vm7597_vm2, %v7596_v39 }
 0x474   : > { %6754 = vmatmul.mubr.msk.bf16.gmra.mrb[104].mxu1 %vm3040_vm5, %v7385_v44 }
 0x475   : > { %6757 = vmatprep.mubr.msk.bf16.mxu1 %vm7597_vm2, %v7596_v39 }
 0x47c   : > { %6758 = vmatmul.mubr.msk.bf16.gmra.mrb[108].mxu1 %vm3040_vm5, %v7386_v40 }
 0x47d   : > { %6761 = vmatprep.mubr.msk.bf16.mxu1 %vm7597_vm2, %v7596_v39  ;;  %v7391_v39 = vld [vmem:[%s10479_s5 + $0x10] ss:$8 sps:$4 sm:$0xff]  }
 0x47e   : > { %3355 = vmatpush1.bf16.msra.mxu1 %v7391_v39 }
 0x47f   : > { %3356 = vmatprep.subr.bf16.mxu1 %v7396_v59 }
 0x482   : > { %3357 = vmatpush1.bf16.msra.mxu1 %v7394_v41 }
 0x483   : > { %3358 = vmatprep.subr.bf16.mxu1 %v7399_v6 }
 0x484   : > { %6762 = vmatmul.mubr.msk.bf16.gmra.mrb[112].mxu1 %vm3040_vm5, %v7387_v23 }
 0x486   : > { %3359 = vmatpush1.bf16.msra.mxu1 %v7397_v62 }
 0x487   : > { %3360 = vmatprep.subr.bf16.mxu1 %v7402_v51 }
 0x48a   : > { %3361 = vmatpush1.bf16.msra.mxu1 %v7400_v13 }
 0x48b   : > { %3362 = vmatprep.subr.bf16.mxu1 %v7405_v32 }
 0x48e   : > { %3363 = vmatpush1.bf16.msra.mxu1 %v7403_v53 }
 0x48f   : > { %3364 = vmatprep.subr.bf16.mxu1 %v7408_v50 }
 0x492   : > { %3365 = vmatpush1.bf16.msra.mxu1 %v7406_v57 }
 0x493   : > { %3366 = vmatprep.subr.bf16.mxu1 %v7411_v21  ;;  %v3395_v21 = vld [vmem:[%s10487_s6] ss:$2 sm:$0x3] }
 0x496   : > { %3367 = vmatpush1.bf16.msra.mxu1 %v7409_v18 }
 0x497   : > { %3368 = vmatprep.subr.bf16.mxu1 %v7414_v29 }
 0x49a   : > { %3369 = vmatpush1.bf16.msra.mxu1 %v7412_v58 }
 0x527   : > { %v8939_v60 = vpop.f32.mrb[88].mxu1 }
 0x528   : > { %v6739_v10 = vpop.f32.mrb[89].mxu1 }
 0x529   : > { %v8941_v11 = vpop.f32.mrb[90].mxu1 }
 0x52a   : > { %v6740_v7 = vpop.f32.mrb[91].mxu1  ;;  %v3159_v0 = vrot.slane %v8941_v11, 4 }
 0x52f   : > { %v3110_v8 = vpop.f32.mrb[92].mxu1 }
 0x530   : > { %v3160_v47 = vrot.slane %v3110_v8, 4  ;;  %v6743_v61 = vpop.f32.mrb[93].mxu1 }
 0x531   : > { %v3113_v1 = vpop.f32.mrb[94].mxu1 }
 0x532   : > { %v3161_v3 = vsel %vm2192_vm4, %v3159_v0, %v3160_v47  ;;  %v6744_v16 = vpop.f32.mrb[95].mxu1 }
 0x533   : > { %v7149_v27 = vpack.i.bf16 %v3160_v47, %v3161_v3 }
 0x535   : > { %7150 = vrot.lane.b32.xlu0 %v7149_v27, %s10480_s0 }
 0x537   : > { %v3118_v19 = vpop.f32.mrb[96].mxu1 }
 0x538   : > { %v7154_v31 = vpack.i.bf16 %v3118_v19, %v3113_v1  ;;  %v6747_v24 = vpop.f32.mrb[97].mxu1  ;;  %v3177_v26 = vrot.slane %v3118_v19, 4 }
 0x539   : > { %v3121_v45 = vpop.f32.mrb[98].mxu1 }
 0x53a   : > { %v3178_v22 = vrot.slane %v3121_v45, 4  ;;  %7155 = vrot.lane.b32.xlu1 %v7154_v31, %s10481_s20  ;;  %v6748_v5 = vpop.f32.mrb[99].mxu1 }
 0x53c   : > { %v3179_v35 = vsel %vm2192_vm4, %v3177_v26, %v3178_v22 }
 0x53d   : > { %v7159_v20 = vpack.i.bf16 %v3178_v22, %v3179_v35 }
 0x53f   : > { %7160 = vrot.lane.b32.xlu0 %v7159_v20, %s10482_s21  ;;  %v3126_v54 = vpop.f32.mrb[100].mxu1 }
 0x540   : > { %v6751_v52 = vpop.f32.mrb[101].mxu1 }
 0x541   : > { %v3129_v43 = vpop.f32.mrb[102].mxu1 }
 0x542   : > { %v7164_v34 = vpack.i.bf16 %v3129_v43, %v3126_v54  ;;  %v6752_v48 = vpop.f32.mrb[103].mxu1  ;;  %v3195_v4 = vrot.slane %v3129_v43, 4 }
 0x544   : > { %7165 = vrot.lane.b32.xlu1 %v7164_v34, %s10483_s26 }
 0x547   : > { %v3134_v46 = vpop.f32.mrb[104].mxu1 }
 0x548   : > { %v3196_v9 = vrot.slane %v3134_v46, 4  ;;  %v6755_v55 = vpop.f32.mrb[105].mxu1 }
 0x549   : > { %v3137_v37 = vpop.f32.mrb[106].mxu1 }
 0x54a   : > { %v3197_v28 = vsel %vm2192_vm4, %v3195_v4, %v3196_v9  ;;  %v6756_v49 = vpop.f32.mrb[107].mxu1  ;;  %v6339_v4 = vld [vmem:[%s10487_s6 + $0x1] ss:$2 sm:$0x3] }
 0x54b   : > { %v7169_v63 = vpack.i.bf16 %v3196_v9, %v3197_v28  ;;  %v3400_v9 = vrot.slane %v3395_v21, %v8677_v12  ;;  %v3417_v55 = vrot.slane %v6339_v4, %v8677_v12 }
 0x54d   : > { %7170 = vrot.lane.b32.xlu0 %v7169_v63, %s10484_s2 }
 0x54f   : > { %v3142_v56 = vpop.f32.mrb[108].mxu1 }
 0x550   : > { %v7174_v2 = vpack.i.bf16 %v3142_v56, %v3137_v37  ;;  %v6759_v25 = vpop.f32.mrb[109].mxu1  ;;  %v3213_v30 = vrot.slane %v3142_v56, 4 }
 0x551   : > { %v3145_v36 = vpop.f32.mrb[110].mxu1 }
 0x552   : > { %v3214_v44 = vrot.slane %v3145_v36, 4  ;;  %7175 = vrot.lane.b32.xlu1 %v7174_v2, %s10485_s3  ;;  %v6760_v40 = vpop.f32.mrb[111].mxu1  ;;  %v3404_v36 = vrot.slane %v3395_v21, %v8696_v14 }
 0x554   : > { %v3215_v23 = vsel %vm2192_vm4, %v3213_v30, %v3214_v44  ;;  %vm3230_vm4 = vcmask 654336  }
 0x555   : > { %v7179_v38 = vpack.i.bf16 %v3214_v44, %v3215_v23 }
 0x557   : > { %7180 = vrot.lane.b32.xlu0 %v7179_v38, %s10486_s18  ;;  %v3150_v17 = vpop.f32.mrb[112].mxu1  ;;  %v3421_v38 = vrot.slane %v6339_v4, %v8696_v14 }
 0x558   : > { %v6763_v42 = vpop.f32.mrb[113].mxu1 }
 0x559   : > { %v3153_v39 = vpop.f32.mrb[114].mxu1 }
 0x55a   : > { %v3240_v10 = vpack.c.bf16 %v3153_v39, %v3150_v17  ;;  %v6764_v7 = vpop.f32.mrb[115].mxu1 }
 0x55c   : > { %6338 = vmatprep.mubr.msk.bf16.mxu1 %vm2422_vm9, %v3240_v10 }
 0x5a7   : > { %v7151_v41 = vpop.permute.xlu0 %7150 }
 0x5a8   : > { %v7153_v47 = vunpack.i.h.bf16 %v7151_v41  ;;  %v7152_v61 = vunpack.i.l.bf16 %v7151_v41  ;;  %v7415_v41 = vld [vmem:[%s10488_s7] sm:$0xff]  }
 0x5aa   : > { %v3223_v24 = vsel %vm2422_vm9, %v8941_v11, %v7153_v47  ;;  %v3222_v45 = vsel %vm2422_vm9, %v8939_v60, %v7152_v61 }
 0x5ac   : > { %v7156_v59 = vpop.permute.xlu1 %7155 }
 0x5ad   : > { %v7158_v1 = vunpack.i.h.bf16 %v7156_v59  ;;  %v7157_v3 = vunpack.i.l.bf16 %v7156_v59 }
 0x5af   : > { %v3225_v26 = vsel %vm2440_vm11, %v3223_v24, %v7158_v1  ;;  %v3224_v22 = vsel %vm2440_vm11, %v3222_v45, %v7157_v3 }
 0x5b1   : > { %v7161_v8 = vpop.permute.xlu0 %7160 }
 0x5b2   : > { %v7163_v27 = vunpack.i.h.bf16 %v7161_v8  ;;  %v7162_v62 = vunpack.i.l.bf16 %v7161_v8 }
 0x5b4   : > { %v3227_v35 = vsel %vm2458_vm13, %v3225_v26, %v7163_v27  ;;  %v3226_v53 = vsel %vm2458_vm13, %v3224_v22, %v7162_v62 }
 0x5b6   : > { %v7166_v0 = vpop.permute.xlu1 %7165 }
 0x5b7   : > { %v7168_v19 = vunpack.i.h.bf16 %v7166_v0  ;;  %v7167_v31 = vunpack.i.l.bf16 %v7166_v0 }
 0x5b9   : > { %v3229_v20 = vsel %vm1284_vm0, %v3227_v35, %v7168_v19  ;;  %v3228_v11 = vsel %vm1284_vm0, %v3226_v53, %v7167_v31 }
 0x5bf   : > { %v7171_v16 = vpop.permute.xlu0 %7170 }
 0x5c0   : > { %v7173_v13 = vunpack.i.h.bf16 %v7171_v16  ;;  %v7172_v51 = vunpack.i.l.bf16 %v7171_v16 }
 0x5c2   : > { %v3232_v60 = vsel %vm3230_vm4, %v3229_v20, %v7173_v13  ;;  %v3231_v52 = vsel %vm3230_vm4, %v3228_v11, %v7172_v51 }
 0x5c4   : > { %v7176_v6 = vpop.permute.xlu1 %7175 }
 0x5c5   : > { %v7178_v5 = vunpack.i.h.bf16 %v7176_v6  ;;  %v7177_v32 = vunpack.i.l.bf16 %v7176_v6 }
 0x5c7   : > { %v3235_v48 = vsel %vm3233_vm7, %v3232_v60, %v7178_v5  ;;  %v3234_v57 = vsel %vm3233_vm7, %v3231_v52, %v7177_v32 }
 0x5c9   : > { %v7181_v54 = vpop.permute.xlu0 %7180 }
 0x5ca   : > { %v7183_v43 = vunpack.i.h.bf16 %v7181_v54  ;;  %v7182_v34 = vunpack.i.l.bf16 %v7181_v54 }
 0x5cc   : > { %v3238_v50 = vsel %vm3236_vm8, %v3235_v48, %v7183_v43  ;;  %v3237_v46 = vsel %vm3236_vm8, %v3234_v57, %v7182_v34 }
 0x5cd   : > { %v3239_v18 = vpack.c.bf16 %v3238_v50, %v3237_v46 }
 0x5cf   : > { %3385 = vmatmul.mubr.bf16.vlgmr.msra.gmra.mrb[116].mxu1 %v3239_v18 }
 0x5d0   : > { %6767 = vmatprep.mubr.msk.bf16.mxu1 %vm3514_vm10, %v7415_v41  ;;  %v7438_v41 = vld [vmem:[%s10376_s8 + $0x70] ss:$8 sps:$4 sm:$0xff]  }
 0x6a2   : > { %v3386_v37 = vpop.f32.mrb[116].mxu1 }
 0x6a3   : > { %v3407_v28 = vmul.f32 %v3400_v9, %v3386_v37  ;;  %v3388_v49 = vpop.f32.mrb[117].mxu1 }
 0x6a4   : > { %v3390_v63 = vpop.f32.mrb[118].mxu1  ;;  %v3408_v23 = vmul.f32 %v3404_v36, %v3388_v49 }
 0x6a5   : > { %v3424_v29 = vadd.f32 %v3417_v55, %v3407_v28  ;;  %v3409_v58 = vmul.f32 %v3400_v9, %v3390_v63  ;;  %v3392_v56 = vpop.f32.mrb[119].mxu1 }
 0x6a6   : > { %v3410_v44 = vmul.f32 %v3404_v36, %v3392_v56  ;;  %v3425_v42 = vadd.f32 %v3421_v38, %v3408_v23  ;;  %v7417_v56 = vld [vmem:[%s10376_s8] ss:$8 sps:$4 sm:$0xff]   ;;  %v7420_v36 = vld [vmem:[%s10376_s8 + $0x10] ss:$8 sps:$4 sm:$0xff]  }
 0x6a7   : > { %v3426_v2 = vadd.f32 %v3417_v55, %v3409_v58  ;;  %v3428_v25 = vmax.f32 %v3424_v29, 0.0  ;;  %v7416_v58 = vld [vmem:[%s10488_s7 + $0x8] ss:$0 sps:$4 sm:$0x11]   ;;  %v7426_v23 = vld [vmem:[%s10376_s8 + $0x30] ss:$8 sps:$4 sm:$0xff]  }
 0x6a8   : > { %v3427_v17 = vadd.f32 %v3421_v38, %v3410_v44  ;;  %v3429_v10 = vmax.f32 %v3425_v42, 0.0  ;;  %v7423_v44 = vld [vmem:[%s10376_s8 + $0x20] ss:$8 sps:$4 sm:$0xff]   ;;  %v7431_v38 = vld [vmem:[%s10376_s8 + $0x44] ss:$8 sps:$4 sm:$0xff]  }
 0x6a9   : > { %v3430_v30 = vmax.f32 %v3426_v2, 0.0  ;;  %v7419_v2 = vld [vmem:[%s10376_s8 + $0x4] ss:$8 sps:$4 sm:$0xff]   ;;  %v7434_v42 = vld [vmem:[%s10376_s8 + $0x54] ss:$8 sps:$4 sm:$0xff]  }
 0x6aa   : > { %v3431_v39 = vmax.f32 %v3427_v17, 0.0  ;;  %v7429_v17 = vld [vmem:[%s10376_s8 + $0x40] ss:$8 sps:$4 sm:$0xff]  }
 0x6ab   : > { %v7189_v40 = vpack.i.bf16 %v3430_v30, %v3428_v25 }
 0x6ac   : > { %v7219_v7 = vpack.i.bf16 %v3431_v39, %v3429_v10 }
 0x6ad   : > { %7190 = vrot.lane.b32.xlu0 %v7189_v40, %s10485_s3  ;;  %7185 = vrot.lane.b32.xlu1 %v7189_v40, %s10486_s18 }
 0x6b1   : > { %7200 = vrot.lane.b32.xlu0 %v7189_v40, %s10483_s26  ;;  %7195 = vrot.lane.b32.xlu1 %v7189_v40, %s10484_s2 }
 0x6b5   : > { %7210 = vrot.lane.b32.xlu0 %v7189_v40, %s10481_s20  ;;  %7205 = vrot.lane.b32.xlu1 %v7189_v40, %s10482_s21 }
 0x6b9   : > { %7215 = vrot.lane.b32.xlu1 %v7189_v40, %s10480_s0  ;;  %7220 = vrot.lane.b32.xlu0 %v7219_v7, %s10486_s18  ;;  %v7428_v40 = vld [vmem:[%s10376_s8 + $0x34] ss:$8 sps:$4 sm:$0xff]   ;;  %v7437_v7 = vld [vmem:[%s10376_s8 + $0x64] ss:$8 sps:$4 sm:$0xff]  }
 0x71f   : > { %v7191_v59 = vpop.permute.xlu0 %7190  ;;  %v7186_v8 = vpop.permute.xlu1 %7185 }
 0x720   : > { %v7188_v0 = vunpack.i.h.bf16 %v7186_v8  ;;  %v7187_v47 = vunpack.i.l.bf16 %v7186_v8  ;;  %v7193_v3 = vunpack.i.h.bf16 %v7191_v59  ;;  %v7192_v16 = vunpack.i.l.bf16 %v7191_v59  ;;  %v7440_v59 = vld [vmem:[%s10376_s8 + $0x74] ss:$8 sps:$4 sm:$0xff]   ;;  %v7441_v8 = vld [vmem:[%s10376_s8 + $0x80] ss:$8 sps:$4 sm:$0xff]  }
 0x722   : > { %v3441_v61 = vmax.f32 %v3430_v30, %v7188_v0  ;;  %v3440_v1 = vmax.f32 %v3428_v25, %v7187_v47  ;;  %v7422_v25 = vld [vmem:[%s10376_s8 + $0x14] ss:$8 sps:$4 sm:$0xff]   ;;  %v7425_v30 = vld [vmem:[%s10376_s8 + $0x24] ss:$8 sps:$4 sm:$0xff]  }
 0x723   : > { %v7201_v27 = vpop.permute.xlu0 %7200  ;;  %v7196_v62 = vpop.permute.xlu1 %7195  ;;  %v7443_v0 = vld [vmem:[%s10376_s8 + $0x84] ss:$8 sps:$4 sm:$0xff]  }
 0x724   : > { %v7198_v6 = vunpack.i.h.bf16 %v7196_v62  ;;  %v7197_v19 = vunpack.i.l.bf16 %v7196_v62  ;;  %v3448_v31 = vmax.f32 %v3440_v1, %v7192_v16  ;;  %v3449_v24 = vmax.f32 %v3441_v61, %v7193_v3 }
 0x725   : > { %v7203_v45 = vunpack.i.h.bf16 %v7201_v27  ;;  %v7202_v13 = vunpack.i.l.bf16 %v7201_v27 }
 0x726   : > { %v3456_v51 = vmax.f32 %v3448_v31, %v7197_v19  ;;  %v3457_v26 = vmax.f32 %v3449_v24, %v7198_v6  ;;  %v4133_v19 = vld [vmem:[%s10379_s11] sm:$0xff] }
 0x727   : > { %v7206_v22 = vpop.permute.xlu1 %7205  ;;  %v7211_v5 = vpop.permute.xlu0 %7210  ;;  %v4137_v31 = vld [vmem:[%s10379_s11 + $0x20] sm:$0xff] }
 0x728   : > { %v7208_v32 = vunpack.i.h.bf16 %v7206_v22  ;;  %v7207_v35 = vunpack.i.l.bf16 %v7206_v22  ;;  %v3464_v53 = vmax.f32 %v3456_v51, %v7202_v13  ;;  %v3465_v20 = vmax.f32 %v3457_v26, %v7203_v45  ;;  %v4141_v24 = vld [vmem:[%s10379_s11 + $0x40] sm:$0xff] }
 0x729   : > { %v7213_v11 = vunpack.i.h.bf16 %v7211_v5  ;;  %v7212_v54 = vunpack.i.l.bf16 %v7211_v5  ;;  %v9108_v45 = vcombine.low %v4133_v19, %v4137_v31  ;;  %v9110_v13 = vcombine.high %v4133_v19, %v4137_v31  ;;  %v4145_v51 = vld [vmem:[%s10379_s11 + $0x60] sm:$0xff] }
 0x72a   : > { %v3472_v60 = vmax.f32 %v3464_v53, %v7207_v35  ;;  %v3473_v52 = vmax.f32 %v3465_v20, %v7208_v32  ;;  %v9117_v26 = vcombine.high %v4141_v24, %v4145_v51  ;;  %v4149_v22 = vld [vmem:[%s10379_s11 + $0x80] sm:$0xff]  ;;  %v9127_v53 = vcombine.low %v4141_v24, %v4145_v51 }
 0x72b   : > { %v7216_v43 = vpop.permute.xlu1 %7215  ;;  %v7221_v46 = vpop.permute.xlu0 %7220  ;;  %v4153_v5 = vld [vmem:[%s10379_s11 + $0xa0] sm:$0xff]  ;;  %4901 = vmatprep.subr.bf16.mxu0 %v9110_v13 }
 0x72c   : > { %v7218_v34 = vunpack.i.h.bf16 %v7216_v43  ;;  %v7217_v48 = vunpack.i.l.bf16 %v7216_v43  ;;  %v3480_v57 = vmax.f32 %v3472_v60, %v7212_v54  ;;  %v3481_v50 = vmax.f32 %v3473_v52, %v7213_v11  ;;  %4902 = vmatpush1.bf16.msra.mxu0 %v9108_v45 }
 0x72d   : > { %v7223_v9 = vunpack.i.h.bf16 %v7221_v46  ;;  %v7222_v55 = vunpack.i.l.bf16 %v7221_v46  ;;  %4903 = vmatprep.subr.bf16.mxu0 %v9117_v26  ;;  %v9130_v20 = vcombine.high %v4149_v22, %v4153_v5  ;;  %v9135_v54 = vcombine.low %v4149_v22, %v4153_v5 }
 0x72e   : > { %v3488_v18 = vmax.f32 %v3480_v57, %v7217_v48  ;;  %v3489_v21 = vmax.f32 %v3481_v50, %v7218_v34 }
 0x730   : > { %v3490_v4 = vmax.f32 %v3488_v18, %v3429_v10  ;;  %v3491_v37 = vmax.f32 %v3489_v21, %v3431_v39  ;;  %v7432_v39 = vld [vmem:[%s10376_s8 + $0x50] ss:$8 sps:$4 sm:$0xff]   ;;  %v7435_v10 = vld [vmem:[%s10376_s8 + $0x60] ss:$8 sps:$4 sm:$0xff]   ;;  %4904 = vmatpush1.bf16.msra.mxu0 %v9127_v53 }
 0x731   : > { %4905 = vmatprep.subr.bf16.mxu0 %v9130_v20 }
 0x732   : > { %v3500_v28 = vmax.f32 %v3490_v4, %v7222_v55  ;;  %v3501_v49 = vmax.f32 %v3491_v37, %v7223_v9 }
 0x734   : > { %v3502_v63 = vpack.c.bf16 %v3501_v49, %v3500_v28  ;;  %4906 = vmatpush1.bf16.msra.mxu0 %v9135_v54  ;;  %v4157_v49 = vld [vmem:[%s10379_s11 + $0xc0] sm:$0xff] }
 0x736   : > { %6771 = vmatprep.subr.msk.bf16.mxu1 %vm2292_vm6, %v3502_v63  ;;  %v3522_v29 = vsel %vm2292_vm6, %v3502_v63, 0  ;;  %v4161_v63 = vld [vmem:[%s10379_s11 + $0xe0] sm:$0xff] }
 0x737   : > { %6766 = vmatpush3.bf16.msra.mxu1 %v3522_v29  ;;  %v9154_v29 = vcombine.low %v4157_v49, %v4161_v63 }
 0x738   : > { %3721 = vmatprep.subr.bf16.mxu1 %v7419_v2  ;;  %v4169_v2 = vld [vmem:[%s10379_s11 + $0x120] sm:$0xff] }
 0x73a   : > { %6768 = vmatmul.mubr.msk.bf16.vlgmr.msra.gmra.mrb[120].mxu1 %vm3514_vm10, %v7416_v58  ;;  %v9156_v58 = vcombine.high %v4157_v49, %v4161_v63  ;;  %v4221_v63 = vld [vmem:[%s10379_s11 + $0x2c0] sm:$0xff] }
 0x73b   : > { %3722 = vmatpush1.bf16.msra.mxu1 %v7417_v56  ;;  %v4165_v56 = vld [vmem:[%s10379_s11 + $0x100] sm:$0xff] }
 0x73c   : > { %3723 = vmatprep.subr.bf16.mxu1 %v7422_v25  ;;  %4907 = vmatprep.subr.bf16.mxu0 %v9156_v58  ;;  %v4173_v25 = vld [vmem:[%s10379_s11 + $0x140] sm:$0xff] }
 0x73d   : > { %4908 = vmatpush1.bf16.msra.mxu0 %v9154_v29 }
 0x73f   : > { %3724 = vmatpush1.bf16.msra.mxu1 %v7420_v36  ;;  %v9169_v36 = vcombine.low %v4165_v56, %v4169_v2 }
 0x740   : > { %3725 = vmatprep.subr.bf16.mxu1 %v7425_v30  ;;  %v9171_v30 = vcombine.high %v4165_v56, %v4169_v2  ;;  %v4225_v56 = vld [vmem:[%s10379_s11 + $0x2e0] sm:$0xff] }
 0x741   : > { %v9296_v2 = vcombine.low %v4221_v63, %v4225_v56 }
 0x742   : > { %4909 = vmatprep.subr.bf16.mxu0 %v9171_v30 }
 0x743   : > { %3726 = vmatpush1.bf16.msra.mxu1 %v7423_v44  ;;  %v4177_v44 = vld [vmem:[%s10379_s11 + $0x160] sm:$0xff]  ;;  %4910 = vmatpush1.bf16.msra.mxu0 %v9169_v36 }
 0x744   : > { %3727 = vmatprep.subr.bf16.mxu1 %v7428_v40  ;;  %v9176_v40 = vcombine.high %v4173_v25, %v4177_v44 }
 0x746   : > { %4911 = vmatprep.subr.bf16.mxu0 %v9176_v40 }
 0x747   : > { %3728 = vmatpush1.bf16.msra.mxu1 %v7426_v23  ;;  %v4181_v23 = vld [vmem:[%s10379_s11 + $0x180] sm:$0xff] }
 0x748   : > { %3729 = vmatprep.subr.bf16.mxu1 %v7431_v38  ;;  %v4185_v38 = vld [vmem:[%s10379_s11 + $0x1a0] sm:$0xff] }
 0x74b   : > { %3730 = vmatpush1.bf16.msra.mxu1 %v7429_v17  ;;  %v9186_v17 = vcombine.low %v4173_v25, %v4177_v44  ;;  %v9298_v25 = vcombine.high %v4221_v63, %v4225_v56  ;;  %v4159_v63 = vld [vmem:[%s10379_s11 + $0xd0] sm:$0xff] }
 0x74c   : > { %3731 = vmatprep.subr.bf16.mxu1 %v7434_v42  ;;  %v9189_v42 = vcombine.high %v4181_v23, %v4185_v38  ;;  %v4163_v56 = vld [vmem:[%s10379_s11 + $0xf0] sm:$0xff] }
 0x74d   : > { %4912 = vmatpush1.bf16.msra.mxu0 %v9186_v17 }
 0x74e   : > { %4913 = vmatprep.subr.bf16.mxu0 %v9189_v42 }
 0x74f   : > { %3732 = vmatpush1.bf16.msra.mxu1 %v7432_v39  ;;  %v4189_v39 = vld [vmem:[%s10379_s11 + $0x1c0] sm:$0xff] }
 0x750   : > { %3733 = vmatprep.subr.bf16.mxu1 %v7437_v7  ;;  %v9198_v7 = vcombine.low %v4181_v23, %v4185_v38  ;;  %v4229_v23 = vld [vmem:[%s10379_s11 + $0x300] sm:$0xff] }
 0x751   : > { %v4233_v38 = vld [vmem:[%s10379_s11 + $0x320] sm:$0xff] }
 0x752   : > { %4914 = vmatpush1.bf16.msra.mxu0 %v9198_v7 }
 0x753   : > { %3734 = vmatpush1.bf16.msra.mxu1 %v7435_v10  ;;  %v4193_v10 = vld [vmem:[%s10379_s11 + $0x1e0] sm:$0xff] }
 0x754   : > { %3735 = vmatprep.subr.bf16.mxu1 %v7440_v59  ;;  %v4197_v59 = vld [vmem:[%s10379_s11 + $0x200] sm:$0xff] }
 0x757   : > { %3736 = vmatpush1.bf16.msra.mxu1 %v7438_v41  ;;  %v9201_v41 = vcombine.high %v4189_v39, %v4193_v10 }
 0x758   : > { %3737 = vmatprep.subr.bf16.mxu1 %v7443_v0  ;;  %v9210_v0 = vcombine.low %v4189_v39, %v4193_v10  ;;  %v9314_v39 = vcombine.low %v4229_v23, %v4233_v38  ;;  %v9316_v10 = vcombine.high %v4229_v23, %v4233_v38  ;;  %v9400_v23 = vcombine.high %v4159_v63, %v4163_v56 }
 0x759   : > { %4915 = vmatprep.subr.bf16.mxu0 %v9201_v41  ;;  %v9402_v38 = vcombine.low %v4159_v63, %v4163_v56 }
 0x75a   : > { %4916 = vmatpush1.bf16.msra.mxu0 %v9210_v0 }
 0x75b   : > { %3738 = vmatpush1.bf16.msra.mxu1 %v7441_v8  ;;  %v4201_v8 = vld [vmem:[%s10379_s11 + $0x220] sm:$0xff] }
 0x80d   : > { %v6769_v47 = vpop.f32.mrb[120].mxu1 }
 0x80e   : > { %v3609_v61 = vpack.c.bf16 %v6769_v47, %v6769_v47  ;;  %v3558_v1 = vpop.f32.mrb[121].mxu1  ;;  %v9213_v47 = vcombine.high %v4197_v59, %v4201_v8 }
 0x80f   : > { %v3577_v3 = vrot.slane %v3558_v1, 4  ;;  %v3573_v16 = vrot.slane %v3558_v1, 2  ;;  %v6770_v27 = vpop.f32.mrb[122].mxu1  ;;  %v3581_v6 = vrot.slane %v3558_v1, 6 }
 0x810   : > { %v3561_v62 = vpop.f32.mrb[123].mxu1  ;;  %6362 = vmatprep.mubr.msk.bf16.mxu1 %vm2422_vm9, %v3609_v61  ;;  %v4205_v61 = vld [vmem:[%s10379_s11 + $0x240] sm:$0xff]  ;;  %4917 = vmatprep.subr.bf16.mxu0 %v9213_v47 }
 0x811   : > { %3578 = vrot.lane.b32.xlu0 %v3577_v3, %s10481_s20  ;;  %3574 = vrot.lane.b32.xlu1 %v3573_v16, %s10480_s0  ;;  %v3593_v32 = vrot.slane %v3561_v62, 4  ;;  %v3589_v35 = vrot.slane %v3561_v62, 2  ;;  %v3597_v11 = vrot.slane %v3561_v62, 6  ;;  %v9222_v3 = vcombine.low %v4197_v59, %v4201_v8  ;;  %v4237_v59 = vld [vmem:[%s10379_s11 + $0x340] sm:$0xff] }
 0x812   : > { %v4241_v8 = vld [vmem:[%s10379_s11 + $0x360] sm:$0xff] }
 0x813   : > { %4918 = vmatpush1.bf16.msra.mxu0 %v9222_v3 }
 0x815   : > { %3582 = vrot.lane.b32.xlu1 %v3581_v6, %s10482_s21  ;;  %3586 = vrot.lane.b32.xlu0 %v3561_v62, %s10483_s26  ;;  %v3762_v62 = vld [vmem:[%s10377_s9] ss:$2 sm:$0x3]  ;;  %v6363_v6 = vld [vmem:[%s10377_s9 + $0x1] ss:$2 sm:$0x3] }
 0x816   : > { %v3767_v19 = vrot.slane %v3762_v62, %v8677_v12  ;;  %v3782_v31 = vrot.slane %v6363_v6, %v8677_v12 }
 0x819   : > { %3594 = vrot.lane.b32.xlu0 %v3593_v32, %s10485_s3  ;;  %3590 = vrot.lane.b32.xlu1 %v3589_v35, %s10484_s2  ;;  %v4213_v32 = vld [vmem:[%s10379_s11 + $0x280] sm:$0xff] }
 0x81a   : > { %v4217_v35 = vld [vmem:[%s10379_s11 + $0x2a0] sm:$0xff] }
 0x81d   : > { %3598 = vrot.lane.b32.xlu1 %v3597_v11, %s10486_s18 }
 0x883   : > { %v3579_v60 = vpop.permute.xlu0 %3578  ;;  %v3575_v52 = vpop.permute.xlu1 %3574 }
 0x884   : > { %v3601_v43 = vsel %vm2422_vm9, %v3558_v1, %v3575_v52  ;;  %v4209_v1 = vld [vmem:[%s10379_s11 + $0x260] sm:$0xff]  ;;  %v9246_v52 = vcombine.low %v4213_v32, %v4217_v35 }
 0x885   : > { %v3602_v34 = vsel %vm2440_vm11, %v3601_v43, %v3579_v60  ;;  %v9225_v16 = vcombine.high %v4205_v61, %v4209_v1  ;;  %v9228_v27 = vcombine.low %v4205_v61, %v4209_v1  ;;  %v9248_v43 = vcombine.high %v4213_v32, %v4217_v35  ;;  %v4135_v32 = vld [vmem:[%s10379_s11 + $0x10] sm:$0xff] }
 0x886   : > { %v9326_v61 = vcombine.low %v4237_v59, %v4241_v8  ;;  %v9328_v1 = vcombine.high %v4237_v59, %v4241_v8  ;;  %v4139_v35 = vld [vmem:[%s10379_s11 + $0x30] sm:$0xff] }
 0x887   : > { %v3583_v48 = vpop.permute.xlu1 %3582  ;;  %v3587_v57 = vpop.permute.xlu0 %3586  ;;  %4919 = vmatprep.subr.bf16.mxu0 %v9225_v16  ;;  %v4167_v59 = vld [vmem:[%s10379_s11 + $0x110] sm:$0xff] }
 0x888   : > { %v3603_v50 = vsel %vm2458_vm13, %v3602_v34, %v3583_v48  ;;  %4920 = vmatpush1.bf16.msra.mxu0 %v9228_v27  ;;  %v3771_v48 = vrot.slane %v3762_v62, %v8696_v14  ;;  %v4245_v62 = vld [vmem:[%s10379_s11 + $0x380] sm:$0xff]  ;;  %v4171_v8 = vld [vmem:[%s10379_s11 + $0x130] sm:$0xff] }
 0x889   : > { %v3604_v46 = vsel %vm1284_vm0, %v3603_v50, %v3587_v57  ;;  %4921 = vmatprep.subr.bf16.mxu0 %v9248_v43  ;;  %v3829_v57 = vld [vmem:[%s10378_s10] sm:$0xff] }
 0x88a   : > { %v3833_v50 = vld [vmem:[%s10378_s10 + $0x20] sm:$0xff] }
 0x88b   : > { %v3591_v18 = vpop.permute.xlu1 %3590  ;;  %v3595_v21 = vpop.permute.xlu0 %3594 }
 0x88c   : > { %v3605_v4 = vsel %vm3230_vm4, %v3604_v46, %v3591_v18  ;;  %4922 = vmatpush1.bf16.msra.mxu0 %v9246_v52  ;;  %v3786_v18 = vrot.slane %v6363_v6, %v8696_v14  ;;  %v4249_v6 = vld [vmem:[%s10379_s11 + $0x3a0] sm:$0xff] }
 0x88d   : > { %v3606_v9 = vsel %vm3233_vm7, %v3605_v4, %v3595_v21  ;;  %v6365_v21 = vcombine.high %v3829_v57, %v3833_v50  ;;  %v6364_v4 = vcombine.low %v3829_v57, %v3833_v50  ;;  %4923 = vmatprep.subr.bf16.mxu0 %v9298_v25  ;;  %v4147_v57 = vld [vmem:[%s10379_s11 + $0x70] sm:$0xff] }
 0x88f   : > { %v3599_v55 = vpop.permute.xlu1 %3598  ;;  %3922 = vmatprep.subr.bf16.mxu1 %v6365_v21  ;;  %v4155_v21 = vld [vmem:[%s10379_s11 + $0xb0] sm:$0xff] }
 0x890   : > { %v3607_v37 = vsel %vm3236_vm8, %v3606_v9, %v3599_v55  ;;  %v9275_v55 = vld [vmem:[%s10378_s10 + $0x8] sm:$0xff]  ;;  %4924 = vmatpush1.bf16.msra.mxu0 %v9296_v2 }
 0x891   : > { %v3608_v28 = vpack.c.bf16 %v3607_v37, %v3607_v37  ;;  %v9280_v37 = vld [vmem:[%s10378_s10 + $0x28] sm:$0xff]  ;;  %4925 = vmatprep.subr.bf16.mxu0 %v9316_v10 }
 0x892   : > { %v6367_v49 = vcombine.high %v9275_v55, %v9280_v37 }
 0x893   : > { %3754 = vmatmul.mubr.bf16.vlgmr.msra.gmra.mrb[124].mxu1 %v3608_v28 }
 0x894   : > { %3954 = vmatprep.mubr.bf16.mxu1 %v10474_v33  ;;  %3923 = vmatpush1.bf16.msra.mxu1 %v6364_v4 }
 0x895   : > { %3963 = vmatprep.subr.bf16.mxu1 %v6367_v49  ;;  %4926 = vmatpush1.bf16.msra.mxu0 %v9314_v39 }
 0x896   : > { %4927 = vmatprep.subr.bf16.mxu0 %v9328_v1 }
 0x899   : > { %4928 = vmatpush1.bf16.msra.mxu0 %v9326_v61 }
 0x966   : > { %v3755_v24 = vpop.f32.mrb[124].mxu1 }
 0x967   : > { %v3774_v51 = vmul.f32 %v3767_v19, %v3755_v24  ;;  %v3757_v22 = vpop.f32.mrb[125].mxu1  ;;  %v9338_v19 = vcombine.low %v4245_v62, %v4249_v6  ;;  %v4253_v24 = vld [vmem:[%s10379_s11 + $0x3c0] sm:$0xff] }
 0x968   : > { %v3759_v5 = vpop.f32.mrb[126].mxu1  ;;  %v3775_v46 = vmul.f32 %v3771_v48, %v3757_v22  ;;  %v4143_v48 = vld [vmem:[%s10379_s11 + $0x50] sm:$0xff] }
 0x969   : > { %v3789_v11 = vadd.f32 %v3782_v31, %v3774_v51  ;;  %v3760_v60 = vpop.f32.mrb[127].mxu1  ;;  %v9340_v31 = vcombine.high %v4245_v62, %v4249_v6  ;;  %v4257_v51 = vld [vmem:[%s10379_s11 + $0x3e0] sm:$0xff]  ;;  %v9376_v50 = vcombine.high %v4143_v48, %v4147_v57  ;;  %v9412_v62 = vcombine.high %v4167_v59, %v4171_v8 }
 0x96a   : > { %v9270_v9 = vadd.f32 %v3786_v18, %v3775_v46  ;;  %v9350_v22 = vcombine.low %v4253_v24, %v4257_v51  ;;  %v9352_v5 = vcombine.high %v4253_v24, %v4257_v51  ;;  %v9364_v60 = vcombine.low %v4135_v32, %v4139_v35  ;;  %v4151_v18 = vld [vmem:[%s10379_s11 + $0x90] sm:$0xff] }
 0x96b   : > { %v9250_v34 = vmax.f32 %v3789_v11, 0.0  ;;  %4929 = vmatprep.subr.bf16.mxu0 %v9340_v31  ;;  %v9362_v11 = vcombine.high %v4135_v32, %v4139_v35  ;;  %v9378_v46 = vcombine.low %v4143_v48, %v4147_v57  ;;  %v9388_v4 = vcombine.high %v4151_v18, %v4155_v21  ;;  %v4175_v24 = vld [vmem:[%s10379_s11 + $0x150] sm:$0xff] }
 0x96c   : > { %v10410_v44 = vmax.f32 %v9270_v9, 0.0  ;;  %4930 = vmatpush1.bf16.msra.mxu0 %v9338_v19  ;;  %v9390_v49 = vcombine.low %v4151_v18, %v4155_v21  ;;  %v9414_v6 = vcombine.low %v4167_v59, %v4171_v8  ;;  %v4179_v51 = vld [vmem:[%s10379_s11 + $0x170] sm:$0xff] }
 0x96d   : > { %3798 = vrot.lane.b32.xlu1 %v9250_v34, %s10485_s3  ;;  %3794 = vrot.lane.b32.xlu0 %v9250_v34, %s10486_s18  ;;  %v9424_v32 = vcombine.high %v4175_v24, %v4179_v51  ;;  %v9426_v35 = vcombine.low %v4175_v24, %v4179_v51  ;;  %v4183_v48 = vld [vmem:[%s10379_s11 + $0x190] sm:$0xff] }
 0x96e   : > { %4931 = vmatprep.subr.bf16.mxu0 %v9352_v5  ;;  %10489 = vst [vmem:[#allocation12_spill] sm:$0xff] %v9414_v6  ;;  %v4187_v57 = vld [vmem:[%s10379_s11 + $0x1b0] sm:$0xff] }
 0x96f   : > { %10490 = vst [vmem:[#allocation11_spill] sm:$0xff] %v9424_v32  ;;  %10491 = vst [vmem:[#allocation13_spill] sm:$0xff] %v9426_v35  ;;  %v9436_v63 = vcombine.high %v4183_v48, %v4187_v57  ;;  %v9439_v59 = vcombine.low %v4183_v48, %v4187_v57  ;;  %v4191_v24 = vld [vmem:[%s10379_s11 + $0x1d0] sm:$0xff] }
 0x970   : > { %4932 = vmatpush1.bf16.msra.mxu0 %v9350_v22  ;;  %v4195_v51 = vld [vmem:[%s10379_s11 + $0x1f0] sm:$0xff] }
 0x971   : > { %3806 = vrot.lane.b32.xlu1 %v9250_v34, %s10483_s26  ;;  %3802 = vrot.lane.b32.xlu0 %v9250_v34, %s10484_s2  ;;  %10492 = vst [vmem:[#allocation14_spill] sm:$0xff] %v9436_v63  ;;  %10493 = vst [vmem:[#allocation15_spill] sm:$0xff] %v9439_v59  ;;  %v9451_v48 = vcombine.low %v4191_v24, %v4195_v51  ;;  %s539_s26 = sand.u32 1, %s7574_s25   ;;  %s6548_s2 = sshll.u32 %s7713_s28, 4 }
 0x972   : > { %4983 = vmatprep.subr.bf16.mxu0 %v9362_v11  ;;  %s540_s24 = scalar_lea.vmem [#allocation3], %s539_s26  ;;  %s10326_s5 = scalar_lea.hbm %s10385_s17, %s6548_s2 }
 0x973   : > { %4934 = vmatmul.mubr.bf16.vlgmr.msra.gmra.mrb[144].mxu0 %v10474_v33  ;;  %10495 = vst [vmem:[#allocation17_spill] sm:$0xff] %v9451_v48  ;;  %s6086_s4 = sshll.u32 %s540_s24, 4  ;;  %s6074_s6 = scalar_lea.sflag [#allocation4], %s539_s26  ;;  %s10328_s4 = int_to_ptr.vmem [resolvable:$true] %s6086_s4 }
 0x974   : > { %5015 = vmatprep.mubr.bf16.mxu0 %v10474_v33  ;;  %4984 = vmatpush1.bf16.msra.mxu0 %v9364_v60  ;;  %s7601_s28 = smov [#allocation3]  }
 0x975   : > { %3814 = vrot.lane.b32.xlu1 %v9250_v34, %s10481_s20  ;;  %3810 = vrot.lane.b32.xlu0 %v9250_v34, %s10482_s21 }
 0x976   : > { %4985 = vmatprep.subr.bf16.mxu0 %v9376_v50 }
 0x978   : > { %4986 = vmatpush1.bf16.msra.mxu0 %v9378_v46 }
 0x979   : > { %3818 = vrot.lane.b32.xlu0 %v9250_v34, %s10480_s0  ;;  %3824 = vrot.lane.b32.xlu1 %v10410_v44, %s10486_s18  ;;  %s7520_s0 = scalar_lea.vmem %s10328_s4, 16  ;;  %s7524_s18 = sshll.u32 %s7601_s28, 4  ;;  %s7525_s18 = int_to_ptr.vmem [resolvable:$false] %s7524_s18 }
 0x97a   : > { %4987 = vmatprep.subr.bf16.mxu0 %v9388_v4  ;;  %p7521_p11 = scmp.ne.s32.totalorder %s10328_s4, %s7520_s0  ;;  %s7526_s29 = scalar_lea.vmem %s7525_s18, 32 }
 0x97b   : > { %p7527_p0 = scmp.lt.s32.totalorder %s10328_s4, %s7525_s18  ;;  %p7528_p1 = scmp.lt.s32.totalorder %s7526_s29, %s7520_s0 }
 0x97c   : > { %4988 = vmatpush1.bf16.msra.mxu0 %v9390_v49  ;;  %p7522_p12 = pnand %p7521_p11, %p7730_p5 }
 0x97d   : > { %4989 = vmatprep.subr.bf16.mxu0 %v9400_v23  ;;  %p7529_p2 = por %p7528_p1, %p7527_p0 }
 0x97e   : > { %p7523_p13 = pneg %p7522_p12 }
 0x980   : > { %4990 = vmatpush1.bf16.msra.mxu0 %v9402_v38  ;;  %p7530_p3 = pnand %p7529_p2, %p7523_p13 }
 0x981   : > { %4991 = vmatprep.subr.bf16.mxu0 %v9412_v62 }
 0x984   : > { %4992 = vmatpush1.bf16.msra.mxu0 %v9414_v6 }
 0x985   : > { %4993 = vmatprep.subr.bf16.mxu0 %v9424_v32  ;;  %v4196_v32 = vld [vmem:[%s10379_s11 + $0x1f8] sm:$0xff] }
 0x988   : > { %4994 = vmatpush1.bf16.msra.mxu0 %v9426_v35  ;;  %v9449_v35 = vcombine.high %v4191_v24, %v4195_v51  ;;  %v4207_v24 = vld [vmem:[%s10379_s11 + $0x250] sm:$0xff] }
 0x989   : > { %4995 = vmatprep.subr.bf16.mxu0 %v9436_v63  ;;  %v4211_v51 = vld [vmem:[%s10379_s11 + $0x270] sm:$0xff] }
 0x98a   : > { %10494 = vst [vmem:[#allocation16_spill] sm:$0xff] %v9449_v35 }
 0x98c   : > { %4996 = vmatpush1.bf16.msra.mxu0 %v9439_v59 }
 0x98d   : > { %4997 = vmatprep.subr.bf16.mxu0 %v9449_v35 }
 0x990   : > { %4998 = vmatpush1.bf16.msra.mxu0 %v9451_v48  ;;  %v9473_v48 = vcombine.high %v4207_v24, %v4211_v51 }
 0x992   : > { %10498 = vst [vmem:[#allocation20_spill] sm:$0xff] %v9473_v48 }
 0x9df   : > { %v3799_v18 = vpop.permute.xlu1 %3798  ;;  %v3795_v21 = vpop.permute.xlu0 %3794 }
 0x9e0   : > { %v3797_v56 = vmax.f32 %v9250_v34, %v3795_v21  ;;  %v4203_v21 = vld [vmem:[%s10379_s11 + $0x230] sm:$0xff] }
 0x9e2   : > { %v3801_v8 = vmax.f32 %v3797_v56, %v3799_v18  ;;  %v4199_v18 = vld [vmem:[%s10379_s11 + $0x210] sm:$0xff] }
 0x9e3   : > { %v3807_v28 = vpop.permute.xlu1 %3806  ;;  %v3803_v44 = vpop.permute.xlu0 %3802  ;;  %v9461_v59 = vcombine.high %v4199_v18, %v4203_v21 }
 0x9e4   : > { %v3805_v34 = vmax.f32 %v3801_v8, %v3803_v44  ;;  %v9463_v44 = vcombine.low %v4199_v18, %v4203_v21  ;;  %v9475_v18 = vcombine.low %v4207_v24, %v4211_v51 }
 0x9e5   : > { %10496 = vst [vmem:[#allocation18_spill] sm:$0xff] %v9461_v59  ;;  %4999 = vmatprep.subr.bf16.mxu0 %v9461_v59 }
 0x9e6   : > { %v3809_v57 = vmax.f32 %v3805_v34, %v3807_v28  ;;  %10497 = vst [vmem:[#allocation19_spill] sm:$0xff] %v9463_v44  ;;  %5000 = vmatpush1.bf16.msra.mxu0 %v9463_v44  ;;  %10499 = vst [vmem:[#allocation21_spill] sm:$0xff] %v9475_v18 }
 0x9e7   : > { %v3811_v56 = vpop.permute.xlu0 %3810  ;;  %v3815_v8 = vpop.permute.xlu1 %3814  ;;  %5001 = vmatprep.subr.bf16.mxu0 %v9473_v48  ;;  %v4227_v48 = vld [vmem:[%s10379_s11 + $0x2f0] sm:$0xff] }
 0x9e8   : > { %v3813_v63 = vmax.f32 %v3809_v57, %v3811_v56  ;;  %v4215_v56 = vld [vmem:[%s10379_s11 + $0x290] sm:$0xff] }
 0x9ea   : > { %v3817_v28 = vmax.f32 %v3813_v63, %v3815_v8  ;;  %v10500_v63 = vmax.f32 %v9270_v9, 0.0  ;;  %5002 = vmatpush1.bf16.msra.mxu0 %v9475_v18  ;;  %v4219_v8 = vld [vmem:[%s10379_s11 + $0x2b0] sm:$0xff] }
 0x9eb   : > { %v3819_v34 = vpop.permute.xlu0 %3818  ;;  %v3825_v44 = vpop.permute.xlu1 %3824  ;;  %v3835_v9 = vld [vmem:[%s10378_s10 + $0x30] sm:$0xff]  ;;  %v9493_v24 = vcombine.high %v4215_v56, %v4219_v8 }
 0x9ec   : > { %v3821_v57 = vmax.f32 %v3817_v28, %v3819_v34  ;;  %v3831_v28 = vld [vmem:[%s10378_s10 + $0x10] sm:$0xff]  ;;  %v9495_v34 = vcombine.low %v4215_v56, %v4219_v8 }
 0x9ed   : > { %10501 = vst [vmem:[#allocation22_spill] sm:$0xff] %v9493_v24  ;;  %5003 = vmatprep.subr.bf16.mxu0 %v9493_v24  ;;  %v4223_v18 = vld [vmem:[%s10379_s11 + $0x2d0] sm:$0xff]  ;;  %v4188_v24 = vld [vmem:[%s10379_s11 + $0x1b8] sm:$0xff] }
 0x9ee   : > { %v3822_v21 = vmax.f32 %v3821_v57, %v10500_v63  ;;  %10502 = vst [vmem:[#allocation23_spill] sm:$0xff] %v9495_v34  ;;  %v6369_v63 = vcombine.high %v3831_v28, %v3835_v9  ;;  %5004 = vmatpush1.bf16.msra.mxu0 %v9495_v34  ;;  %v9507_v59 = vcombine.high %v4223_v18, %v4227_v48  ;;  %v4231_v56 = vld [vmem:[%s10379_s11 + $0x310] sm:$0xff] }
 0x9ef   : > { %v4235_v8 = vld [vmem:[%s10379_s11 + $0x330] sm:$0xff] }
 0x9f0   : > { %v3827_v51 = vmax.f32 %v3822_v21, %v3825_v44  ;;  %10504 = vst [vmem:[#allocation25_spill] sm:$0xff] %v9507_v59  ;;  %v9511_v44 = vcombine.low %v4223_v18, %v4227_v48  ;;  %v10506_v21 = vcombine.low %v9275_v55, %v9280_v37  ;;  %5005 = vmatprep.subr.bf16.mxu0 %v9507_v59  ;;  %v3832_v48 = vld [vmem:[%s10378_s10 + $0x18] sm:$0xff]  ;;  %v4243_v59 = vld [vmem:[%s10379_s11 + $0x370] sm:$0xff] }
 0x9f1   : > { %v3836_v55 = vld [vmem:[%s10378_s10 + $0x38] sm:$0xff]  ;;  %v9531_v37 = vcombine.high %v4231_v56, %v4235_v8  ;;  %v9533_v18 = vcombine.low %v4231_v56, %v4235_v8  ;;  %v4134_v8 = vld [vmem:[%s10379_s11 + $0x8] sm:$0xff] }
 0x9f2   : > { %v9498_v57 = vpack.c.bf16 %v3827_v51, %v3827_v51  ;;  %10505 = vst [vmem:[#allocation26_spill] sm:$0xff] %v9511_v44  ;;  %5006 = vmatpush1.bf16.msra.mxu0 %v9511_v44  ;;  %v6368_v51 = vcombine.low %v3831_v28, %v3835_v9  ;;  %v4247_v28 = vld [vmem:[%s10379_s11 + $0x390] sm:$0xff] }
 0x9f3   : > { %10507 = vst [vmem:[#allocation27_spill] sm:$0xff] %v9531_v37  ;;  %10508 = vst [vmem:[#allocation28_spill] sm:$0xff] %v9533_v18  ;;  %5007 = vmatprep.subr.bf16.mxu0 %v9531_v37  ;;  %v4251_v9 = vld [vmem:[%s10379_s11 + $0x3b0] sm:$0xff] }
 0x9f4   : > { %10503 = vst [vmem:[#allocation24_spill] sm:$0xff] %v9498_v57  ;;  %6372 = vmatmul.mubr.msk.bf16.vlgmr.msra.gmra.mrb[128].mxu1 %vm2422_vm9, %v9498_v57  ;;  %v4259_v37 = vld [vmem:[%s10379_s11 + $0x3f0] sm:$0xff] }
 0x9f5   : > { %3964 = vmatpush1.bf16.msra.mxu1 %v10506_v21  ;;  %3995 = vmatprep.mubr.bf16.mxu1 %v10474_v33  ;;  %v4239_v21 = vld [vmem:[%s10379_s11 + $0x350] sm:$0xff] }
 0x9f6   : > { %4004 = vmatprep.subr.bf16.mxu1 %v6369_v63  ;;  %v6371_v63 = vcombine.high %v3832_v48, %v3836_v55  ;;  %5008 = vmatpush1.bf16.msra.mxu0 %v9533_v18  ;;  %v9543_v34 = vcombine.high %v4239_v21, %v4243_v59  ;;  %v9547_v56 = vcombine.low %v4239_v21, %v4243_v59  ;;  %v4138_v59 = vld [vmem:[%s10379_s11 + $0x28] sm:$0xff]  ;;  %v4255_v18 = vld [vmem:[%s10379_s11 + $0x3d0] sm:$0xff] }
 0x9f7   : > { %v6370_v21 = vcombine.low %v3832_v48, %v3836_v55  ;;  %v9582_v48 = vcombine.low %v4255_v18, %v4259_v37  ;;  %v4142_v55 = vld [vmem:[%s10379_s11 + $0x48] sm:$0xff] }
 0x9f8   : > { %10509 = vst [vmem:[#allocation29_spill] sm:$0xff] %v9543_v34  ;;  %10510 = vst [vmem:[#allocation30_spill] sm:$0xff] %v9547_v56  ;;  %5009 = vmatprep.subr.bf16.mxu0 %v9543_v34  ;;  %v9569_v34 = vcombine.high %v4134_v8, %v4138_v59 }
 0x9f9   : > { %10514 = vst [vmem:[#allocation34_spill] sm:$0xff] %v9582_v48 }
 0x9fa   : > { %5010 = vmatpush1.bf16.msra.mxu0 %v9547_v56  ;;  %v9578_v56 = vcombine.high %v4255_v18, %v4259_v37  ;;  %v9595_v37 = vcombine.low %v4134_v8, %v4138_v59  ;;  %v4158_v59 = vld [vmem:[%s10379_s11 + $0xc8] sm:$0xff] }
 0x9fc   : > { %6373 = vmatmul.mubr.msk.bf16.vlgmr.msra.gmra.mrb[132].mxu1 %vm2422_vm9, %v9498_v57  ;;  %10513 = vst [vmem:[#allocation33_spill] sm:$0xff] %v9578_v56 }
 0x9fd   : > { %4005 = vmatpush1.bf16.msra.mxu1 %v6368_v51  ;;  %4036 = vmatprep.mubr.bf16.mxu1 %v10474_v33  ;;  %v9564_v51 = vcombine.high %v4247_v28, %v4251_v9 }
 0x9fe   : > { %4045 = vmatprep.subr.bf16.mxu1 %v6371_v63  ;;  %v9566_v63 = vcombine.low %v4247_v28, %v4251_v9  ;;  %v4146_v28 = vld [vmem:[%s10379_s11 + $0x68] sm:$0xff] }
 0x9ff   : > { %10511 = vst [vmem:[#allocation31_spill] sm:$0xff] %v9564_v51  ;;  %5011 = vmatprep.subr.bf16.mxu0 %v9564_v51  ;;  %v9597_v18 = vcombine.high %v4142_v55, %v4146_v28  ;;  %v4150_v9 = vld [vmem:[%s10379_s11 + $0x88] sm:$0xff]  ;;  %v4180_v51 = vld [vmem:[%s10379_s11 + $0x178] sm:$0xff] }
 0xa00   : > { %10512 = vst [vmem:[#allocation32_spill] sm:$0xff] %v9566_v63  ;;  %5012 = vmatpush1.bf16.msra.mxu0 %v9566_v63 }
 0xa01   : > { %5013 = vmatprep.subr.bf16.mxu0 %v9578_v56  ;;  %v4172_v56 = vld [vmem:[%s10379_s11 + $0x138] sm:$0xff] }
 0xa04   : > { %6374 = vmatmul.mubr.msk.bf16.vlgmr.msra.gmra.mrb[136].mxu1 %vm2422_vm9, %v9498_v57  ;;  %5014 = vmatpush1.bf16.msra.mxu0 %v9582_v48 }
 0xa05   : > { %4046 = vmatpush1.bf16.msra.mxu1 %v6370_v21  ;;  %4077 = vmatprep.mubr.bf16.mxu1 %v10474_v33  ;;  %v4154_v21 = vld [vmem:[%s10379_s11 + $0xa8] sm:$0xff] }
 0xa06   : > { %4942 = vmatprep.subr.bf16.mxu1 %v9569_v34  ;;  %5164 = vmatprep.subr.bf16.mxu0 %v9110_v13  ;;  %v9611_v13 = vcombine.low %v4142_v55, %v4146_v28  ;;  %v9615_v8 = vcombine.high %v4150_v9, %v4154_v21  ;;  %v4166_v28 = vld [vmem:[%s10379_s11 + $0x108] sm:$0xff] }
 0xa07   : > { %5016 = vmatmul.mubr.bf16.vlgmr.msra.gmra.mrb[148].mxu0 %v10474_v33 }
 0xa08   : > { %5165 = vmatpush1.bf16.msra.mxu0 %v9108_v45  ;;  %v4162_v45 = vld [vmem:[%s10379_s11 + $0xe8] sm:$0xff] }
 0xa09   : > { %5166 = vmatprep.subr.bf16.mxu0 %v9117_v26  ;;  %v9626_v26 = vcombine.low %v4150_v9, %v4154_v21  ;;  %v9629_v55 = vcombine.high %v4158_v59, %v4162_v45  ;;  %v4174_v9 = vld [vmem:[%s10379_s11 + $0x148] sm:$0xff] }
 0xa0a   : > { %v4178_v21 = vld [vmem:[%s10379_s11 + $0x168] sm:$0xff] }
 0xa0c   : > { %6375 = vmatmul.mubr.msk.bf16.vlgmr.msra.gmra.mrb[140].mxu1 %vm2422_vm9, %v9498_v57  ;;  %5167 = vmatpush1.bf16.msra.mxu0 %v9127_v53  ;;  %v4170_v57 = vld [vmem:[%s10379_s11 + $0x128] sm:$0xff]  ;;  %v9640_v53 = vcombine.low %v4158_v59, %v4162_v45 }
 0xa0d   : > { %4943 = vmatpush1.bf16.msra.mxu1 %v9595_v37  ;;  %4974 = vmatprep.mubr.bf16.mxu1 %v10474_v33  ;;  %v4182_v59 = vld [vmem:[%s10379_s11 + $0x188] sm:$0xff] }
 0xa0e   : > { %4944 = vmatprep.subr.bf16.mxu1 %v9597_v18  ;;  %5168 = vmatprep.subr.bf16.mxu0 %v9130_v20  ;;  %v9643_v20 = vcombine.high %v4166_v28, %v4170_v57  ;;  %v4186_v45 = vld [vmem:[%s10379_s11 + $0x1a8] sm:$0xff] }
 0xa10   : > { %5169 = vmatpush1.bf16.msra.mxu0 %v9135_v54  ;;  %v9654_v54 = vcombine.low %v4166_v28, %v4170_v57  ;;  %v4190_v57 = vld [vmem:[%s10379_s11 + $0x1c8] sm:$0xff] }
 0xa11   : > { %4945 = vmatpush1.bf16.msra.mxu1 %v9611_v13  ;;  %5170 = vmatprep.subr.bf16.mxu0 %v9156_v58  ;;  %v9657_v58 = vcombine.high %v4174_v9, %v4178_v21  ;;  %v4194_v28 = vld [vmem:[%s10379_s11 + $0x1e8] sm:$0xff] }
 0xa12   : > { %4946 = vmatprep.subr.bf16.mxu1 %v9615_v8 }
 0xa14   : > { %5171 = vmatpush1.bf16.msra.mxu0 %v9154_v29  ;;  %v9668_v29 = vcombine.low %v4174_v9, %v4178_v21  ;;  %v4198_v9 = vld [vmem:[%s10379_s11 + $0x208] sm:$0xff] }
 0xa15   : > { %4947 = vmatpush1.bf16.msra.mxu1 %v9626_v26  ;;  %5172 = vmatprep.subr.bf16.mxu0 %v9171_v30  ;;  %v9671_v30 = vcombine.high %v4182_v59, %v4186_v45  ;;  %v4202_v21 = vld [vmem:[%s10379_s11 + $0x228] sm:$0xff] }
 0xa16   : > { %4948 = vmatprep.subr.bf16.mxu1 %v9629_v55 }
 0xa18   : > { %5173 = vmatpush1.bf16.msra.mxu0 %v9169_v36  ;;  %v9682_v36 = vcombine.low %v4182_v59, %v4186_v45  ;;  %v4206_v59 = vld [vmem:[%s10379_s11 + $0x248] sm:$0xff] }
 0xa19   : > { %4949 = vmatpush1.bf16.msra.mxu1 %v9640_v53  ;;  %5174 = vmatprep.subr.bf16.mxu0 %v9176_v40  ;;  %v9685_v40 = vcombine.high %v4190_v57, %v4194_v28  ;;  %v4210_v45 = vld [vmem:[%s10379_s11 + $0x268] sm:$0xff] }
 0xa1a   : > { %4950 = vmatprep.subr.bf16.mxu1 %v9643_v20 }
 0xa1c   : > { %5175 = vmatpush1.bf16.msra.mxu0 %v9186_v17  ;;  %v9696_v17 = vcombine.low %v4190_v57, %v4194_v28  ;;  %v4214_v57 = vld [vmem:[%s10379_s11 + $0x288] sm:$0xff] }
 0xa1d   : > { %4951 = vmatpush1.bf16.msra.mxu1 %v9654_v54  ;;  %5176 = vmatprep.subr.bf16.mxu0 %v9189_v42  ;;  %v9699_v42 = vcombine.high %v4198_v9, %v4202_v21  ;;  %v4218_v28 = vld [vmem:[%s10379_s11 + $0x2a8] sm:$0xff] }
 0xa1e   : > { %4952 = vmatprep.subr.bf16.mxu1 %v9657_v58 }
 0xa20   : > { %5177 = vmatpush1.bf16.msra.mxu0 %v9198_v7  ;;  %v9710_v7 = vcombine.low %v4198_v9, %v4202_v21  ;;  %v4222_v9 = vld [vmem:[%s10379_s11 + $0x2c8] sm:$0xff] }
 0xa21   : > { %4953 = vmatpush1.bf16.msra.mxu1 %v9668_v29  ;;  %5178 = vmatprep.subr.bf16.mxu0 %v9201_v41  ;;  %v9713_v41 = vcombine.high %v4206_v59, %v4210_v45  ;;  %v4226_v21 = vld [vmem:[%s10379_s11 + $0x2e8] sm:$0xff] }
 0xa22   : > { %4954 = vmatprep.subr.bf16.mxu1 %v9671_v30 }
 0xa24   : > { %5179 = vmatpush1.bf16.msra.mxu0 %v9210_v0  ;;  %v9724_v0 = vcombine.low %v4206_v59, %v4210_v45  ;;  %v4230_v59 = vld [vmem:[%s10379_s11 + $0x308] sm:$0xff] }
 0xa25   : > { %4955 = vmatpush1.bf16.msra.mxu1 %v9682_v36  ;;  %5180 = vmatprep.subr.bf16.mxu0 %v9213_v47  ;;  %v9727_v47 = vcombine.high %v4214_v57, %v4218_v28  ;;  %v4234_v45 = vld [vmem:[%s10379_s11 + $0x328] sm:$0xff] }
 0xa26   : > { %4956 = vmatprep.subr.bf16.mxu1 %v9685_v40 }
 0xa28   : > { %5181 = vmatpush1.bf16.msra.mxu0 %v9222_v3  ;;  %v9738_v3 = vcombine.low %v4214_v57, %v4218_v28  ;;  %v4238_v57 = vld [vmem:[%s10379_s11 + $0x348] sm:$0xff] }
 0xa29   : > { %4957 = vmatpush1.bf16.msra.mxu1 %v9696_v17  ;;  %5182 = vmatprep.subr.bf16.mxu0 %v9225_v16  ;;  %v9741_v16 = vcombine.high %v4222_v9, %v4226_v21  ;;  %v4242_v28 = vld [vmem:[%s10379_s11 + $0x368] sm:$0xff] }
 0xa2a   : > { %4958 = vmatprep.subr.bf16.mxu1 %v9699_v42 }
 0xa2c   : > { %5183 = vmatpush1.bf16.msra.mxu0 %v9228_v27  ;;  %v9752_v27 = vcombine.low %v4222_v9, %v4226_v21  ;;  %v4246_v9 = vld [vmem:[%s10379_s11 + $0x388] sm:$0xff] }
 0xa2d   : > { %4959 = vmatpush1.bf16.msra.mxu1 %v9710_v7  ;;  %5184 = vmatprep.subr.bf16.mxu0 %v9248_v43  ;;  %v9755_v43 = vcombine.high %v4230_v59, %v4234_v45  ;;  %v4250_v21 = vld [vmem:[%s10379_s11 + $0x3a8] sm:$0xff] }
 0xa2e   : > { %4960 = vmatprep.subr.bf16.mxu1 %v9713_v41 }
 0xa30   : > { %5185 = vmatpush1.bf16.msra.mxu0 %v9246_v52  ;;  %v9766_v52 = vcombine.low %v4230_v59, %v4234_v45  ;;  %v4254_v59 = vld [vmem:[%s10379_s11 + $0x3c8] sm:$0xff] }
 0xa31   : > { %4961 = vmatpush1.bf16.msra.mxu1 %v9724_v0  ;;  %5186 = vmatprep.subr.bf16.mxu0 %v9298_v25  ;;  %v9769_v25 = vcombine.high %v4238_v57, %v4242_v28  ;;  %v4258_v45 = vld [vmem:[%s10379_s11 + $0x3e8] sm:$0xff] }
 0xa32   : > { %4962 = vmatprep.subr.bf16.mxu1 %v9727_v47 }
 0xa34   : > { %5187 = vmatpush1.bf16.msra.mxu0 %v9296_v2  ;;  %v9780_v2 = vcombine.low %v4238_v57, %v4242_v28  ;;  %v4136_v57 = vld [vmem:[%s10379_s11 + $0x18] sm:$0xff] }
 0xa35   : > { %4963 = vmatpush1.bf16.msra.mxu1 %v9738_v3  ;;  %5188 = vmatprep.subr.bf16.mxu0 %v9316_v10  ;;  %v9783_v10 = vcombine.high %v4246_v9, %v4250_v21  ;;  %v4140_v28 = vld [vmem:[%s10379_s11 + $0x38] sm:$0xff] }
 0xa36   : > { %4964 = vmatprep.subr.bf16.mxu1 %v9741_v16 }
 0xa38   : > { %5189 = vmatpush1.bf16.msra.mxu0 %v9314_v39  ;;  %v9794_v39 = vcombine.low %v4246_v9, %v4250_v21  ;;  %v4144_v9 = vld [vmem:[%s10379_s11 + $0x58] sm:$0xff] }
 0xa39   : > { %4965 = vmatpush1.bf16.msra.mxu1 %v9752_v27  ;;  %5190 = vmatprep.subr.bf16.mxu0 %v9328_v1  ;;  %v9797_v1 = vcombine.high %v4254_v59, %v4258_v45  ;;  %v4148_v21 = vld [vmem:[%s10379_s11 + $0x78] sm:$0xff] }
 0xa3a   : > { %4966 = vmatprep.subr.bf16.mxu1 %v9755_v43 }
 0xa3c   : > { %5191 = vmatpush1.bf16.msra.mxu0 %v9326_v61  ;;  %v9808_v61 = vcombine.low %v4254_v59, %v4258_v45  ;;  %v4152_v59 = vld [vmem:[%s10379_s11 + $0x98] sm:$0xff] }
 0xa3d   : > { %4967 = vmatpush1.bf16.msra.mxu1 %v9766_v52  ;;  %5192 = vmatprep.subr.bf16.mxu0 %v9340_v31  ;;  %v9811_v31 = vcombine.high %v4136_v57, %v4140_v28  ;;  %v4156_v45 = vld [vmem:[%s10379_s11 + $0xb8] sm:$0xff] }
 0xa3e   : > { %4968 = vmatprep.subr.bf16.mxu1 %v9769_v25  ;;  %v9848_v48 = vcombine.low %v4152_v59, %v4156_v45 }
 0xa40   : > { %5193 = vmatpush1.bf16.msra.mxu0 %v9338_v19  ;;  %v9822_v19 = vcombine.low %v4136_v57, %v4140_v28  ;;  %v4160_v57 = vld [vmem:[%s10379_s11 + $0xd8] sm:$0xff] }
 0xa41   : > { %4969 = vmatpush1.bf16.msra.mxu1 %v9780_v2  ;;  %5194 = vmatprep.subr.bf16.mxu0 %v9352_v5  ;;  %v9825_v5 = vcombine.high %v4144_v9, %v4148_v21  ;;  %v4164_v28 = vld [vmem:[%s10379_s11 + $0xf8] sm:$0xff] }
 0xa42   : > { %4970 = vmatprep.subr.bf16.mxu1 %v9783_v10  ;;  %v9860_v63 = vcombine.low %v4160_v57, %v4164_v28 }
 0xa44   : > { %5195 = vmatpush1.bf16.msra.mxu0 %v9350_v22  ;;  %v9835_v22 = vcombine.low %v4144_v9, %v4148_v21  ;;  %v9851_v9 = vcombine.high %v4160_v57, %v4164_v28  ;;  %v4168_v21 = vld [vmem:[%s10379_s11 + $0x118] sm:$0xff] }
 0xa45   : > { %4971 = vmatpush1.bf16.msra.mxu1 %v9794_v39  ;;  %5246 = vmatprep.subr.bf16.mxu0 %v9362_v11  ;;  %v9839_v11 = vcombine.high %v4152_v59, %v4156_v45  ;;  %v9863_v59 = vcombine.high %v4168_v21, %v4172_v56  ;;  %v4176_v45 = vld [vmem:[%s10379_s11 + $0x158] sm:$0xff]  ;;  %v9872_v44 = vcombine.low %v4168_v21, %v4172_v56 }
 0xa46   : > { %4972 = vmatprep.subr.bf16.mxu1 %v9797_v1  ;;  %v9875_v57 = vcombine.high %v4176_v45, %v4180_v51  ;;  %v4184_v28 = vld [vmem:[%s10379_s11 + $0x198] sm:$0xff]  ;;  %v9884_v35 = vcombine.low %v4176_v45, %v4180_v51 }
 0xa47   : > { %10515 = vst [vmem:[#allocation35_spill] sm:$0xff] %v9872_v44  ;;  %v9887_v56 = vcombine.high %v4184_v28, %v4188_v24  ;;  %v4192_v21 = vld [vmem:[%s10379_s11 + $0x1d8] sm:$0xff]  ;;  %v9896_v6 = vcombine.low %v4184_v28, %v4188_v24 }
 0xa48   : > { %10516 = vst [vmem:[#allocation36_spill] sm:$0xff] %v9875_v57  ;;  %10517 = vst [vmem:[#allocation37_spill] sm:$0xff] %v9884_v35  ;;  %v9899_v51 = vcombine.high %v4192_v21, %v4196_v32  ;;  %v4200_v45 = vld [vmem:[%s10379_s11 + $0x218] sm:$0xff] }
 0xa49   : > { %4973 = vmatpush1.bf16.msra.mxu1 %v9808_v61  ;;  %10518 = vst [vmem:[#allocation38_spill] sm:$0xff] %v9887_v56  ;;  %10519 = vst [vmem:[#allocation39_spill] sm:$0xff] %v9896_v6  ;;  %v4208_v28 = vld [vmem:[%s10379_s11 + $0x258] sm:$0xff] }
 0xa4a   : > { %5024 = vmatprep.subr.bf16.mxu1 %v9811_v31  ;;  %10520 = vst [vmem:[#allocation40_spill] sm:$0xff] %v9899_v51 }
 0xa4c   : > { %4975 = vmatmul.mubr.bf16.vlgmr.msra.gmra.mrb[144].mxu1 %v10474_v33 }
 0xa4d   : > { %5025 = vmatpush1.bf16.msra.mxu1 %v9822_v19  ;;  %5056 = vmatprep.mubr.bf16.mxu1 %v10474_v33 }
 0xa4e   : > { %5026 = vmatprep.subr.bf16.mxu1 %v9825_v5 }
 0xa51   : > { %5027 = vmatpush1.bf16.msra.mxu1 %v9835_v22 }
 0xa52   : > { %5028 = vmatprep.subr.bf16.mxu1 %v9839_v11 }
 0xa55   : > { %5029 = vmatpush1.bf16.msra.mxu1 %v9848_v48 }
 0xa56   : > { %5030 = vmatprep.subr.bf16.mxu1 %v9851_v9 }
 0xa59   : > { %5031 = vmatpush1.bf16.msra.mxu1 %v9860_v63 }
 0xa5a   : > { %5032 = vmatprep.subr.bf16.mxu1 %v9863_v59 }
 0xa5d   : > { %5033 = vmatpush1.bf16.msra.mxu1 %v9872_v44  ;;  %v9908_v44 = vcombine.low %v4192_v21, %v4196_v32  ;;  %v4216_v21 = vld [vmem:[%s10379_s11 + $0x298] sm:$0xff] }
 0xa5e   : > { %5034 = vmatprep.subr.bf16.mxu1 %v9875_v57  ;;  %v4204_v57 = vld [vmem:[%s10379_s11 + $0x238] sm:$0xff] }
 0xa5f   : > { %10521 = vst [vmem:[#allocation41_spill] sm:$0xff] %v9908_v44  ;;  %v9911_v24 = vcombine.high %v4200_v45, %v4204_v57 }
 0xa61   : > { %5035 = vmatpush1.bf16.msra.mxu1 %v9884_v35  ;;  %10522 = vst [vmem:[#allocation42_spill] sm:$0xff] %v9911_v24  ;;  %v9920_v35 = vcombine.low %v4200_v45, %v4204_v57  ;;  %v4224_v45 = vld [vmem:[%s10379_s11 + $0x2d8] sm:$0xff] }
 0xa62   : > { %5036 = vmatprep.subr.bf16.mxu1 %v9887_v56  ;;  %v4212_v56 = vld [vmem:[%s10379_s11 + $0x278] sm:$0xff] }
 0xa63   : > { %10523 = vst [vmem:[#allocation43_spill] sm:$0xff] %v9920_v35  ;;  %v9923_v32 = vcombine.high %v4208_v28, %v4212_v56 }
 0xa65   : > { %5037 = vmatpush1.bf16.msra.mxu1 %v9896_v6  ;;  %10524 = vst [vmem:[#allocation44_spill] sm:$0xff] %v9923_v32  ;;  %v9932_v6 = vcombine.low %v4208_v28, %v4212_v56  ;;  %v4232_v28 = vld [vmem:[%s10379_s11 + $0x318] sm:$0xff] }
 0xa66   : > { %5038 = vmatprep.subr.bf16.mxu1 %v9899_v51  ;;  %v4220_v51 = vld [vmem:[%s10379_s11 + $0x2b8] sm:$0xff] }
 0xa67   : > { %10525 = vst [vmem:[#allocation45_spill] sm:$0xff] %v9932_v6  ;;  %v9935_v57 = vcombine.high %v4216_v21, %v4220_v51 }
 0xa69   : > { %5039 = vmatpush1.bf16.msra.mxu1 %v9908_v44  ;;  %10526 = vst [vmem:[#allocation46_spill] sm:$0xff] %v9935_v57  ;;  %v9944_v44 = vcombine.low %v4216_v21, %v4220_v51  ;;  %v4240_v21 = vld [vmem:[%s10379_s11 + $0x358] sm:$0xff] }
 0xa6a   : > { %5040 = vmatprep.subr.bf16.mxu1 %v9911_v24  ;;  %v4228_v24 = vld [vmem:[%s10379_s11 + $0x2f8] sm:$0xff] }
 0xa6b   : > { %10527 = vst [vmem:[#allocation47_spill] sm:$0xff] %v9944_v44  ;;  %v9947_v56 = vcombine.high %v4224_v45, %v4228_v24 }
 0xa6d   : > { %5041 = vmatpush1.bf16.msra.mxu1 %v9920_v35  ;;  %10528 = vst [vmem:[#allocation48_spill] sm:$0xff] %v9947_v56  ;;  %v9956_v35 = vcombine.low %v4224_v45, %v4228_v24  ;;  %v4248_v45 = vld [vmem:[%s10379_s11 + $0x398] sm:$0xff] }
 0xa6e   : > { %5042 = vmatprep.subr.bf16.mxu1 %v9923_v32  ;;  %v4236_v32 = vld [vmem:[%s10379_s11 + $0x338] sm:$0xff] }
 0xa6f   : > { %10529 = vst [vmem:[#allocation49_spill] sm:$0xff] %v9956_v35  ;;  %v9959_v51 = vcombine.high %v4232_v28, %v4236_v32 }
 0xa71   : > { %5043 = vmatpush1.bf16.msra.mxu1 %v9932_v6  ;;  %10530 = vst [vmem:[#allocation50_spill] sm:$0xff] %v9959_v51  ;;  %v9968_v6 = vcombine.low %v4232_v28, %v4236_v32  ;;  %v4256_v28 = vld [vmem:[%s10379_s11 + $0x3d8] sm:$0xff] }
 0xa72   : > { %5044 = vmatprep.subr.bf16.mxu1 %v9935_v57  ;;  %v4244_v57 = vld [vmem:[%s10379_s11 + $0x378] sm:$0xff] }
 0xa73   : > { %v9971_v24 = vcombine.high %v4240_v21, %v4244_v57 }
 0xa75   : > { %5045 = vmatpush1.bf16.msra.mxu1 %v9944_v44  ;;  %v9980_v44 = vcombine.low %v4240_v21, %v4244_v57 }
 0xa76   : > { %5046 = vmatprep.subr.bf16.mxu1 %v9947_v56  ;;  %v4252_v56 = vld [vmem:[%s10379_s11 + $0x3b8] sm:$0xff] }
 0xa77   : > { %v9983_v32 = vcombine.high %v4248_v45, %v4252_v56 }
 0xa79   : > { %5047 = vmatpush1.bf16.msra.mxu1 %v9956_v35  ;;  %v9992_v35 = vcombine.low %v4248_v45, %v4252_v56  ;;  %v10012_v56 = vpop.f32.mrb[144].mxu0 }
 0xa7a   : > { %5048 = vmatprep.subr.bf16.mxu1 %v9959_v51  ;;  %v4260_v51 = vld [vmem:[%s10379_s11 + $0x3f8] sm:$0xff] }
 0xa7b   : > { %v9995_v57 = vcombine.high %v4256_v28, %v4260_v51  ;;  %v9998_v21 = vcombine.low %v4256_v28, %v4260_v51 }
 0xa7d   : > { %5049 = vmatpush1.bf16.msra.mxu1 %v9968_v6 }
 0xa7e   : > { %5050 = vmatprep.subr.bf16.mxu1 %v9971_v24 }
 0xa81   : > { %5051 = vmatpush1.bf16.msra.mxu1 %v9980_v44 }
 0xa82   : > { %5052 = vmatprep.subr.bf16.mxu1 %v9983_v32 }
 0xa85   : > { %5053 = vmatpush1.bf16.msra.mxu1 %v9992_v35 }
 0xa86   : > { %5054 = vmatprep.subr.bf16.mxu1 %v9995_v57 }
 0xa89   : > { %5055 = vmatpush1.bf16.msra.mxu1 %v9998_v21 }
 0xa8a   : > { %5205 = vmatprep.subr.bf16.mxu1 %v9569_v34  ;;  %v10015_v34 = vpop.f32.mrb[145].mxu0 }
 0xa8c   : > { %5057 = vmatmul.mubr.bf16.vlgmr.msra.gmra.mrb[148].mxu1 %v10474_v33 }
 0xa8d   : > { %5206 = vmatpush1.bf16.msra.mxu1 %v9595_v37  ;;  %v5073_v37 = vcombine.low %v10012_v56, %v10015_v34 }
 0xa8e   : > { %5207 = vmatprep.subr.bf16.mxu1 %v9597_v18  ;;  %v4939_v18 = vpop.f32.mrb[146].mxu0 }
 0xa91   : > { %5208 = vmatpush1.bf16.msra.mxu1 %v9611_v13  ;;  %v4940_v13 = vpop.f32.mrb[147].mxu0 }
 0xa92   : > { %5209 = vmatprep.subr.bf16.mxu1 %v9615_v8  ;;  %v3837_v8 = vld [vmem:[%s10380_s12] sm:$0xff] }
 0xa95   : > { %5210 = vmatpush1.bf16.msra.mxu1 %v9626_v26  ;;  %v3842_v26 = vrot.slane %v3837_v8, %v8677_v12 }
 0xa96   : > { %5211 = vmatprep.subr.bf16.mxu1 %v9629_v55  ;;  %v3846_v55 = vrot.slane %v3837_v8, %v8696_v14 }
 0xa99   : > { %5212 = vmatpush1.bf16.msra.mxu1 %v9640_v53 }
 0xa9a   : > { %5213 = vmatprep.subr.bf16.mxu1 %v9643_v20 }
 0xa9d   : > { %5214 = vmatpush1.bf16.msra.mxu1 %v9654_v54 }
 0xa9e   : > { %5215 = vmatprep.subr.bf16.mxu1 %v9657_v58  ;;  %v3849_v58 = vsub.s32 2, %v8674_v15 }
 0xaa1   : > { %5216 = vmatpush1.bf16.msra.mxu1 %v9668_v29 }
 0xaa2   : > { %5217 = vmatprep.subr.bf16.mxu1 %v9671_v30  ;;  %v7599_v30 = vmov 1983009808  }
 0xaa5   : > { %5218 = vmatpush1.bf16.msra.mxu1 %v9682_v36  ;;  %v4097_v36 = vunpack.c.l.s4 %v7599_v30 }
 0xaa6   : > { %5219 = vmatprep.subr.bf16.mxu1 %v9685_v40 }
 0xaa9   : > { %5220 = vmatpush1.bf16.msra.mxu1 %v9696_v17  ;;  %v3853_v17 = vsub.s32 3, %v8674_v15 }
 0xaaa   : > { %5221 = vmatprep.subr.bf16.mxu1 %v9699_v42 }
 0xaad   : > { %5222 = vmatpush1.bf16.msra.mxu1 %v9710_v7 }
 0xaae   : > { %5223 = vmatprep.subr.bf16.mxu1 %v9713_v41  ;;  %v3850_v41 = vrot.slane %v3837_v8, %v3849_v58 }
 0xab1   : > { %5224 = vmatpush1.bf16.msra.mxu1 %v9724_v0  ;;  %v4098_v0 = vunpack.c.0.s8 %v4097_v36 }
 0xab2   : > { %5225 = vmatprep.subr.bf16.mxu1 %v9727_v47  ;;  %v3854_v47 = vrot.slane %v3837_v8, %v3853_v17 }
 0xab5   : > { %5226 = vmatpush1.bf16.msra.mxu1 %v9738_v3 }
 0xab6   : > { %5227 = vmatprep.subr.bf16.mxu1 %v9741_v16 }
 0xab9   : > { %5228 = vmatpush1.bf16.msra.mxu1 %v9752_v27 }
 0xaba   : > { %5229 = vmatprep.subr.bf16.mxu1 %v9755_v43  ;;  %v3857_v43 = vsub.s32 4, %v8674_v15 }
 0xabd   : > { %5230 = vmatpush1.bf16.msra.mxu1 %v9766_v52  ;;  %v4101_v52 = vsub.s32 %v4098_v0, %v8674_v15 }
 0xabe   : > { %5231 = vmatprep.subr.bf16.mxu1 %v9769_v25 }
 0xac1   : > { %5232 = vmatpush1.bf16.msra.mxu1 %v9780_v2 }
 0xac2   : > { %5233 = vmatprep.subr.bf16.mxu1 %v9783_v10  ;;  %v3861_v10 = vsub.s32 5, %v8674_v15 }
 0xac4   : > { %v3862_v45 = vrot.slane %v3837_v8, %v3861_v10 }
 0xac5   : > { %5234 = vmatpush1.bf16.msra.mxu1 %v9794_v39 }
 0xac6   : > { %5235 = vmatprep.subr.bf16.mxu1 %v9797_v1 }
 0xac7   : > { %v3956_v53 = vpop.f32.mrb[128].mxu1 }
 0xac8   : > { %v3957_v20 = vadd.f32 %v3956_v53, %v3842_v26  ;;  %v3958_v54 = vpop.f32.mrb[129].mxu1 }
 0xac9   : > { %v3959_v29 = vadd.f32 %v3958_v54, %v3846_v55  ;;  %v3960_v40 = vpop.f32.mrb[130].mxu1  ;;  %5236 = vmatpush1.bf16.msra.mxu1 %v9808_v61  ;;  %v3858_v61 = vrot.slane %v3837_v8, %v3857_v43  ;;  %v3865_v55 = vsub.s32 6, %v8674_v15  ;;  %v3869_v54 = vsub.s32 7, %v8674_v15 }
 0xaca   : > { %v3961_v42 = vpop.f32.mrb[131].mxu1  ;;  %5287 = vmatprep.subr.bf16.mxu1 %v9811_v31 }
 0xacb   : > { %v4094_v7 = vcombine.low %v3957_v20, %v3959_v29  ;;  %v3866_v36 = vrot.slane %v3837_v8, %v3865_v55  ;;  %v3870_v40 = vrot.slane %v3837_v8, %v3869_v54 }
 0xacd   : > { %v4102_v31 = vrot.slane %v4094_v7, %v4101_v52 }
 0xacf   : > { %v3997_v3 = vpop.f32.mrb[132].mxu1 }
 0xad0   : > { %v3998_v16 = vadd.f32 %v3997_v3, %v3850_v41  ;;  %v3999_v27 = vpop.f32.mrb[133].mxu1 }
 0xad1   : > { %v4000_v25 = vadd.f32 %v3999_v27, %v3854_v47  ;;  %v4001_v2 = vpop.f32.mrb[134].mxu1 }
 0xad2   : > { %v4002_v39 = vpop.f32.mrb[135].mxu1 }
 0xad3   : > { %v4095_v1 = vcombine.low %v3998_v16, %v4000_v25 }
 0xad5   : > { %v4109_v51 = vrot.slane %v4095_v1, %v4101_v52 }
 0xad7   : > { %v4110_v28 = vcombine.low %v4102_v31, %v4109_v51  ;;  %v4038_v18 = vpop.f32.mrb[136].mxu1 }
 0xad8   : > { %v4039_v13 = vadd.f32 %v4038_v18, %v3858_v61  ;;  %v4040_v26 = vpop.f32.mrb[137].mxu1 }
 0xad9   : > { %4130 = vst [vmem:[#allocation2] sm:$0xff] %v4110_v28  ;;  %v4041_v53 = vadd.f32 %v4040_v26, %v3862_v45  ;;  %v4042_v20 = vpop.f32.mrb[138].mxu1  ;;  %v7600_v45 = vmov 1966171168  }
 0xada   : > { %v4043_v29 = vpop.f32.mrb[139].mxu1  ;;  %v5017_v42 = vpop.f32.mrb[148].mxu0  ;;  %v5078_v28 = vunpack.c.l.s4 %v7600_v45 }
 0xadb   : > { %v4111_v30 = vcombine.low %v4039_v13, %v4041_v53  ;;  %v5019_v7 = vpop.f32.mrb[149].mxu0 }
 0xadc   : > { %v5075_v0 = vcombine.low %v5017_v42, %v5019_v7  ;;  %v5021_v47 = vpop.f32.mrb[150].mxu0  ;;  %v5079_v18 = vunpack.c.0.s8 %v5078_v28 }
 0xadd   : > { %v5022_v27 = vpop.f32.mrb[151].mxu0  ;;  %v4119_v61 = vrot.slane %v4111_v30, %v4101_v52 }
 0xade   : > { %v10067_v8 = vsub.s32 %v5079_v18, %v8674_v15 }
 0xadf   : > { %v4079_v41 = vpop.f32.mrb[140].mxu1 }
 0xae0   : > { %v4080_v3 = vadd.f32 %v4079_v41, %v3866_v36  ;;  %v4081_v16 = vpop.f32.mrb[141].mxu1  ;;  %v5083_v53 = vrot.slane %v5073_v37, %v10067_v8  ;;  %v5097_v7 = vrot.slane %v5075_v0, %v10067_v8 }
 0xae1   : > { %v4082_v25 = vadd.f32 %v4081_v16, %v3870_v40  ;;  %v4083_v2 = vpop.f32.mrb[142].mxu1 }
 0xae2   : > { %v4084_v39 = vpop.f32.mrb[143].mxu1 }
 0xae3   : > { %v4112_v1 = vcombine.low %v4080_v3, %v4082_v25 }
 0xae5   : > { %v4126_v31 = vrot.slane %v4112_v1, %v4101_v52 }
 0xae7   : > { %v4127_v51 = vcombine.low %v4119_v61, %v4126_v31 }
 0xae9   : > { %4131 = vst [vmem:[#allocation2 + $0x8] sm:$0xff] %v4127_v51 }
 0xaf0   : > { %v4132_v37 = vld [vmem:[#allocation2] ss:$2 sm:$0xff] }
 0xb1f   : > { %v4976_v13 = vpop.f32.mrb[144].mxu1 }
 0xb20   : > { %v4978_v26 = vpop.f32.mrb[145].mxu1 }
 0xb21   : > { %v5074_v20 = vcombine.low %v4976_v13, %v4978_v26  ;;  %v4980_v29 = vpop.f32.mrb[146].mxu1 }
 0xb22   : > { %v4981_v36 = vpop.f32.mrb[147].mxu1 }
 0xb23   : > { %v5090_v52 = vrot.slane %v5074_v20, %v10067_v8 }
 0xb25   : > { %v5105_v30 = vcombine.low %v5083_v53, %v5090_v52 }
 0xb27   : > { %v5113_v25 = vrot.slane %v5105_v30, %v10067_v8 }
 0xb5f   : > { %v5058_v40 = vpop.f32.mrb[148].mxu1 }
 0xb60   : > { %v5060_v42 = vpop.f32.mrb[149].mxu1 }
 0xb61   : > { %v5076_v41 = vcombine.low %v5058_v40, %v5060_v42  ;;  %v5062_v47 = vpop.f32.mrb[150].mxu1 }
 0xb62   : > { %v5063_v3 = vpop.f32.mrb[151].mxu1 }
 0xb63   : > { %v5104_v16 = vrot.slane %v5076_v41, %v10067_v8 }
 0xb65   : > { %v5106_v27 = vcombine.low %v5097_v7, %v5104_v16 }
 0xb67   : > { %v5120_v56 = vrot.slane %v5106_v27, %v10067_v8 }
 0xb69   : > { %v5121_v34 = vcombine.low %v5113_v25, %v5120_v56  ;;  %v10547_v25 = vld [vmem:[#allocation19_spill] sm:$0xff] }
 0xb6a   : > { %v10548_v56 = vld [vmem:[#allocation43_spill] sm:$0xff] }
 0xb6b   : > { %v5123_v2 = vadd.f32 %v5121_v34, %v4132_v37  ;;  %v10549_v34 = vld [vmem:[#allocation20_spill] sm:$0xff] }
 0xb6c   : > { %v10550_v37 = vld [vmem:[#allocation44_spill] sm:$0xff] }
 0xb6d   : > { %v5124_v39 = vmul.f32 0.5, %v5123_v2  ;;  %v5129_v1 = vrot.slane %v5123_v2, 2  ;;  %v5135_v31 = vrot.slane %v5123_v2, 4  ;;  %v5138_v0 = vrot.slane %v5123_v2, 6  ;;  %v10551_v2 = vld [vmem:[#allocation21_spill] sm:$0xff] }
 0xb6f   : > { %7476 = vtanh.f32 %v5124_v39  ;;  %v5131_v61 = vmul.f32 0.5, %v5129_v1  ;;  %v5140_v51 = vmul.f32 0.5, %v5138_v0  ;;  %v10552_v39 = vld [vmem:[#allocation45_spill] sm:$0xff]  ;;  %v10553_v1 = vld [vmem:[#allocation22_spill] sm:$0xff]  ;;  %v10556_v0 = vld [vmem:[#allocation47_spill] sm:$0xff] }
 0xb71   : > { %7478 = vtanh.f32 %v5131_v61  ;;  %v10554_v61 = vld [vmem:[#allocation46_spill] sm:$0xff] }
 0xb72   : > { %7480 = vtanh.f32 %v5135_v31  ;;  %v10555_v31 = vld [vmem:[#allocation23_spill] sm:$0xff] }
 0xb73   : > { %7482 = vtanh.f32 %v5140_v51  ;;  %v10557_v51 = vld [vmem:[#allocation25_spill] sm:$0xff] }
 0xb79   : > { %v7477_v45 = vpop.eup %7476 }
 0xb7a   : > { %v5126_v28 = vadd.f32 1.0, %v7477_v45  ;;  %v10558_v45 = vld [vmem:[#allocation48_spill] sm:$0xff] }
 0xb7b   : > { %v7479_v18 = vpop.eup %7478 }
 0xb7c   : > { %v5127_v13 = vmul.f32 0.5, %v5126_v28  ;;  %v5133_v26 = vadd.f32 1.0, %v7479_v18  ;;  %v7481_v20 = vpop.eup %7480  ;;  %v10559_v28 = vld [vmem:[#allocation26_spill] sm:$0xff]  ;;  %v10560_v18 = vld [vmem:[#allocation49_spill] sm:$0xff] }
 0xb7d   : > { %v7483_v30 = vpop.eup %7482 }
 0xb7e   : > { %v5134_v53 = vmul.f32 0.5, %v5133_v26  ;;  %v5145_v36 = vmul.f32 %v7481_v20, %v5127_v13  ;;  %v5142_v40 = vadd.f32 1.0, %v7483_v30  ;;  %v10561_v13 = vld [vmem:[#allocation27_spill] sm:$0xff]  ;;  %v10562_v26 = vld [vmem:[#allocation50_spill] sm:$0xff]  ;;  %v10564_v20 = vld [vmem:[#allocation29_spill] sm:$0xff] }
 0xb7f   : > { %v5412_v30 = vld [vmem:[%s10381_s13] sm:$0xff] }
 0xb80   : > { %v5144_v29 = vmul.f32 0.0, %v5134_v53  ;;  %v5143_v42 = vmul.f32 0.5, %v5142_v40  ;;  %v10563_v53 = vld [vmem:[#allocation28_spill] sm:$0xff] }
 0xb81   : > { %v10567_v40 = vld [vmem:[#allocation32_spill] sm:$0xff] }
 0xb82   : > { %v10078_v52 = vadd.f32 %v5145_v36, %v5144_v29  ;;  %v10565_v29 = vld [vmem:[#allocation30_spill] sm:$0xff]  ;;  %v10566_v36 = vld [vmem:[#allocation31_spill] sm:$0xff] }
 0xb84   : > { %7484 = vtanh.f32 %v10078_v52 }
 0xb8e   : > { %v7485_v7 = vpop.eup %7484 }
 0xb8f   : > { %v5148_v41 = vmul.f32 %v7485_v7, %v5143_v42  ;;  %v5417_v42 = vld [vmem:[%s10381_s13 + $0x28] sm:$0xff] }
 0xb90   : > { %v10569_v7 = vld [vmem:[#allocation34_spill] sm:$0xff] }
 0xb91   : > { %v5159_v47 = vrot.slane %v5148_v41, %v8696_v14  ;;  %v5155_v3 = vrot.slane %v5148_v41, %v8677_v12 }
 0xb93   : > { %v5163_v16 = vpack.c.bf16 %v5159_v47, %v5159_v47  ;;  %v10083_v27 = vpack.c.bf16 %v5155_v3, %v5155_v3  ;;  %v5418_v47 = vld [vmem:[%s10381_s13 + $0x30] sm:$0xff]  ;;  %v10570_v3 = vld [vmem:[#allocation24_spill] sm:$0xff] }
 0xb95   : > { %5196 = vmatprep.mubr.bf16.mxu0 %v5163_v16  ;;  %5237 = vmatprep.mubr.bf16.mxu1 %v5163_v16 }
 0xb96   : > { %5197 = vmatmul.mubr.bf16.vlgmr.msra.gmra.mrb[152].mxu0 %v10083_v27  ;;  %5238 = vmatmul.mubr.bf16.vlgmr.msra.gmra.mrb[152].mxu1 %v10083_v27 }
 0xb97   : > { %5247 = vmatpush1.bf16.msra.mxu0 %v9364_v60  ;;  %5288 = vmatpush1.bf16.msra.mxu1 %v9822_v19  ;;  %v10531_v60 = vld [vmem:[#allocation12_spill] sm:$0xff] }
 0xb98   : > { %5278 = vmatprep.mubr.bf16.mxu0 %v5163_v16  ;;  %5319 = vmatprep.mubr.bf16.mxu1 %v5163_v16  ;;  %v10541_v19 = vld [vmem:[#allocation16_spill] sm:$0xff]  ;;  %v5421_v16 = vshrl.u32 %v10570_v3, 16 }
 0xb99   : > { %5248 = vmatprep.subr.bf16.mxu0 %v9376_v50  ;;  %5289 = vmatprep.subr.bf16.mxu1 %v9825_v5  ;;  %v10532_v50 = vld [vmem:[#allocation35_spill] sm:$0xff]  ;;  %v10542_v5 = vld [vmem:[#allocation40_spill] sm:$0xff] }
 0xb9b   : > { %5249 = vmatpush1.bf16.msra.mxu0 %v9378_v46  ;;  %5290 = vmatpush1.bf16.msra.mxu1 %v9835_v22  ;;  %v10533_v46 = vld [vmem:[#allocation11_spill] sm:$0xff]  ;;  %v10543_v22 = vld [vmem:[#allocation17_spill] sm:$0xff] }
 0xb9c   : > { %5250 = vmatprep.subr.bf16.mxu0 %v9388_v4  ;;  %5291 = vmatprep.subr.bf16.mxu1 %v9839_v11  ;;  %v10534_v4 = vld [vmem:[#allocation36_spill] sm:$0xff]  ;;  %v10544_v11 = vld [vmem:[#allocation41_spill] sm:$0xff] }
 0xb9f   : > { %5251 = vmatpush1.bf16.msra.mxu0 %v9390_v49  ;;  %5292 = vmatpush1.bf16.msra.mxu1 %v9848_v48  ;;  %v10535_v49 = vld [vmem:[#allocation13_spill] sm:$0xff]  ;;  %v10537_v48 = vld [vmem:[#allocation14_spill] sm:$0xff] }
 0xba0   : > { %5252 = vmatprep.subr.bf16.mxu0 %v9400_v23  ;;  %5293 = vmatprep.subr.bf16.mxu1 %v9851_v9  ;;  %v10536_v23 = vld [vmem:[#allocation37_spill] sm:$0xff]  ;;  %v10545_v9 = vld [vmem:[#allocation18_spill] sm:$0xff] }
 0xba3   : > { %5253 = vmatpush1.bf16.msra.mxu0 %v9402_v38  ;;  %5294 = vmatpush1.bf16.msra.mxu1 %v9860_v63  ;;  %v10538_v38 = vld [vmem:[#allocation38_spill] sm:$0xff]  ;;  %v10539_v63 = vld [vmem:[#allocation15_spill] sm:$0xff] }
 0xba4   : > { %5254 = vmatprep.subr.bf16.mxu0 %v9412_v62  ;;  %5295 = vmatprep.subr.bf16.mxu1 %v9863_v59  ;;  %v10540_v62 = vld [vmem:[#allocation39_spill] sm:$0xff]  ;;  %v10546_v59 = vld [vmem:[#allocation42_spill] sm:$0xff] }
 0xba7   : > { %5255 = vmatpush1.bf16.msra.mxu0 %v10531_v60  ;;  %5296 = vmatpush1.bf16.msra.mxu1 %v10532_v50  ;;  %v5419_v50 = vld [vmem:[%s10381_s13 + $0x38] sm:$0xff] }
 0xba8   : > { %5256 = vmatprep.subr.bf16.mxu0 %v10533_v46  ;;  %5297 = vmatprep.subr.bf16.mxu1 %v10534_v4 }
 0xbab   : > { %5257 = vmatpush1.bf16.msra.mxu0 %v10535_v49  ;;  %5298 = vmatpush1.bf16.msra.mxu1 %v10536_v23  ;;  %v7444_v23 = vld [vmem:[%s10383_s15 + $0x40] sm:$0xff]  }
 0xbac   : > { %5258 = vmatprep.subr.bf16.mxu0 %v10537_v48  ;;  %5299 = vmatprep.subr.bf16.mxu1 %v10538_v38  ;;  %v7445_v48 = vld [vmem:[%s10383_s15] sm:$0xff]   ;;  %v7446_v38 = vld [vmem:[%s10383_s15 + $0x48] sm:$0xff]  }
 0xbaf   : > { %5259 = vmatpush1.bf16.msra.mxu0 %v10539_v63  ;;  %5300 = vmatpush1.bf16.msra.mxu1 %v10540_v62  ;;  %v7448_v63 = vld [vmem:[%s10383_s15 + $0x8] sm:$0xff]   ;;  %v7449_v62 = vld [vmem:[%s10383_s15 + $0x80] sm:$0xff]  }
 0xbb0   : > { %5260 = vmatprep.subr.bf16.mxu0 %v10541_v19  ;;  %5301 = vmatprep.subr.bf16.mxu1 %v10542_v5  ;;  %v7450_v19 = vld [vmem:[%s10383_s15 + $0x50] sm:$0xff]   ;;  %v7451_v5 = vld [vmem:[%s10383_s15 + $0xc8] sm:$0xff]  }
 0xbb3   : > { %5261 = vmatpush1.bf16.msra.mxu0 %v10543_v22  ;;  %5302 = vmatpush1.bf16.msra.mxu1 %v10544_v11  ;;  %v7452_v22 = vld [vmem:[%s10383_s15 + $0x10] sm:$0xff]   ;;  %v7453_v11 = vld [vmem:[%s10383_s15 + $0x88] sm:$0xff]  }
 0xbb4   : > { %5262 = vmatprep.subr.bf16.mxu0 %v10545_v9  ;;  %5303 = vmatprep.subr.bf16.mxu1 %v10546_v59  ;;  %v7454_v9 = vld [vmem:[%s10383_s15 + $0x58] sm:$0xff]   ;;  %v7455_v59 = vld [vmem:[%s10383_s15 + $0xd0] sm:$0xff]  }
 0xbb7   : > { %5263 = vmatpush1.bf16.msra.mxu0 %v10547_v25  ;;  %5304 = vmatpush1.bf16.msra.mxu1 %v10548_v56  ;;  %v7456_v25 = vld [vmem:[%s10383_s15 + $0x18] sm:$0xff]   ;;  %v7457_v56 = vld [vmem:[%s10383_s15 + $0x90] sm:$0xff]  }
 0xbb8   : > { %5264 = vmatprep.subr.bf16.mxu0 %v10549_v34  ;;  %5305 = vmatprep.subr.bf16.mxu1 %v10550_v37  ;;  %v7458_v34 = vld [vmem:[%s10383_s15 + $0x60] sm:$0xff]   ;;  %v7459_v37 = vld [vmem:[%s10383_s15 + $0xd8] sm:$0xff]  }
 0xbbb   : > { %5265 = vmatpush1.bf16.msra.mxu0 %v10551_v2  ;;  %5306 = vmatpush1.bf16.msra.mxu1 %v10552_v39  ;;  %v7460_v2 = vld [vmem:[%s10383_s15 + $0x20] sm:$0xff]   ;;  %v7461_v39 = vld [vmem:[%s10383_s15 + $0x98] sm:$0xff]  }
 0xbbc   : > { %5266 = vmatprep.subr.bf16.mxu0 %v10553_v1  ;;  %5307 = vmatprep.subr.bf16.mxu1 %v10554_v61  ;;  %v7462_v1 = vld [vmem:[%s10383_s15 + $0x68] sm:$0xff]   ;;  %v7463_v61 = vld [vmem:[%s10383_s15 + $0xe0] sm:$0xff]  }
 0xbbf   : > { %5267 = vmatpush1.bf16.msra.mxu0 %v10555_v31  ;;  %5308 = vmatpush1.bf16.msra.mxu1 %v10556_v0  ;;  %v7464_v31 = vld [vmem:[%s10383_s15 + $0x28] sm:$0xff]   ;;  %v7465_v0 = vld [vmem:[%s10383_s15 + $0xa0] sm:$0xff]  }
 0xbc0   : > { %5268 = vmatprep.subr.bf16.mxu0 %v10557_v51  ;;  %5309 = vmatprep.subr.bf16.mxu1 %v10558_v45  ;;  %v7466_v51 = vld [vmem:[%s10383_s15 + $0x70] sm:$0xff]   ;;  %v7467_v45 = vld [vmem:[%s10383_s15 + $0xe8] sm:$0xff]  }
 0xbc3   : > { %5269 = vmatpush1.bf16.msra.mxu0 %v10559_v28  ;;  %5310 = vmatpush1.bf16.msra.mxu1 %v10560_v18  ;;  %v7468_v28 = vld [vmem:[%s10383_s15 + $0x30] sm:$0xff]   ;;  %v7469_v18 = vld [vmem:[%s10383_s15 + $0xa8] sm:$0xff]  }
 0xbc4   : > { %5270 = vmatprep.subr.bf16.mxu0 %v10561_v13  ;;  %5311 = vmatprep.subr.bf16.mxu1 %v10562_v26  ;;  %v7470_v13 = vld [vmem:[%s10383_s15 + $0x78] sm:$0xff]   ;;  %v7471_v26 = vld [vmem:[%s10383_s15 + $0xf0] sm:$0xff]  }
 0xbc7   : > { %5271 = vmatpush1.bf16.msra.mxu0 %v10563_v53  ;;  %5312 = vmatpush1.bf16.msra.mxu1 %v9968_v6  ;;  %v5416_v6 = vld [vmem:[%s10381_s13 + $0x20] sm:$0xff]  ;;  %v7472_v53 = vld [vmem:[%s10383_s15 + $0x38] sm:$0xff]  }
 0xbc8   : > { %5272 = vmatprep.subr.bf16.mxu0 %v10564_v20  ;;  %5313 = vmatprep.subr.bf16.mxu1 %v9971_v24  ;;  %v10568_v24 = vld [vmem:[#allocation33_spill] sm:$0xff]  ;;  %v6504_v41 = vcombine.low %v5412_v30, %v5416_v6  ;;  %v7473_v20 = vld [vmem:[%s10383_s15 + $0xb0] sm:$0xff]  }
 0xbcb   : > { %5273 = vmatpush1.bf16.msra.mxu0 %v10565_v29  ;;  %5314 = vmatpush1.bf16.msra.mxu1 %v9980_v44  ;;  %v6505_v44 = vcombine.high %v5412_v30, %v5416_v6  ;;  %v7474_v29 = vld [vmem:[%s10383_s15 + $0xf8] sm:$0xff]  }
 0xbcc   : > { %5274 = vmatprep.subr.bf16.mxu0 %v10566_v36  ;;  %5315 = vmatprep.subr.bf16.mxu1 %v9983_v32  ;;  %v5413_v32 = vld [vmem:[%s10381_s13 + $0x8] sm:$0xff]  ;;  %v7475_v36 = vld [vmem:[%s10383_s15 + $0xb8] sm:$0xff]  }
 0xbcf   : > { %5275 = vmatpush1.bf16.msra.mxu0 %v10567_v40  ;;  %5316 = vmatpush1.bf16.msra.mxu1 %v9992_v35  ;;  %v6507_v35 = vcombine.high %v5413_v32, %v5417_v42 }
 0xbd0   : > { %5276 = vmatprep.subr.bf16.mxu0 %v10568_v24  ;;  %5317 = vmatprep.subr.bf16.mxu1 %v9995_v57  ;;  %v5414_v57 = vld [vmem:[%s10381_s13 + $0x10] sm:$0xff] }
 0xbd1   : > { %v6509_v60 = vcombine.high %v5414_v57, %v5418_v47  ;;  %v6508_v46 = vcombine.low %v5414_v57, %v5418_v47 }
 0xbd3   : > { %5277 = vmatpush1.bf16.msra.mxu0 %v10569_v7  ;;  %5318 = vmatpush1.bf16.msra.mxu1 %v9998_v21  ;;  %v6506_v21 = vcombine.low %v5413_v32, %v5417_v42 }
 0xbd4   : > { %5507 = vmatprep.subr.bf16.mxu0 %v6505_v44 }
 0xbd6   : > { %5279 = vmatmul.mubr.bf16.vlgmr.msra.gmra.mrb[156].mxu0 %v10083_v27  ;;  %5320 = vmatmul.mubr.bf16.vlgmr.msra.gmra.mrb[156].mxu1 %v10083_v27  ;;  %v5415_v27 = vld [vmem:[%s10381_s13 + $0x18] sm:$0xff] }
 0xbd7   : > { %5508 = vmatpush1.bf16.msra.mxu0 %v6504_v41  ;;  %5539 = vmatprep.mubr.bf16.mxu0 %v10474_v33  ;;  %v6511_v4 = vcombine.high %v5415_v27, %v5419_v50  ;;  %v6510_v49 = vcombine.low %v5415_v27, %v5419_v50 }
 0xbd8   : > { %5548 = vmatprep.subr.bf16.mxu0 %v6507_v35 }
 0xbde   : > { %6512 = vmatmul.mubr.msk.bf16.vlgmr.msra.gmra.mrb[160].mxu0 %vm2422_vm9, %v5421_v16 }
 0xbdf   : > { %5549 = vmatpush1.bf16.msra.mxu0 %v6506_v21  ;;  %5580 = vmatprep.mubr.bf16.mxu0 %v10474_v33 }
 0xbe0   : > { %5589 = vmatprep.subr.bf16.mxu0 %v6509_v60 }
 0xbe6   : > { %6513 = vmatmul.mubr.msk.bf16.vlgmr.msra.gmra.mrb[164].mxu0 %vm2422_vm9, %v5421_v16 }
 0xbe7   : > { %5590 = vmatpush1.bf16.msra.mxu0 %v6508_v46  ;;  %5621 = vmatprep.mubr.bf16.mxu0 %v10474_v33 }
 0xbe8   : > { %5630 = vmatprep.subr.bf16.mxu0 %v6511_v4 }
 0xbee   : > { %6514 = vmatmul.mubr.msk.bf16.vlgmr.msra.gmra.mrb[168].mxu0 %vm2422_vm9, %v5421_v16 }
 0xbef   : > { %5631 = vmatpush1.bf16.msra.mxu0 %v6510_v49  ;;  %5662 = vmatprep.mubr.bf16.mxu0 %v10474_v33  ;;  %v7447_v33 = vld [vmem:[%s10383_s15 + $0xc0] sm:$0xff]  }
 0xbf0   : > { %6605 = vmatprep.subr.bf16.mxu0 %v7444_v23  ;;  %6627 = vmatprep.subr.bf16.mxu1 %v7447_v33  ;;  %v10285_v23 = vld [vmem:[%s10382_s14] sm:$0xff] }
 0xbf1   : > { %6628 = vmatpush3.bf16.msra.mxu1 %v7449_v62  ;;  %v5467_v62 = vrot.slane %v10285_v23, %v8677_v12 }
 0xbf2   : > { %6629 = vmatprep.subr.bf16.mxu1 %v7451_v5  ;;  %v5471_v5 = vrot.slane %v10285_v23, %v8696_v14 }
 0xbf5   : > { %6630 = vmatpush3.bf16.msra.mxu1 %v7453_v11 }
 0xbf6   : > { %6515 = vmatmul.mubr.msk.bf16.vlgmr.msra.gmra.mrb[172].mxu0 %vm2422_vm9, %v5421_v16  ;;  %6631 = vmatprep.subr.bf16.mxu1 %v7455_v59 }
 0xbf7   : > { %6606 = vmatpush3.bf16.msra.mxu0 %v7445_v48 }
 0xbf8   : > { %6607 = vmatprep.subr.bf16.mxu0 %v7446_v38 }
 0xbf9   : > { %6632 = vmatpush3.bf16.msra.mxu1 %v7457_v56 }
 0xbfa   : > { %6633 = vmatprep.subr.bf16.mxu1 %v7459_v37  ;;  %v5150_v37 = vld [vmem:[#allocation2 + $0x1] ss:$2 sm:$0xff] }
 0xbfb   : > { %6608 = vmatpush3.bf16.msra.mxu0 %v7448_v63 }
 0xbfc   : > { %6609 = vmatprep.subr.bf16.mxu0 %v7450_v19 }
 0xbfd   : > { %6634 = vmatpush3.bf16.msra.mxu1 %v7461_v39 }
 0xbfe   : > { %6635 = vmatprep.subr.bf16.mxu1 %v7463_v61 }
 0xbff   : > { %6610 = vmatpush3.bf16.msra.mxu0 %v7452_v22 }
 0xc00   : > { %6611 = vmatprep.subr.bf16.mxu0 %v7454_v9 }
 0xc01   : > { %6636 = vmatpush3.bf16.msra.mxu1 %v7465_v0 }
 0xc02   : > { %6637 = vmatprep.subr.bf16.mxu1 %v7467_v45 }
 0xc03   : > { %6612 = vmatpush3.bf16.msra.mxu0 %v7456_v25 }
 0xc04   : > { %6613 = vmatprep.subr.bf16.mxu0 %v7458_v34 }
 0xc05   : > { %6638 = vmatpush3.bf16.msra.mxu1 %v7469_v18 }
 0xc06   : > { %6639 = vmatprep.subr.bf16.mxu1 %v7471_v26 }
 0xc07   : > { %6614 = vmatpush3.bf16.msra.mxu0 %v7460_v2 }
 0xc08   : > { %6615 = vmatprep.subr.bf16.mxu0 %v7462_v1 }
 0xc09   : > { %6640 = vmatpush3.bf16.msra.mxu1 %v7473_v20 }
 0xc0a   : > { %6641 = vmatprep.subr.bf16.mxu1 %v7474_v29 }
 0xc0b   : > { %6616 = vmatpush3.bf16.msra.mxu0 %v7464_v31  ;;  %v5475_v31 = vrot.slane %v10285_v23, %v3849_v58 }
 0xc0c   : > { %6617 = vmatprep.subr.bf16.mxu0 %v7466_v51 }
 0xc0d   : > { %6642 = vmatpush3.bf16.msra.mxu1 %v7475_v36 }
 0xc0f   : > { %6618 = vmatpush3.bf16.msra.mxu0 %v7468_v28 }
 0xc10   : > { %6619 = vmatprep.subr.bf16.mxu0 %v7470_v13 }
 0xc13   : > { %6620 = vmatpush3.bf16.msra.mxu0 %v7472_v53 }
 0xc69   : > { %v5198_v30 = vpop.f32.mrb[152].mxu0  ;;  %v5239_v6 = vpop.f32.mrb[152].mxu1 }
 0xc6a   : > { %v5200_v40 = vpop.f32.mrb[153].mxu0  ;;  %v5241_v24 = vpop.f32.mrb[153].mxu1 }
 0xc6b   : > { %v5336_v44 = vcombine.low %v5198_v30, %v5200_v40  ;;  %v5337_v32 = vcombine.low %v5239_v6, %v5241_v24  ;;  %v5202_v42 = vpop.f32.mrb[154].mxu0  ;;  %v5243_v7 = vpop.f32.mrb[154].mxu1  ;;  %v5487_v6 = vrot.slane %v10285_v23, %v3861_v10  ;;  %v5491_v10 = vrot.slane %v10285_v23, %v3865_v55 }
 0xc6c   : > { %v5203_v41 = vpop.f32.mrb[155].mxu0  ;;  %v5244_v35 = vpop.f32.mrb[155].mxu1 }
 0xc6d   : > { %v5346_v57 = vrot.slane %v5336_v44, %v10067_v8  ;;  %v5353_v47 = vrot.slane %v5337_v32, %v10067_v8 }
 0xc6f   : > { %v5368_v21 = vcombine.low %v5346_v57, %v5353_v47 }
 0xc71   : > { %v5376_v22 = vrot.slane %v5368_v21, %v10067_v8 }
 0xca9   : > { %v5280_v3 = vpop.f32.mrb[156].mxu0  ;;  %v5321_v16 = vpop.f32.mrb[156].mxu1 }
 0xcaa   : > { %v5282_v60 = vpop.f32.mrb[157].mxu0  ;;  %v5323_v27 = vpop.f32.mrb[157].mxu1 }
 0xcab   : > { %v5338_v50 = vcombine.low %v5280_v3, %v5282_v60  ;;  %v5339_v46 = vcombine.low %v5321_v16, %v5323_v27  ;;  %v5284_v4 = vpop.f32.mrb[158].mxu0  ;;  %v5325_v49 = vpop.f32.mrb[158].mxu1 }
 0xcac   : > { %v5285_v48 = vpop.f32.mrb[159].mxu0  ;;  %v5326_v38 = vpop.f32.mrb[159].mxu1 }
 0xcad   : > { %v5360_v33 = vrot.slane %v5338_v50, %v10067_v8  ;;  %v5367_v63 = vrot.slane %v5339_v46, %v10067_v8  ;;  %v5495_v50 = vrot.slane %v10285_v23, %v3869_v54 }
 0xcaf   : > { %v5369_v19 = vcombine.low %v5360_v33, %v5367_v63 }
 0xcb1   : > { %v5383_v11 = vrot.slane %v5369_v19, %v10067_v8  ;;  %v5541_v9 = vpop.f32.mrb[160].mxu0  ;;  %v5479_v8 = vrot.slane %v10285_v23, %v3853_v17  ;;  %v5483_v17 = vrot.slane %v10285_v23, %v3857_v43 }
 0xcb2   : > { %v5542_v59 = vadd.f32 %v5541_v9, %v5467_v62  ;;  %v5543_v25 = vpop.f32.mrb[161].mxu0 }
 0xcb3   : > { %v5384_v56 = vcombine.low %v5376_v22, %v5383_v11  ;;  %v5545_v34 = vpop.f32.mrb[162].mxu0  ;;  %v5544_v2 = vadd.f32 %v5543_v25, %v5471_v5 }
 0xcb4   : > { %v5546_v39 = vpop.f32.mrb[163].mxu0  ;;  %v5671_v61 = vmul.f32 0.5, %v5542_v59 }
 0xcb5   : > { %v5386_v1 = vadd.f32 %v5384_v56, %v5150_v37  ;;  %v5672_v45 = vmul.f32 0.5, %v5544_v2 }
 0xcb7   : > { %v5387_v0 = vmul.f32 0.5, %v5386_v1  ;;  %v5392_v51 = vrot.slane %v5386_v1, 2  ;;  %v5398_v18 = vrot.slane %v5386_v1, 4  ;;  %v5401_v40 = vrot.slane %v5386_v1, 6 }
 0xcb9   : > { %7486 = vtanh.f32 %v5387_v0  ;;  %v5394_v28 = vmul.f32 0.5, %v5392_v51  ;;  %v5582_v13 = vpop.f32.mrb[164].mxu0  ;;  %v5403_v21 = vmul.f32 0.5, %v5401_v40 }
 0xcba   : > { %7488 = vtanh.f32 %v5671_v61  ;;  %v5583_v26 = vadd.f32 %v5582_v13, %v5475_v31  ;;  %v5584_v53 = vpop.f32.mrb[165].mxu0 }
 0xcbb   : > { %7490 = vtanh.f32 %v5394_v28  ;;  %v5585_v20 = vadd.f32 %v5584_v53, %v5479_v8  ;;  %v5586_v29 = vpop.f32.mrb[166].mxu0 }
 0xcbc   : > { %7492 = vtanh.f32 %v5672_v45  ;;  %v5679_v36 = vmul.f32 0.5, %v5583_v26  ;;  %v5587_v58 = vpop.f32.mrb[167].mxu0 }
 0xcbd   : > { %7494 = vtanh.f32 %v5398_v18  ;;  %v5680_v30 = vmul.f32 0.5, %v5585_v20 }
 0xcbe   : > { %7496 = vtanh.f32 %v5679_v36 }
 0xcbf   : > { %7498 = vtanh.f32 %v5680_v30 }
 0xcc1   : > { %v5623_v24 = vpop.f32.mrb[168].mxu0 }
 0xcc2   : > { %v5624_v44 = vadd.f32 %v5623_v24, %v5483_v17  ;;  %v5625_v32 = vpop.f32.mrb[169].mxu0 }
 0xcc3   : > { %v7487_v42 = vpop.eup %7486  ;;  %v5626_v7 = vadd.f32 %v5625_v32, %v5487_v6  ;;  %v5627_v41 = vpop.f32.mrb[170].mxu0 }
 0xcc4   : > { %v7489_v35 = vpop.eup %7488  ;;  %v5389_v57 = vadd.f32 1.0, %v7487_v42  ;;  %7500 = vtanh.f32 %v5624_v44  ;;  %v5628_v47 = vpop.f32.mrb[171].mxu0 }
 0xcc5   : > { %v7491_v3 = vpop.eup %7490  ;;  %7502 = vtanh.f32 %v5626_v7  ;;  %v5675_v48 = vadd.f32 1.0, %v7489_v35 }
 0xcc6   : > { %v7493_v43 = vpop.eup %7492  ;;  %v5396_v16 = vadd.f32 1.0, %v7491_v3  ;;  %v5390_v60 = vmul.f32 0.5, %v5389_v57  ;;  %7504 = vtanh.f32 %v5403_v21  ;;  %v5786_v57 = vld [vmem:[%s10384_s16] sm:$0x1] }
 0xcc7   : > { %v7495_v27 = vpop.eup %7494  ;;  %v5676_v38 = vadd.f32 1.0, %v7493_v43  ;;  %v5677_v56 = vmul.f32 0.5, %v5675_v48 }
 0xcc8   : > { %v7497_v46 = vpop.eup %7496  ;;  %v5397_v4 = vmul.f32 0.5, %v5396_v16  ;;  %v5408_v55 = vmul.f32 %v7495_v27, %v5390_v60 }
 0xcc9   : > { %v7499_v49 = vpop.eup %7498  ;;  %v5683_v33 = vadd.f32 1.0, %v7497_v46  ;;  %v5664_v63 = vpop.f32.mrb[172].mxu0  ;;  %v5678_v2 = vmul.f32 0.5, %v5676_v38 }
 0xcca   : > { %v5684_v62 = vadd.f32 1.0, %v7499_v49  ;;  %v5665_v19 = vadd.f32 %v5664_v63, %v5491_v10  ;;  %v5666_v5 = vpop.f32.mrb[173].mxu0  ;;  %v5407_v22 = vmul.f32 %v5397_v4, %v10078_v52 }
 0xccb   : > { %v5685_v11 = vmul.f32 0.5, %v5683_v33  ;;  %v5667_v9 = vadd.f32 %v5666_v5, %v5495_v50  ;;  %v5668_v59 = vpop.f32.mrb[174].mxu0 }
 0xccc   : > { %v5686_v15 = vmul.f32 0.5, %v5684_v62  ;;  %v5689_v25 = vmul.f32 0.5, %v5665_v19  ;;  %v5669_v54 = vpop.f32.mrb[175].mxu0  ;;  %v5409_v23 = vadd.f32 %v5408_v55, %v5407_v22 }
 0xccd   : > { %v5690_v34 = vmul.f32 0.5, %v5667_v9  ;;  %v5697_v1 = vmul.f32 0.0, %v5685_v11 }
 0xcce   : > { %v7501_v37 = vpop.eup %7500  ;;  %7506 = vtanh.f32 %v5689_v25  ;;  %v5698_v31 = vmul.f32 0.0, %v5686_v15 }
 0xccf   : > { %v7503_v39 = vpop.eup %7502  ;;  %v5699_v61 = vmul.f32 %v7501_v37, %v5677_v56  ;;  %7508 = vtanh.f32 %v5690_v34 }
 0xcd0   : > { %v5700_v0 = vmul.f32 %v7503_v39, %v5678_v2  ;;  %7510 = vtanh.f32 %v5409_v23  ;;  %v7505_v51 = vpop.eup %7504 }
 0xcd1   : > { %v5701_v52 = vadd.f32 %v5699_v61, %v5697_v1  ;;  %v5405_v45 = vadd.f32 1.0, %v7505_v51 }
 0xcd2   : > { %v5702_v8 = vadd.f32 %v5700_v0, %v5698_v31 }
 0xcd3   : > { %7512 = vtanh.f32 %v5701_v52  ;;  %v5406_v26 = vmul.f32 0.5, %v5405_v45 }
 0xcd4   : > { %7514 = vtanh.f32 %v5702_v8 }
 0xcd8   : > { %v7507_v28 = vpop.eup %7506 }
 0xcd9   : > { %v7509_v18 = vpop.eup %7508  ;;  %v5693_v13 = vadd.f32 1.0, %v7507_v28 }
 0xcda   : > { %v7511_v53 = vpop.eup %7510  ;;  %v5694_v20 = vadd.f32 1.0, %v7509_v18 }
 0xcdb   : > { %v5695_v29 = vmul.f32 0.5, %v5693_v13  ;;  %v5411_v36 = vmul.f32 %v7511_v53, %v5406_v26 }
 0xcdc   : > { %v5696_v58 = vmul.f32 0.5, %v5694_v20 }
 0xcdd   : > { %v7513_v30 = vpop.eup %7512  ;;  %v5715_v17 = vrot.slane %v5411_v36, %v8696_v14  ;;  %v5711_v6 = vrot.slane %v5411_v36, %v8677_v12 }
 0xcde   : > { %v7515_v40 = vpop.eup %7514  ;;  %v5705_v24 = vmul.f32 %v7513_v30, %v5695_v29 }
 0xcdf   : > { %v5719_v44 = vpack.c.bf16 %v5715_v17, %v5715_v17  ;;  %v5718_v32 = vpack.c.bf16 %v5711_v6, %v5711_v6  ;;  %v5706_v42 = vmul.f32 %v7515_v40, %v5696_v58 }
 0xce0   : > { %v5720_v41 = vpack.c.bf16 %v5705_v24, %v5705_v24 }
 0xce1   : > { %6011 = vmatprep.mubr.bf16.mxu0 %v5719_v44  ;;  %v5721_v7 = vpack.c.bf16 %v5706_v42, %v5706_v42 }
 0xce2   : > { %6012 = vmatmul.mubr.bf16.vlgmr.msra.gmra.mrb[176].mxu0 %v5718_v32 }
 0xce3   : > { %6051 = vmatprep.mubr.bf16.mxu1 %v5721_v7 }
 0xce4   : > { %6052 = vmatmul.mubr.bf16.vlgmr.msra.gmra.mrb[160].mxu1 %v5720_v41 }
 0xdb5   : > { %v6621_v35 = vpop.f32.mrb[176].mxu0 }
 0xdb6   : > { %v6622_v47 = vpop.f32.mrb[177].mxu0 }
 0xdb7   : > { %v6623_v14 = vadd.f32 %v6622_v47, %v6621_v35  ;;  %v6624_v21 = vpop.f32.mrb[178].mxu0  ;;  %v6643_v12 = vpop.f32.mrb[160].mxu1 }
 0xdb8   : > { %v6625_v3 = vpop.f32.mrb[179].mxu0  ;;  %v6644_v43 = vpop.f32.mrb[161].mxu1 }
 0xdb9   : > { %v6014_v16 = vadd.f32 %v6623_v14, %v5786_v57  ;;  %v6645_v10 = vadd.f32 %v6644_v43, %v6643_v12  ;;  %v6646_v60 = vpop.f32.mrb[162].mxu1 }
 0xdba   : > { %v6647_v27 = vpop.f32.mrb[163].mxu1 }
 0xdbb   : > { %v6054_v50 = vadd.f32 %v6645_v10, %v6014_v16 }
 0xdbd   : > { %v6059_v46 = vsel %vm2042_vm1, %v6054_v50, -inf }
 0xdbe   : > { %6060 = vmax.xlane.f32.xlu0 %v6059_v46 }
 0xe4b   : > { %v6061_v4 = vpop.xlane.xlu0 %6060 }
 0xe4c   : > { %v6062_v49 = vsub.f32 %v6054_v50, %v6061_v4 }
 0xe4e   : > { %v6063_v48 = vmul.f32 1.442695, %v6062_v49 }
 0xe50   : > { %7516 = vpow2.f32 %v6063_v48 }
 0xe5a   : > { %v7517_v38 = vpop.eup %7516 }
 0xe5b   : > { %v6065_v33 = vsel %vm2042_vm1, %v7517_v38, 0.0 }
 0xe5c   : > { %6066 = vadd.xlane.f32.xlu1 %v6065_v33 }
 0xee9   : > { %v6067_v63 = vpop.xlane.xlu1 %6066 }
 0xeea   : > { %7518 = vlog2.f32 %v6067_v63 }
 0xef4   : > { %v7519_v62 = vpop.eup %7518 }
 0xef5   : > { %v6069_v19 = vmul.f32 0.6931472, %v7519_v62 }
 0xef7   : > { %v6070_v5 = vadd.f32 %v6069_v19, %v6061_v4 }
 0xef9   : > { %v6071_v22 = vsub.f32 %v6054_v50, %v6070_v5 }
 0xefb   : > { %6072 = vst [vmem:[%s540_s24] sm:$0x1] %v6071_v22 }
 0xefc   : > { %7533 = shalt.err (!%p7530_p3)
}
 0xefd   : > { %s7534_s23 = scalar_lea.hbm %s10326_s5, 16  ;;  %s7538_s7 = scalar_lea.hbm %s10385_s17, 32 }
 0xefe   : > { %p7535_p4 = scmp.ne.s32.totalorder %s10326_s5, %s7534_s23  ;;  %p7539_p9 = scmp.lt.u32.totalorder %s10326_s5, %s10385_s17 }
 0xeff   : > { %p7540_p10 = scmp.lt.u32.totalorder %s7538_s7, %s7534_s23  ;;  %p7542_p12 = scmp.lt.u32.totalorder %s7534_s23, %s10326_s5 }
 0xf00   : > { %p7536_p7 = pnand %p7535_p4, %p7730_p5 }
 0xf01   : > { %p7541_p11 = por %p7540_p10, %p7539_p9 }
 0xf02   : > { %p7537_p8 = pneg %p7536_p7 }
 0xf03   : > { %p7543_p13 = por %p7542_p12, %p7541_p11 }
 0xf05   : > { %p7544_p0 = pnand %p7543_p13, %p7537_p8 }
 0xf07   : > { %7547 = shalt.err (!%p7544_p0)
}
 0xf08   : > { %6773 = dma.vmem_to_hbm [thread:$0]  (%p7730_p5), %s10328_s4, 16, %s10326_s5, %s6074_s6  }
 0xf09 PF: > { %s10571_s26 = sld [smem:[#allocation6_spill]]  ;;  %p6779_p1 = scmp.ge.s32.totalorder %s7582_s27, 2 }
 0xf0b   : > { %p6776_p2 = pnand %p6779_p1, %p7734_p6 }
 0xf0f   : > { %s6098_s24 = sand.u32 1, %s10571_s26  }
 0xf10   : > { %s6099_s20 = scalar_lea.sflag [#allocation4], %s6098_s24 }
 0xf11   : > { %7565 = dma.done.wait (!%p6776_p2), %s6099_s20, 16  }
 0xf12   : > { %7567 = vsyncadd (!%p6776_p2), %s6099_s20, 4294967280  ;;  %s10573_s27 = sld [smem:[#allocation8_spill]]  ;;  %s10574_s21 = sld [smem:[#allocation7_spill]] }
 0xf13   : > { %s10575_s26 = sld [smem:[#allocation9_spill]]  ;;  %s10576_s24 = smov %s7574_s25 }
 0xf18   : > { %p27_p3 = scmp.ge.s32.totalorder %s10573_s27, 4   ;;  %s10577_s25 = smov %s10574_s21 }
 0xf1a   :  { %29 = sbr.rel (!%p27_p3) target bundleno = 12 (0xc), region = 127 }
 0xf21   :  { %6103 = vsyncpa [#allocation4], 1 }
 0xf22   :  { %6105 = vsyncpa [#allocation4 + $0x1], 1 }

</bundles_post_ra>
